<compile_context>
chip_gen: v7x
topology: tpu7x:2x2x1
jax: 0.10.0
libtpu: 0.0.40
codegen_flags: <defaults>
</compile_context>

<pallas_src>
import numpy as np

import jax
import jax.numpy as jnp
from jax.experimental import pallas as pl
from jax.experimental.pallas import tpu as pltpu


def _round_up(x, m):
    return (x + m - 1) // m * m


# ------------------------------- fused kernel -------------------------------

def _cnn_fused_kernel(x_ref, ph_ref, a1_ref, b1_ref, a2_ref, b2_ref,
                      wr_ref, bf1_ref, w2_ref, bf2_ref, o_ref,
                      pooled_buf, rhs1_buf, pool1_buf, rhs2_buf, rhs3_buf):
    f32 = jnp.float32
    B = o_ref.shape[2]                      # samples packed into the lane dim
    x = x_ref[0]                            # (80, 40B) rows=(ci,h), lanes=(w,b)

    # --- AvgPool2d(2): rows via one small matmul, columns via pairwise add.
    y = jnp.dot(ph_ref[...], x, preferred_element_type=f32)          # (40, 40B)
    for j in range(20):
        pooled_buf[:, j * B:(j + 1) * B] = 0.5 * (
            y[:, (2 * j) * B:(2 * j + 1) * B]
            + y[:, (2 * j + 1) * B:(2 * j + 2) * B])

    # --- Conv2d(2,20,5): K-stack the 5 kw-shifted windows -> one MXU matmul.
    for kw in range(5):
        rhs1_buf[kw * 40:(kw + 1) * 40, :] = pooled_buf[:, kw * B:(kw + 16) * B]
    m = jnp.dot(a1_ref[...], rhs1_buf[...], preferred_element_type=f32)  # (320,16B)

    # --- MaxPool2d(2): row-pair max (oh parity folded into A1 row order),
    #     column-pair max + lane compaction on the VPU; bias+ReLU after max.
    rowmax = jnp.maximum(m[0:160, :], m[160:320, :])                     # (160,16B)
    for j in range(8):
        pool1_buf[:, j * B:(j + 1) * B] = jnp.maximum(
            rowmax[:, (2 * j) * B:(2 * j + 1) * B],
            rowmax[:, (2 * j + 1) * B:(2 * j + 2) * B])
    pool1 = jnp.maximum(pool1_buf[...] + b1_ref[...], 0.0)               # (160, 8B)

    # --- Conv2d(20,20,5): K-stacked (K=800) single matmul + bias + ReLU.
    for kw in range(5):
        rhs2_buf[kw * 160:(kw + 1) * 160, :] = pool1[:, kw * B:(kw + 4) * B]
    c2 = jnp.dot(a2_ref[...], rhs2_buf[...], preferred_element_type=f32)  # (80, 4B)
    c2 = jnp.maximum(c2 + b2_ref[...], 0.0)

    # --- fc1: PyTorch NCHW view(-1, 320) flatten folded into the K-stack order.
    for ow in range(4):
        rhs3_buf[ow * 80:(ow + 1) * 80, :] = c2[:, ow * B:(ow + 1) * B]
    h = jnp.dot(wr_ref[...], rhs3_buf[...], preferred_element_type=f32) + bf1_ref[...]
    h = jnp.maximum(h, 0.0)                                              # (32, B)

    # --- fc2, lane-dense (no, B) output block.
    out = jnp.dot(w2_ref[...], h, preferred_element_type=f32) + bf2_ref[...]
    o_ref[0] = out.astype(o_ref.dtype)


# --------------------------------- wrapper ----------------------------------

def cnn_forward(x_nchw, params, block_b=128):
    """Forward pass.  x_nchw: (N, 2, 40, 40) float32 (PyTorch NCHW layout)."""
    n, c, h, w = x_nchw.shape
    if (c, h, w) != (2, 40, 40):
        raise ValueError("CNN expects (N, 2, 40, 40) inputs")
    no = params["fc2_b"].shape[0]

    # Batch tile: cover the whole (padded) batch in one step when small,
    # otherwise tiles of block_b samples.
    B = min(block_b, _round_up(n, 8))
    n_pad = _round_up(n, B)
    T = n_pad // B

    x_p = jnp.pad(x_nchw, ((0, n_pad - n), (0, 0), (0, 0), (0, 0)))
    # (T, C*H, W*B) with lane index = w*B + b (batch fastest inside each column).
    x_t = x_p.reshape(T, B, c, h, w).transpose(0, 2, 3, 4, 1).reshape(T, c * h, w * B)

    const = lambda t: (0, 0)
    out_t = pl.pallas_call(
        _cnn_fused_kernel,
        grid=(T,),
        in_specs=[
            pl.BlockSpec((1, c * h, w * B), lambda t: (t, 0, 0)),  # input tile
            pl.BlockSpec((40, 80), const),                         # Ph (avgpool rows)
            pl.BlockSpec((320, 200), const),                       # conv1 K-stacked
            pl.BlockSpec((160, 1), const),                         # conv1 bias rows
            pl.BlockSpec((80, 800), const),                        # conv2 K-stacked
            pl.BlockSpec((80, 1), const),                          # conv2 bias rows
            pl.BlockSpec((32, 320), const),                        # fc1 (flatten-folded)
            pl.BlockSpec((32, 1), const),                          # fc1 bias
            pl.BlockSpec((no, 32), const),                         # fc2 weight
            pl.BlockSpec((no, 1), const),                          # fc2 bias
        ],
        out_specs=pl.BlockSpec((1, no, B), lambda t: (t, 0, 0)),
        out_shape=jax.ShapeDtypeStruct((T, no, B), jnp.float32),
        scratch_shapes=[
            pltpu.VMEM((40, 20 * B), jnp.float32),    # avg-pooled activations
            pltpu.VMEM((200, 16 * B), jnp.float32),   # conv1 K-stacked rhs
            pltpu.VMEM((160, 8 * B), jnp.float32),    # maxpool output (pre bias/relu)
            pltpu.VMEM((800, 4 * B), jnp.float32),    # conv2 K-stacked rhs
            pltpu.VMEM((320, B), jnp.float32),        # fc1 K-stacked rhs
        ],
        compiler_params=pltpu.CompilerParams(
            dimension_semantics=("parallel",),
            vmem_limit_bytes=32 * 1024 * 1024),
    )(x_t, params["ph"], params["a1cat"], params["b1r"], params["a2cat"],
      params["b2r"], params["wr"], params["bf1"], params["fc2_w"], params["bf2"])

    out = out_t.transpose(0, 2, 1).reshape(n_pad, no)
    return out[:n]


# ------------------------------- parameters ---------------------------------

def _derive_kernel_params(p):
    """Fold pooling / flatten structure into small weight-derived matrices."""
    # AvgPool row-pooling matrix (0.5 per tap; the column pair-sum in-kernel
    # carries the other 0.5).
    ph = np.zeros((40, 80), np.float32)
    for ci in range(2):
        for i in range(20):
            ph[ci * 20 + i, ci * 40 + 2 * i] = 0.5
            ph[ci * 20 + i, ci * 40 + 2 * i + 1] = 0.5

    # Conv1: A1cat[di*160 + co*8 + i, kw*40 + ci*20 + p] = W1[co, ci, p-(2i+di), kw]
    t1 = np.zeros((5, 16, 20), np.float32)
    for kh in range(5):
        for oh in range(16):
            t1[kh, oh, oh + kh] = 1.0
    a1 = jnp.einsum('oihw,hqp->woqip', p["conv1_w"], t1)     # (kw, co, oh, ci, p)
    a1 = a1.reshape(5, 20, 8, 2, 2, 20)                      # oh -> (i, di)
    a1cat = jnp.transpose(a1, (3, 1, 2, 0, 4, 5)).reshape(320, 200)

    # Conv2: A2cat[co*4 + oh, kw*160 + c*8 + p] = W2[co, c, p-oh, kw]
    t2 = np.zeros((5, 4, 8), np.float32)
    for kh in range(5):
        for oh in range(4):
            t2[kh, oh, oh + kh] = 1.0
    a2 = jnp.einsum('oihw,hqp->woqip', p["conv2_w"], t2)     # (kw, co, oh, c, p)
    a2cat = jnp.transpose(a2, (1, 2, 0, 3, 4)).reshape(80, 800)

    # Per-row biases (channel value repeated across its spatial rows).
    b1r = jnp.repeat(p["conv1_b"], 8).reshape(160, 1)
    b2r = jnp.repeat(p["conv2_b"], 4).reshape(80, 1)

    # fc1 weight re-ordered to contract against rhs3 rows = ow*80 + co*4 + oh,
    # reproducing PyTorch's NCHW view(-1, 320) order (col = co*16 + oh*4 + ow).
    wr = jnp.transpose(p["fc1_w"].reshape(32, 20, 4, 4), (0, 3, 1, 2)).reshape(32, 320)
    bf1 = p["fc1_b"].reshape(32, 1)
    bf2 = p["fc2_b"].reshape(-1, 1)

    return dict(ph=jnp.asarray(ph), a1cat=a1cat, b1r=b1r, a2cat=a2cat, b2r=b2r,
                wr=wr, bf1=bf1, bf2=bf2)


def init_params(key, num_output):
    ks = jax.random.split(key, 8)

    def u(k, shape, fan_in):
        bound = float(fan_in) ** -0.5
        return jax.random.uniform(k, shape, jnp.float32, -bound, bound)

    conv1_w = u(ks[0], (20, 2, 5, 5), 2 * 5 * 5)     # PyTorch OIHW
    conv1_b = u(ks[1], (20,), 2 * 5 * 5)
    conv2_w = u(ks[2], (20, 20, 5, 5), 20 * 5 * 5)
    conv2_b = u(ks[3], (20,), 20 * 5 * 5)
    fc1_w = u(ks[4], (32, 320), 320)                 # PyTorch (out, in)
    fc1_b = u(ks[5], (32,), 320)
    fc2_w = u(ks[6], (num_output, 32), 32)
    fc2_b = u(ks[7], (num_output,), 32)

    params = dict(conv1_w=conv1_w, conv1_b=conv1_b,
                  conv2_w=conv2_w, conv2_b=conv2_b,
                  fc1_w=fc1_w, fc1_b=fc1_b, fc2_w=fc2_w, fc2_b=fc2_b)
    params.update(_derive_kernel_params(params))
    return params


# --------------------------- pure-JAX reference ------------------------------

def reference_forward(x_nchw, params):
    x = jnp.transpose(x_nchw, (0, 2, 3, 1))  # NHWC
    x = jax.lax.reduce_window(x, 0.0, jax.lax.add,
                              (1, 2, 2, 1), (1, 2, 2, 1), "VALID") * 0.25
    x = jax.lax.conv_general_dilated(
        x, params["conv1_w"], (1, 1), "VALID",
        dimension_numbers=("NHWC", "OIHW", "NHWC")) + params["conv1_b"]
    x = jnp.maximum(x, 0.0)
    x = jax.lax.reduce_window(x, -jnp.inf, jax.lax.max,
                              (1, 2, 2, 1), (1, 2, 2, 1), "VALID")
    x = jax.lax.conv_general_dilated(
        x, params["conv2_w"], (1, 1), "VALID",
        dimension_numbers=("NHWC", "OIHW", "NHWC")) + params["conv2_b"]
    x = jnp.maximum(x, 0.0)
    x = jnp.transpose(x, (0, 3, 1, 2)).reshape(-1, 320)
    h = jnp.maximum(x @ params["fc1_w"].T + params["fc1_b"], 0.0)
    return h @ params["fc2_w"].T + params["fc2_b"]


# ----------------------------------- main ------------------------------------

if __name__ == "__main__":
    num_output = 10
    key = jax.random.PRNGKey(0)
    kx, kp = jax.random.split(key)

    # 40x40 input so that loc(...) yields 20 x 4 x 4 = 320 features, exactly
    # matching x.view(-1, 20*4*4) in the PyTorch module.
    x = jax.random.normal(kx, (2, 2, 40, 40), jnp.float32)  # NCHW
    params = init_params(kp, num_output)

    fwd = jax.jit(cnn_forward)
    out = jax.block_until_ready(fwd(x, params))
    assert out.shape == (2, num_output), out.shape

    ref = reference_forward(x, params)
    err = float(jnp.max(jnp.abs(out - ref)))
    assert jnp.allclose(out, ref, atol=2e-3, rtol=2e-3), f"max abs err {err}"

    print("KERNEL_OK")
</pallas_src>

<mosaic_0001>
module attributes {stable_mosaic.version = 11 : i64} {
  func.func @_cnn_fused_kernel(%arg0: i32, %arg1: memref<1x80x320xf32, #tpu.memory_space<vmem>>, %arg2: memref<40x80xf32, #tpu.memory_space<vmem>>, %arg3: memref<320x200xf32, #tpu.memory_space<vmem>>, %arg4: memref<160x1xf32, #tpu.memory_space<vmem>>, %arg5: memref<80x800xf32, #tpu.memory_space<vmem>>, %arg6: memref<80x1xf32, #tpu.memory_space<vmem>>, %arg7: memref<32x320xf32, #tpu.memory_space<vmem>>, %arg8: memref<32x1xf32, #tpu.memory_space<vmem>>, %arg9: memref<10x32xf32, #tpu.memory_space<vmem>>, %arg10: memref<10x1xf32, #tpu.memory_space<vmem>>, %arg11: memref<1x10x8xf32, #tpu.memory_space<vmem>>, %arg12: memref<40x160xf32, #tpu.memory_space<vmem>>, %arg13: memref<200x128xf32, #tpu.memory_space<vmem>>, %arg14: memref<160x64xf32, #tpu.memory_space<vmem>>, %arg15: memref<800x32xf32, #tpu.memory_space<vmem>>, %arg16: memref<320x8xf32, #tpu.memory_space<vmem>>) attributes {dimension_semantics = [#tpu.dimension_semantics<parallel>], iteration_bounds = array<i64: 1>, scalar_prefetch = 0 : i64, scratch_operands = 5 : i64, tpu.core_type = #tpu.core_type<tc>, window_params = [{transform_indices = @transform_0, window_bounds = array<i64: 1, 80, 320>}, {pipeline_mode = #tpu.pipeline_mode<synchronous>, transform_indices = @transform_1, window_bounds = array<i64: 40, 80>}, {pipeline_mode = #tpu.pipeline_mode<synchronous>, transform_indices = @transform_2, window_bounds = array<i64: 320, 200>}, {pipeline_mode = #tpu.pipeline_mode<synchronous>, transform_indices = @transform_3, window_bounds = array<i64: 160, 1>}, {pipeline_mode = #tpu.pipeline_mode<synchronous>, transform_indices = @transform_4, window_bounds = array<i64: 80, 800>}, {pipeline_mode = #tpu.pipeline_mode<synchronous>, transform_indices = @transform_5, window_bounds = array<i64: 80, 1>}, {pipeline_mode = #tpu.pipeline_mode<synchronous>, transform_indices = @transform_6, window_bounds = array<i64: 32, 320>}, {pipeline_mode = #tpu.pipeline_mode<synchronous>, transform_indices = @transform_7, window_bounds = array<i64: 32, 1>}, {pipeline_mode = #tpu.pipeline_mode<synchronous>, transform_indices = @transform_8, window_bounds = array<i64: 10, 32>}, {pipeline_mode = #tpu.pipeline_mode<synchronous>, transform_indices = @transform_9, window_bounds = array<i64: 10, 1>}, {transform_indices = @transform_10, window_bounds = array<i64: 1, 10, 8>}]} {
    %c0 = arith.constant 0 : index
    %c0_0 = arith.constant 0 : index
    %c0_1 = arith.constant 0 : index
    %0 = vector.load %arg1[%c0, %c0_0, %c0_1] : memref<1x80x320xf32, #tpu.memory_space<vmem>>, vector<1x80x320xf32>
    %1 = vector.shape_cast %0 : vector<1x80x320xf32> to vector<80x320xf32>
    %c0_2 = arith.constant 0 : index
    %c0_3 = arith.constant 0 : index
    %2 = vector.load %arg2[%c0_2, %c0_3] : memref<40x80xf32, #tpu.memory_space<vmem>>, vector<40x80xf32>
    %cst = arith.constant dense<0.000000e+00> : vector<40x320xf32>
    %3 = tpu.matmul %2, %1, %cst {dimension_numbers = #tpu.dot_dimension_numbers<[1], [0], [0], [1], [0, 0, 1, 1], [], []>} : vector<40x80xf32>, vector<80x320xf32>, vector<40x320xf32> -> vector<40x320xf32>
    %4 = vector.extract_strided_slice %3 {offsets = [0, 0], sizes = [40, 8], strides = [1, 1]} : vector<40x320xf32> to vector<40x8xf32>
    %5 = vector.extract_strided_slice %3 {offsets = [0, 8], sizes = [40, 8], strides = [1, 1]} : vector<40x320xf32> to vector<40x8xf32>
    %6 = arith.addf %4, %5 : vector<40x8xf32>
    %cst_4 = arith.constant 5.000000e-01 : f32
    %7 = vector.broadcast %cst_4 : f32 to vector<40x8xf32>
    %8 = arith.mulf %7, %6 : vector<40x8xf32>
    %c0_5 = arith.constant 0 : index
    %c0_6 = arith.constant 0 : index
    %9 = vector.load %arg12[%c0_5, %c0_6] : memref<40x160xf32, #tpu.memory_space<vmem>>, vector<40x8xf32>
    tpu.vector_store %arg12[%c0_5, %c0_6], %8 {strides = array<i32>} : memref<40x160xf32, #tpu.memory_space<vmem>>, vector<40x8xf32>,
    %10 = vector.extract_strided_slice %3 {offsets = [0, 16], sizes = [40, 8], strides = [1, 1]} : vector<40x320xf32> to vector<40x8xf32>
    %11 = vector.extract_strided_slice %3 {offsets = [0, 24], sizes = [40, 8], strides = [1, 1]} : vector<40x320xf32> to vector<40x8xf32>
    %12 = arith.addf %10, %11 : vector<40x8xf32>
    %cst_7 = arith.constant 5.000000e-01 : f32
    %13 = vector.broadcast %cst_7 : f32 to vector<40x8xf32>
    %14 = arith.mulf %13, %12 : vector<40x8xf32>
    %c0_8 = arith.constant 0 : index
    %c8 = arith.constant 8 : index
    %15 = vector.load %arg12[%c0_8, %c8] : memref<40x160xf32, #tpu.memory_space<vmem>>, vector<40x8xf32>
    tpu.vector_store %arg12[%c0_8, %c8], %14 {strides = array<i32>} : memref<40x160xf32, #tpu.memory_space<vmem>>, vector<40x8xf32>,
    %16 = vector.extract_strided_slice %3 {offsets = [0, 32], sizes = [40, 8], strides = [1, 1]} : vector<40x320xf32> to vector<40x8xf32>
    %17 = vector.extract_strided_slice %3 {offsets = [0, 40], sizes = [40, 8], strides = [1, 1]} : vector<40x320xf32> to vector<40x8xf32>
    %18 = arith.addf %16, %17 : vector<40x8xf32>
    %cst_9 = arith.constant 5.000000e-01 : f32
    %19 = vector.broadcast %cst_9 : f32 to vector<40x8xf32>
    %20 = arith.mulf %19, %18 : vector<40x8xf32>
    %c0_10 = arith.constant 0 : index
    %c16 = arith.constant 16 : index
    %21 = vector.load %arg12[%c0_10, %c16] : memref<40x160xf32, #tpu.memory_space<vmem>>, vector<40x8xf32>
    tpu.vector_store %arg12[%c0_10, %c16], %20 {strides = array<i32>} : memref<40x160xf32, #tpu.memory_space<vmem>>, vector<40x8xf32>,
    %22 = vector.extract_strided_slice %3 {offsets = [0, 48], sizes = [40, 8], strides = [1, 1]} : vector<40x320xf32> to vector<40x8xf32>
    %23 = vector.extract_strided_slice %3 {offsets = [0, 56], sizes = [40, 8], strides = [1, 1]} : vector<40x320xf32> to vector<40x8xf32>
    %24 = arith.addf %22, %23 : vector<40x8xf32>
    %cst_11 = arith.constant 5.000000e-01 : f32
    %25 = vector.broadcast %cst_11 : f32 to vector<40x8xf32>
    %26 = arith.mulf %25, %24 : vector<40x8xf32>
    %c0_12 = arith.constant 0 : index
    %c24 = arith.constant 24 : index
    %27 = vector.load %arg12[%c0_12, %c24] : memref<40x160xf32, #tpu.memory_space<vmem>>, vector<40x8xf32>
    tpu.vector_store %arg12[%c0_12, %c24], %26 {strides = array<i32>} : memref<40x160xf32, #tpu.memory_space<vmem>>, vector<40x8xf32>,
    %28 = vector.extract_strided_slice %3 {offsets = [0, 64], sizes = [40, 8], strides = [1, 1]} : vector<40x320xf32> to vector<40x8xf32>
    %29 = vector.extract_strided_slice %3 {offsets = [0, 72], sizes = [40, 8], strides = [1, 1]} : vector<40x320xf32> to vector<40x8xf32>
    %30 = arith.addf %28, %29 : vector<40x8xf32>
    %cst_13 = arith.constant 5.000000e-01 : f32
    %31 = vector.broadcast %cst_13 : f32 to vector<40x8xf32>
    %32 = arith.mulf %31, %30 : vector<40x8xf32>
    %c0_14 = arith.constant 0 : index
    %c32 = arith.constant 32 : index
    %33 = vector.load %arg12[%c0_14, %c32] : memref<40x160xf32, #tpu.memory_space<vmem>>, vector<40x8xf32>
    tpu.vector_store %arg12[%c0_14, %c32], %32 {strides = array<i32>} : memref<40x160xf32, #tpu.memory_space<vmem>>, vector<40x8xf32>,
    %34 = vector.extract_strided_slice %3 {offsets = [0, 80], sizes = [40, 8], strides = [1, 1]} : vector<40x320xf32> to vector<40x8xf32>
    %35 = vector.extract_strided_slice %3 {offsets = [0, 88], sizes = [40, 8], strides = [1, 1]} : vector<40x320xf32> to vector<40x8xf32>
    %36 = arith.addf %34, %35 : vector<40x8xf32>
    %cst_15 = arith.constant 5.000000e-01 : f32
    %37 = vector.broadcast %cst_15 : f32 to vector<40x8xf32>
    %38 = arith.mulf %37, %36 : vector<40x8xf32>
    %c0_16 = arith.constant 0 : index
    %c40 = arith.constant 40 : index
    %39 = vector.load %arg12[%c0_16, %c40] : memref<40x160xf32, #tpu.memory_space<vmem>>, vector<40x8xf32>
    tpu.vector_store %arg12[%c0_16, %c40], %38 {strides = array<i32>} : memref<40x160xf32, #tpu.memory_space<vmem>>, vector<40x8xf32>,
    %40 = vector.extract_strided_slice %3 {offsets = [0, 96], sizes = [40, 8], strides = [1, 1]} : vector<40x320xf32> to vector<40x8xf32>
    %41 = vector.extract_strided_slice %3 {offsets = [0, 104], sizes = [40, 8], strides = [1, 1]} : vector<40x320xf32> to vector<40x8xf32>
    %42 = arith.addf %40, %41 : vector<40x8xf32>
    %cst_17 = arith.constant 5.000000e-01 : f32
    %43 = vector.broadcast %cst_17 : f32 to vector<40x8xf32>
    %44 = arith.mulf %43, %42 : vector<40x8xf32>
    %c0_18 = arith.constant 0 : index
    %c48 = arith.constant 48 : index
    %45 = vector.load %arg12[%c0_18, %c48] : memref<40x160xf32, #tpu.memory_space<vmem>>, vector<40x8xf32>
    tpu.vector_store %arg12[%c0_18, %c48], %44 {strides = array<i32>} : memref<40x160xf32, #tpu.memory_space<vmem>>, vector<40x8xf32>,
    %46 = vector.extract_strided_slice %3 {offsets = [0, 112], sizes = [40, 8], strides = [1, 1]} : vector<40x320xf32> to vector<40x8xf32>
    %47 = vector.extract_strided_slice %3 {offsets = [0, 120], sizes = [40, 8], strides = [1, 1]} : vector<40x320xf32> to vector<40x8xf32>
    %48 = arith.addf %46, %47 : vector<40x8xf32>
    %cst_19 = arith.constant 5.000000e-01 : f32
    %49 = vector.broadcast %cst_19 : f32 to vector<40x8xf32>
    %50 = arith.mulf %49, %48 : vector<40x8xf32>
    %c0_20 = arith.constant 0 : index
    %c56 = arith.constant 56 : index
    %51 = vector.load %arg12[%c0_20, %c56] : memref<40x160xf32, #tpu.memory_space<vmem>>, vector<40x8xf32>
    tpu.vector_store %arg12[%c0_20, %c56], %50 {strides = array<i32>} : memref<40x160xf32, #tpu.memory_space<vmem>>, vector<40x8xf32>,
    %52 = vector.extract_strided_slice %3 {offsets = [0, 128], sizes = [40, 8], strides = [1, 1]} : vector<40x320xf32> to vector<40x8xf32>
    %53 = vector.extract_strided_slice %3 {offsets = [0, 136], sizes = [40, 8], strides = [1, 1]} : vector<40x320xf32> to vector<40x8xf32>
    %54 = arith.addf %52, %53 : vector<40x8xf32>
    %cst_21 = arith.constant 5.000000e-01 : f32
    %55 = vector.broadcast %cst_21 : f32 to vector<40x8xf32>
    %56 = arith.mulf %55, %54 : vector<40x8xf32>
    %c0_22 = arith.constant 0 : index
    %c64 = arith.constant 64 : index
    %57 = vector.load %arg12[%c0_22, %c64] : memref<40x160xf32, #tpu.memory_space<vmem>>, vector<40x8xf32>
    tpu.vector_store %arg12[%c0_22, %c64], %56 {strides = array<i32>} : memref<40x160xf32, #tpu.memory_space<vmem>>, vector<40x8xf32>,
    %58 = vector.extract_strided_slice %3 {offsets = [0, 144], sizes = [40, 8], strides = [1, 1]} : vector<40x320xf32> to vector<40x8xf32>
    %59 = vector.extract_strided_slice %3 {offsets = [0, 152], sizes = [40, 8], strides = [1, 1]} : vector<40x320xf32> to vector<40x8xf32>
    %60 = arith.addf %58, %59 : vector<40x8xf32>
    %cst_23 = arith.constant 5.000000e-01 : f32
    %61 = vector.broadcast %cst_23 : f32 to vector<40x8xf32>
    %62 = arith.mulf %61, %60 : vector<40x8xf32>
    %c0_24 = arith.constant 0 : index
    %c72 = arith.constant 72 : index
    %63 = vector.load %arg12[%c0_24, %c72] : memref<40x160xf32, #tpu.memory_space<vmem>>, vector<40x8xf32>
    tpu.vector_store %arg12[%c0_24, %c72], %62 {strides = array<i32>} : memref<40x160xf32, #tpu.memory_space<vmem>>, vector<40x8xf32>,
    %64 = vector.extract_strided_slice %3 {offsets = [0, 160], sizes = [40, 8], strides = [1, 1]} : vector<40x320xf32> to vector<40x8xf32>
    %65 = vector.extract_strided_slice %3 {offsets = [0, 168], sizes = [40, 8], strides = [1, 1]} : vector<40x320xf32> to vector<40x8xf32>
    %66 = arith.addf %64, %65 : vector<40x8xf32>
    %cst_25 = arith.constant 5.000000e-01 : f32
    %67 = vector.broadcast %cst_25 : f32 to vector<40x8xf32>
    %68 = arith.mulf %67, %66 : vector<40x8xf32>
    %c0_26 = arith.constant 0 : index
    %c80 = arith.constant 80 : index
    %69 = vector.load %arg12[%c0_26, %c80] : memref<40x160xf32, #tpu.memory_space<vmem>>, vector<40x8xf32>
    tpu.vector_store %arg12[%c0_26, %c80], %68 {strides = array<i32>} : memref<40x160xf32, #tpu.memory_space<vmem>>, vector<40x8xf32>,
    %70 = vector.extract_strided_slice %3 {offsets = [0, 176], sizes = [40, 8], strides = [1, 1]} : vector<40x320xf32> to vector<40x8xf32>
    %71 = vector.extract_strided_slice %3 {offsets = [0, 184], sizes = [40, 8], strides = [1, 1]} : vector<40x320xf32> to vector<40x8xf32>
    %72 = arith.addf %70, %71 : vector<40x8xf32>
    %cst_27 = arith.constant 5.000000e-01 : f32
    %73 = vector.broadcast %cst_27 : f32 to vector<40x8xf32>
    %74 = arith.mulf %73, %72 : vector<40x8xf32>
    %c0_28 = arith.constant 0 : index
    %c88 = arith.constant 88 : index
    %75 = vector.load %arg12[%c0_28, %c88] : memref<40x160xf32, #tpu.memory_space<vmem>>, vector<40x8xf32>
    tpu.vector_store %arg12[%c0_28, %c88], %74 {strides = array<i32>} : memref<40x160xf32, #tpu.memory_space<vmem>>, vector<40x8xf32>,
    %76 = vector.extract_strided_slice %3 {offsets = [0, 192], sizes = [40, 8], strides = [1, 1]} : vector<40x320xf32> to vector<40x8xf32>
    %77 = vector.extract_strided_slice %3 {offsets = [0, 200], sizes = [40, 8], strides = [1, 1]} : vector<40x320xf32> to vector<40x8xf32>
    %78 = arith.addf %76, %77 : vector<40x8xf32>
    %cst_29 = arith.constant 5.000000e-01 : f32
    %79 = vector.broadcast %cst_29 : f32 to vector<40x8xf32>
    %80 = arith.mulf %79, %78 : vector<40x8xf32>
    %c0_30 = arith.constant 0 : index
    %c96 = arith.constant 96 : index
    %81 = vector.load %arg12[%c0_30, %c96] : memref<40x160xf32, #tpu.memory_space<vmem>>, vector<40x8xf32>
    tpu.vector_store %arg12[%c0_30, %c96], %80 {strides = array<i32>} : memref<40x160xf32, #tpu.memory_space<vmem>>, vector<40x8xf32>,
    %82 = vector.extract_strided_slice %3 {offsets = [0, 208], sizes = [40, 8], strides = [1, 1]} : vector<40x320xf32> to vector<40x8xf32>
    %83 = vector.extract_strided_slice %3 {offsets = [0, 216], sizes = [40, 8], strides = [1, 1]} : vector<40x320xf32> to vector<40x8xf32>
    %84 = arith.addf %82, %83 : vector<40x8xf32>
    %cst_31 = arith.constant 5.000000e-01 : f32
    %85 = vector.broadcast %cst_31 : f32 to vector<40x8xf32>
    %86 = arith.mulf %85, %84 : vector<40x8xf32>
    %c0_32 = arith.constant 0 : index
    %c104 = arith.constant 104 : index
    %87 = vector.load %arg12[%c0_32, %c104] : memref<40x160xf32, #tpu.memory_space<vmem>>, vector<40x8xf32>
    tpu.vector_store %arg12[%c0_32, %c104], %86 {strides = array<i32>} : memref<40x160xf32, #tpu.memory_space<vmem>>, vector<40x8xf32>,
    %88 = vector.extract_strided_slice %3 {offsets = [0, 224], sizes = [40, 8], strides = [1, 1]} : vector<40x320xf32> to vector<40x8xf32>
    %89 = vector.extract_strided_slice %3 {offsets = [0, 232], sizes = [40, 8], strides = [1, 1]} : vector<40x320xf32> to vector<40x8xf32>
    %90 = arith.addf %88, %89 : vector<40x8xf32>
    %cst_33 = arith.constant 5.000000e-01 : f32
    %91 = vector.broadcast %cst_33 : f32 to vector<40x8xf32>
    %92 = arith.mulf %91, %90 : vector<40x8xf32>
    %c0_34 = arith.constant 0 : index
    %c112 = arith.constant 112 : index
    %93 = vector.load %arg12[%c0_34, %c112] : memref<40x160xf32, #tpu.memory_space<vmem>>, vector<40x8xf32>
    tpu.vector_store %arg12[%c0_34, %c112], %92 {strides = array<i32>} : memref<40x160xf32, #tpu.memory_space<vmem>>, vector<40x8xf32>,
    %94 = vector.extract_strided_slice %3 {offsets = [0, 240], sizes = [40, 8], strides = [1, 1]} : vector<40x320xf32> to vector<40x8xf32>
    %95 = vector.extract_strided_slice %3 {offsets = [0, 248], sizes = [40, 8], strides = [1, 1]} : vector<40x320xf32> to vector<40x8xf32>
    %96 = arith.addf %94, %95 : vector<40x8xf32>
    %cst_35 = arith.constant 5.000000e-01 : f32
    %97 = vector.broadcast %cst_35 : f32 to vector<40x8xf32>
    %98 = arith.mulf %97, %96 : vector<40x8xf32>
    %c0_36 = arith.constant 0 : index
    %c120 = arith.constant 120 : index
    %99 = vector.load %arg12[%c0_36, %c120] : memref<40x160xf32, #tpu.memory_space<vmem>>, vector<40x8xf32>
    tpu.vector_store %arg12[%c0_36, %c120], %98 {strides = array<i32>} : memref<40x160xf32, #tpu.memory_space<vmem>>, vector<40x8xf32>,
    %100 = vector.extract_strided_slice %3 {offsets = [0, 256], sizes = [40, 8], strides = [1, 1]} : vector<40x320xf32> to vector<40x8xf32>
    %101 = vector.extract_strided_slice %3 {offsets = [0, 264], sizes = [40, 8], strides = [1, 1]} : vector<40x320xf32> to vector<40x8xf32>
    %102 = arith.addf %100, %101 : vector<40x8xf32>
    %cst_37 = arith.constant 5.000000e-01 : f32
    %103 = vector.broadcast %cst_37 : f32 to vector<40x8xf32>
    %104 = arith.mulf %103, %102 : vector<40x8xf32>
    %c0_38 = arith.constant 0 : index
    %c128 = arith.constant 128 : index
    %105 = vector.load %arg12[%c0_38, %c128] : memref<40x160xf32, #tpu.memory_space<vmem>>, vector<40x8xf32>
    tpu.vector_store %arg12[%c0_38, %c128], %104 {strides = array<i32>} : memref<40x160xf32, #tpu.memory_space<vmem>>, vector<40x8xf32>,
    %106 = vector.extract_strided_slice %3 {offsets = [0, 272], sizes = [40, 8], strides = [1, 1]} : vector<40x320xf32> to vector<40x8xf32>
    %107 = vector.extract_strided_slice %3 {offsets = [0, 280], sizes = [40, 8], strides = [1, 1]} : vector<40x320xf32> to vector<40x8xf32>
    %108 = arith.addf %106, %107 : vector<40x8xf32>
    %cst_39 = arith.constant 5.000000e-01 : f32
    %109 = vector.broadcast %cst_39 : f32 to vector<40x8xf32>
    %110 = arith.mulf %109, %108 : vector<40x8xf32>
    %c0_40 = arith.constant 0 : index
    %c136 = arith.constant 136 : index
    %111 = vector.load %arg12[%c0_40, %c136] : memref<40x160xf32, #tpu.memory_space<vmem>>, vector<40x8xf32>
    tpu.vector_store %arg12[%c0_40, %c136], %110 {strides = array<i32>} : memref<40x160xf32, #tpu.memory_space<vmem>>, vector<40x8xf32>,
    %112 = vector.extract_strided_slice %3 {offsets = [0, 288], sizes = [40, 8], strides = [1, 1]} : vector<40x320xf32> to vector<40x8xf32>
    %113 = vector.extract_strided_slice %3 {offsets = [0, 296], sizes = [40, 8], strides = [1, 1]} : vector<40x320xf32> to vector<40x8xf32>
    %114 = arith.addf %112, %113 : vector<40x8xf32>
    %cst_41 = arith.constant 5.000000e-01 : f32
    %115 = vector.broadcast %cst_41 : f32 to vector<40x8xf32>
    %116 = arith.mulf %115, %114 : vector<40x8xf32>
    %c0_42 = arith.constant 0 : index
    %c144 = arith.constant 144 : index
    %117 = vector.load %arg12[%c0_42, %c144] : memref<40x160xf32, #tpu.memory_space<vmem>>, vector<40x8xf32>
    tpu.vector_store %arg12[%c0_42, %c144], %116 {strides = array<i32>} : memref<40x160xf32, #tpu.memory_space<vmem>>, vector<40x8xf32>,
    %118 = vector.extract_strided_slice %3 {offsets = [0, 304], sizes = [40, 8], strides = [1, 1]} : vector<40x320xf32> to vector<40x8xf32>
    %119 = vector.extract_strided_slice %3 {offsets = [0, 312], sizes = [40, 8], strides = [1, 1]} : vector<40x320xf32> to vector<40x8xf32>
    %120 = arith.addf %118, %119 : vector<40x8xf32>
    %cst_43 = arith.constant 5.000000e-01 : f32
    %121 = vector.broadcast %cst_43 : f32 to vector<40x8xf32>
    %122 = arith.mulf %121, %120 : vector<40x8xf32>
    %c0_44 = arith.constant 0 : index
    %c152 = arith.constant 152 : index
    %123 = vector.load %arg12[%c0_44, %c152] : memref<40x160xf32, #tpu.memory_space<vmem>>, vector<40x8xf32>
    tpu.vector_store %arg12[%c0_44, %c152], %122 {strides = array<i32>} : memref<40x160xf32, #tpu.memory_space<vmem>>, vector<40x8xf32>,
    %c0_45 = arith.constant 0 : index
    %c0_46 = arith.constant 0 : index
    %124 = vector.load %arg12[%c0_45, %c0_46] : memref<40x160xf32, #tpu.memory_space<vmem>>, vector<40x128xf32>
    %c0_47 = arith.constant 0 : index
    %c0_48 = arith.constant 0 : index
    %125 = vector.load %arg13[%c0_47, %c0_48] : memref<200x128xf32, #tpu.memory_space<vmem>>, vector<40x128xf32>
    tpu.vector_store %arg13[%c0_47, %c0_48], %124 {strides = array<i32>} : memref<200x128xf32, #tpu.memory_space<vmem>>, vector<40x128xf32>,
    %c0_49 = arith.constant 0 : index
    %c8_50 = arith.constant 8 : index
    %126 = vector.load %arg12[%c0_49, %c8_50] : memref<40x160xf32, #tpu.memory_space<vmem>>, vector<40x128xf32>
    %c40_51 = arith.constant 40 : index
    %c0_52 = arith.constant 0 : index
    %127 = vector.load %arg13[%c40_51, %c0_52] : memref<200x128xf32, #tpu.memory_space<vmem>>, vector<40x128xf32>
    tpu.vector_store %arg13[%c40_51, %c0_52], %126 {strides = array<i32>} : memref<200x128xf32, #tpu.memory_space<vmem>>, vector<40x128xf32>,
    %c0_53 = arith.constant 0 : index
    %c16_54 = arith.constant 16 : index
    %128 = vector.load %arg12[%c0_53, %c16_54] : memref<40x160xf32, #tpu.memory_space<vmem>>, vector<40x128xf32>
    %c80_55 = arith.constant 80 : index
    %c0_56 = arith.constant 0 : index
    %129 = vector.load %arg13[%c80_55, %c0_56] : memref<200x128xf32, #tpu.memory_space<vmem>>, vector<40x128xf32>
    tpu.vector_store %arg13[%c80_55, %c0_56], %128 {strides = array<i32>} : memref<200x128xf32, #tpu.memory_space<vmem>>, vector<40x128xf32>,
    %c0_57 = arith.constant 0 : index
    %c24_58 = arith.constant 24 : index
    %130 = vector.load %arg12[%c0_57, %c24_58] : memref<40x160xf32, #tpu.memory_space<vmem>>, vector<40x128xf32>
    %c120_59 = arith.constant 120 : index
    %c0_60 = arith.constant 0 : index
    %131 = vector.load %arg13[%c120_59, %c0_60] : memref<200x128xf32, #tpu.memory_space<vmem>>, vector<40x128xf32>
    tpu.vector_store %arg13[%c120_59, %c0_60], %130 {strides = array<i32>} : memref<200x128xf32, #tpu.memory_space<vmem>>, vector<40x128xf32>,
    %c0_61 = arith.constant 0 : index
    %c32_62 = arith.constant 32 : index
    %132 = vector.load %arg12[%c0_61, %c32_62] : memref<40x160xf32, #tpu.memory_space<vmem>>, vector<40x128xf32>
    %c160 = arith.constant 160 : index
    %c0_63 = arith.constant 0 : index
    %133 = vector.load %arg13[%c160, %c0_63] : memref<200x128xf32, #tpu.memory_space<vmem>>, vector<40x128xf32>
    tpu.vector_store %arg13[%c160, %c0_63], %132 {strides = array<i32>} : memref<200x128xf32, #tpu.memory_space<vmem>>, vector<40x128xf32>,
    %c0_64 = arith.constant 0 : index
    %c0_65 = arith.constant 0 : index
    %134 = vector.load %arg3[%c0_64, %c0_65] : memref<320x200xf32, #tpu.memory_space<vmem>>, vector<320x200xf32>
    %c0_66 = arith.constant 0 : index
    %c0_67 = arith.constant 0 : index
    %135 = vector.load %arg13[%c0_66, %c0_67] : memref<200x128xf32, #tpu.memory_space<vmem>>, vector<200x128xf32>
    %cst_68 = arith.constant dense<0.000000e+00> : vector<320x128xf32>
    %136 = tpu.matmul %134, %135, %cst_68 {dimension_numbers = #tpu.dot_dimension_numbers<[1], [0], [0], [1], [0, 0, 1, 1], [], []>} : vector<320x200xf32>, vector<200x128xf32>, vector<320x128xf32> -> vector<320x128xf32>
    %137 = vector.extract_strided_slice %136 {offsets = [0, 0], sizes = [160, 128], strides = [1, 1]} : vector<320x128xf32> to vector<160x128xf32>
    %138 = vector.extract_strided_slice %136 {offsets = [160, 0], sizes = [160, 128], strides = [1, 1]} : vector<320x128xf32> to vector<160x128xf32>
    %139 = arith.maximumf %137, %138 : vector<160x128xf32>
    %140 = vector.extract_strided_slice %139 {offsets = [0, 0], sizes = [160, 8], strides = [1, 1]} : vector<160x128xf32> to vector<160x8xf32>
    %141 = vector.extract_strided_slice %139 {offsets = [0, 8], sizes = [160, 8], strides = [1, 1]} : vector<160x128xf32> to vector<160x8xf32>
    %142 = arith.maximumf %140, %141 : vector<160x8xf32>
    %c0_69 = arith.constant 0 : index
    %c0_70 = arith.constant 0 : index
    %143 = vector.load %arg14[%c0_69, %c0_70] : memref<160x64xf32, #tpu.memory_space<vmem>>, vector<160x8xf32>
    tpu.vector_store %arg14[%c0_69, %c0_70], %142 {strides = array<i32>} : memref<160x64xf32, #tpu.memory_space<vmem>>, vector<160x8xf32>,
    %144 = vector.extract_strided_slice %139 {offsets = [0, 16], sizes = [160, 8], strides = [1, 1]} : vector<160x128xf32> to vector<160x8xf32>
    %145 = vector.extract_strided_slice %139 {offsets = [0, 24], sizes = [160, 8], strides = [1, 1]} : vector<160x128xf32> to vector<160x8xf32>
    %146 = arith.maximumf %144, %145 : vector<160x8xf32>
    %c0_71 = arith.constant 0 : index
    %c8_72 = arith.constant 8 : index
    %147 = vector.load %arg14[%c0_71, %c8_72] : memref<160x64xf32, #tpu.memory_space<vmem>>, vector<160x8xf32>
    tpu.vector_store %arg14[%c0_71, %c8_72], %146 {strides = array<i32>} : memref<160x64xf32, #tpu.memory_space<vmem>>, vector<160x8xf32>,
    %148 = vector.extract_strided_slice %139 {offsets = [0, 32], sizes = [160, 8], strides = [1, 1]} : vector<160x128xf32> to vector<160x8xf32>
    %149 = vector.extract_strided_slice %139 {offsets = [0, 40], sizes = [160, 8], strides = [1, 1]} : vector<160x128xf32> to vector<160x8xf32>
    %150 = arith.maximumf %148, %149 : vector<160x8xf32>
    %c0_73 = arith.constant 0 : index
    %c16_74 = arith.constant 16 : index
    %151 = vector.load %arg14[%c0_73, %c16_74] : memref<160x64xf32, #tpu.memory_space<vmem>>, vector<160x8xf32>
    tpu.vector_store %arg14[%c0_73, %c16_74], %150 {strides = array<i32>} : memref<160x64xf32, #tpu.memory_space<vmem>>, vector<160x8xf32>,
    %152 = vector.extract_strided_slice %139 {offsets = [0, 48], sizes = [160, 8], strides = [1, 1]} : vector<160x128xf32> to vector<160x8xf32>
    %153 = vector.extract_strided_slice %139 {offsets = [0, 56], sizes = [160, 8], strides = [1, 1]} : vector<160x128xf32> to vector<160x8xf32>
    %154 = arith.maximumf %152, %153 : vector<160x8xf32>
    %c0_75 = arith.constant 0 : index
    %c24_76 = arith.constant 24 : index
    %155 = vector.load %arg14[%c0_75, %c24_76] : memref<160x64xf32, #tpu.memory_space<vmem>>, vector<160x8xf32>
    tpu.vector_store %arg14[%c0_75, %c24_76], %154 {strides = array<i32>} : memref<160x64xf32, #tpu.memory_space<vmem>>, vector<160x8xf32>,
    %156 = vector.extract_strided_slice %139 {offsets = [0, 64], sizes = [160, 8], strides = [1, 1]} : vector<160x128xf32> to vector<160x8xf32>
    %157 = vector.extract_strided_slice %139 {offsets = [0, 72], sizes = [160, 8], strides = [1, 1]} : vector<160x128xf32> to vector<160x8xf32>
    %158 = arith.maximumf %156, %157 : vector<160x8xf32>
    %c0_77 = arith.constant 0 : index
    %c32_78 = arith.constant 32 : index
    %159 = vector.load %arg14[%c0_77, %c32_78] : memref<160x64xf32, #tpu.memory_space<vmem>>, vector<160x8xf32>
    tpu.vector_store %arg14[%c0_77, %c32_78], %158 {strides = array<i32>} : memref<160x64xf32, #tpu.memory_space<vmem>>, vector<160x8xf32>,
    %160 = vector.extract_strided_slice %139 {offsets = [0, 80], sizes = [160, 8], strides = [1, 1]} : vector<160x128xf32> to vector<160x8xf32>
    %161 = vector.extract_strided_slice %139 {offsets = [0, 88], sizes = [160, 8], strides = [1, 1]} : vector<160x128xf32> to vector<160x8xf32>
    %162 = arith.maximumf %160, %161 : vector<160x8xf32>
    %c0_79 = arith.constant 0 : index
    %c40_80 = arith.constant 40 : index
    %163 = vector.load %arg14[%c0_79, %c40_80] : memref<160x64xf32, #tpu.memory_space<vmem>>, vector<160x8xf32>
    tpu.vector_store %arg14[%c0_79, %c40_80], %162 {strides = array<i32>} : memref<160x64xf32, #tpu.memory_space<vmem>>, vector<160x8xf32>,
    %164 = vector.extract_strided_slice %139 {offsets = [0, 96], sizes = [160, 8], strides = [1, 1]} : vector<160x128xf32> to vector<160x8xf32>
    %165 = vector.extract_strided_slice %139 {offsets = [0, 104], sizes = [160, 8], strides = [1, 1]} : vector<160x128xf32> to vector<160x8xf32>
    %166 = arith.maximumf %164, %165 : vector<160x8xf32>
    %c0_81 = arith.constant 0 : index
    %c48_82 = arith.constant 48 : index
    %167 = vector.load %arg14[%c0_81, %c48_82] : memref<160x64xf32, #tpu.memory_space<vmem>>, vector<160x8xf32>
    tpu.vector_store %arg14[%c0_81, %c48_82], %166 {strides = array<i32>} : memref<160x64xf32, #tpu.memory_space<vmem>>, vector<160x8xf32>,
    %168 = vector.extract_strided_slice %139 {offsets = [0, 112], sizes = [160, 8], strides = [1, 1]} : vector<160x128xf32> to vector<160x8xf32>
    %169 = vector.extract_strided_slice %139 {offsets = [0, 120], sizes = [160, 8], strides = [1, 1]} : vector<160x128xf32> to vector<160x8xf32>
    %170 = arith.maximumf %168, %169 : vector<160x8xf32>
    %c0_83 = arith.constant 0 : index
    %c56_84 = arith.constant 56 : index
    %171 = vector.load %arg14[%c0_83, %c56_84] : memref<160x64xf32, #tpu.memory_space<vmem>>, vector<160x8xf32>
    tpu.vector_store %arg14[%c0_83, %c56_84], %170 {strides = array<i32>} : memref<160x64xf32, #tpu.memory_space<vmem>>, vector<160x8xf32>,
    %c0_85 = arith.constant 0 : index
    %c0_86 = arith.constant 0 : index
    %172 = vector.load %arg14[%c0_85, %c0_86] : memref<160x64xf32, #tpu.memory_space<vmem>>, vector<160x64xf32>
    %c0_87 = arith.constant 0 : index
    %c0_88 = arith.constant 0 : index
    %173 = vector.load %arg4[%c0_87, %c0_88] : memref<160x1xf32, #tpu.memory_space<vmem>>, vector<160x1xf32>
    %174 = vector.broadcast %173 : vector<160x1xf32> to vector<160x64xf32>
    %175 = arith.addf %172, %174 : vector<160x64xf32>
    %cst_89 = arith.constant 0.000000e+00 : f32
    %176 = vector.broadcast %cst_89 : f32 to vector<160x64xf32>
    %177 = arith.maximumf %175, %176 : vector<160x64xf32>
    %178 = vector.extract_strided_slice %177 {offsets = [0, 0], sizes = [160, 32], strides = [1, 1]} : vector<160x64xf32> to vector<160x32xf32>
    %c0_90 = arith.constant 0 : index
    %c0_91 = arith.constant 0 : index
    %179 = vector.load %arg15[%c0_90, %c0_91] : memref<800x32xf32, #tpu.memory_space<vmem>>, vector<160x32xf32>
    tpu.vector_store %arg15[%c0_90, %c0_91], %178 {strides = array<i32>} : memref<800x32xf32, #tpu.memory_space<vmem>>, vector<160x32xf32>,
    %180 = vector.extract_strided_slice %177 {offsets = [0, 8], sizes = [160, 32], strides = [1, 1]} : vector<160x64xf32> to vector<160x32xf32>
    %c160_92 = arith.constant 160 : index
    %c0_93 = arith.constant 0 : index
    %181 = vector.load %arg15[%c160_92, %c0_93] : memref<800x32xf32, #tpu.memory_space<vmem>>, vector<160x32xf32>
    tpu.vector_store %arg15[%c160_92, %c0_93], %180 {strides = array<i32>} : memref<800x32xf32, #tpu.memory_space<vmem>>, vector<160x32xf32>,
    %182 = vector.extract_strided_slice %177 {offsets = [0, 16], sizes = [160, 32], strides = [1, 1]} : vector<160x64xf32> to vector<160x32xf32>
    %c320 = arith.constant 320 : index
    %c0_94 = arith.constant 0 : index
    %183 = vector.load %arg15[%c320, %c0_94] : memref<800x32xf32, #tpu.memory_space<vmem>>, vector<160x32xf32>
    tpu.vector_store %arg15[%c320, %c0_94], %182 {strides = array<i32>} : memref<800x32xf32, #tpu.memory_space<vmem>>, vector<160x32xf32>,
    %184 = vector.extract_strided_slice %177 {offsets = [0, 24], sizes = [160, 32], strides = [1, 1]} : vector<160x64xf32> to vector<160x32xf32>
    %c480 = arith.constant 480 : index
    %c0_95 = arith.constant 0 : index
    %185 = vector.load %arg15[%c480, %c0_95] : memref<800x32xf32, #tpu.memory_space<vmem>>, vector<160x32xf32>
    tpu.vector_store %arg15[%c480, %c0_95], %184 {strides = array<i32>} : memref<800x32xf32, #tpu.memory_space<vmem>>, vector<160x32xf32>,
    %186 = vector.extract_strided_slice %177 {offsets = [0, 32], sizes = [160, 32], strides = [1, 1]} : vector<160x64xf32> to vector<160x32xf32>
    %c640 = arith.constant 640 : index
    %c0_96 = arith.constant 0 : index
    %187 = vector.load %arg15[%c640, %c0_96] : memref<800x32xf32, #tpu.memory_space<vmem>>, vector<160x32xf32>
    tpu.vector_store %arg15[%c640, %c0_96], %186 {strides = array<i32>} : memref<800x32xf32, #tpu.memory_space<vmem>>, vector<160x32xf32>,
    %c0_97 = arith.constant 0 : index
    %c0_98 = arith.constant 0 : index
    %188 = vector.load %arg5[%c0_97, %c0_98] : memref<80x800xf32, #tpu.memory_space<vmem>>, vector<80x800xf32>
    %c0_99 = arith.constant 0 : index
    %c0_100 = arith.constant 0 : index
    %189 = vector.load %arg15[%c0_99, %c0_100] : memref<800x32xf32, #tpu.memory_space<vmem>>, vector<800x32xf32>
    %cst_101 = arith.constant dense<0.000000e+00> : vector<80x32xf32>
    %190 = tpu.matmul %188, %189, %cst_101 {dimension_numbers = #tpu.dot_dimension_numbers<[1], [0], [0], [1], [0, 0, 1, 1], [], []>} : vector<80x800xf32>, vector<800x32xf32>, vector<80x32xf32> -> vector<80x32xf32>
    %c0_102 = arith.constant 0 : index
    %c0_103 = arith.constant 0 : index
    %191 = vector.load %arg6[%c0_102, %c0_103] : memref<80x1xf32, #tpu.memory_space<vmem>>, vector<80x1xf32>
    %192 = vector.broadcast %191 : vector<80x1xf32> to vector<80x32xf32>
    %193 = arith.addf %190, %192 : vector<80x32xf32>
    %cst_104 = arith.constant 0.000000e+00 : f32
    %194 = vector.broadcast %cst_104 : f32 to vector<80x32xf32>
    %195 = arith.maximumf %193, %194 : vector<80x32xf32>
    %196 = vector.extract_strided_slice %195 {offsets = [0, 0], sizes = [80, 8], strides = [1, 1]} : vector<80x32xf32> to vector<80x8xf32>
    %c0_105 = arith.constant 0 : index
    %c0_106 = arith.constant 0 : index
    %197 = vector.load %arg16[%c0_105, %c0_106] : memref<320x8xf32, #tpu.memory_space<vmem>>, vector<80x8xf32>
    tpu.vector_store %arg16[%c0_105, %c0_106], %196 {strides = array<i32>} : memref<320x8xf32, #tpu.memory_space<vmem>>, vector<80x8xf32>,
    %198 = vector.extract_strided_slice %195 {offsets = [0, 8], sizes = [80, 8], strides = [1, 1]} : vector<80x32xf32> to vector<80x8xf32>
    %c80_107 = arith.constant 80 : index
    %c0_108 = arith.constant 0 : index
    %199 = vector.load %arg16[%c80_107, %c0_108] : memref<320x8xf32, #tpu.memory_space<vmem>>, vector<80x8xf32>
    tpu.vector_store %arg16[%c80_107, %c0_108], %198 {strides = array<i32>} : memref<320x8xf32, #tpu.memory_space<vmem>>, vector<80x8xf32>,
    %200 = vector.extract_strided_slice %195 {offsets = [0, 16], sizes = [80, 8], strides = [1, 1]} : vector<80x32xf32> to vector<80x8xf32>
    %c160_109 = arith.constant 160 : index
    %c0_110 = arith.constant 0 : index
    %201 = vector.load %arg16[%c160_109, %c0_110] : memref<320x8xf32, #tpu.memory_space<vmem>>, vector<80x8xf32>
    tpu.vector_store %arg16[%c160_109, %c0_110], %200 {strides = array<i32>} : memref<320x8xf32, #tpu.memory_space<vmem>>, vector<80x8xf32>,
    %202 = vector.extract_strided_slice %195 {offsets = [0, 24], sizes = [80, 8], strides = [1, 1]} : vector<80x32xf32> to vector<80x8xf32>
    %c240 = arith.constant 240 : index
    %c0_111 = arith.constant 0 : index
    %203 = vector.load %arg16[%c240, %c0_111] : memref<320x8xf32, #tpu.memory_space<vmem>>, vector<80x8xf32>
    tpu.vector_store %arg16[%c240, %c0_111], %202 {strides = array<i32>} : memref<320x8xf32, #tpu.memory_space<vmem>>, vector<80x8xf32>,
    %c0_112 = arith.constant 0 : index
    %c0_113 = arith.constant 0 : index
    %204 = vector.load %arg7[%c0_112, %c0_113] : memref<32x320xf32, #tpu.memory_space<vmem>>, vector<32x320xf32>
    %c0_114 = arith.constant 0 : index
    %c0_115 = arith.constant 0 : index
    %205 = vector.load %arg16[%c0_114, %c0_115] : memref<320x8xf32, #tpu.memory_space<vmem>>, vector<320x8xf32>
    %cst_116 = arith.constant dense<0.000000e+00> : vector<32x8xf32>
    %206 = tpu.matmul %204, %205, %cst_116 {dimension_numbers = #tpu.dot_dimension_numbers<[1], [0], [0], [1], [0, 0, 1, 1], [], []>} : vector<32x320xf32>, vector<320x8xf32>, vector<32x8xf32> -> vector<32x8xf32>
    %c0_117 = arith.constant 0 : index
    %c0_118 = arith.constant 0 : index
    %207 = vector.load %arg8[%c0_117, %c0_118] : memref<32x1xf32, #tpu.memory_space<vmem>>, vector<32x1xf32>
    %208 = vector.broadcast %207 : vector<32x1xf32> to vector<32x8xf32>
    %209 = arith.addf %206, %208 : vector<32x8xf32>
    %cst_119 = arith.constant 0.000000e+00 : f32
    %210 = vector.broadcast %cst_119 : f32 to vector<32x8xf32>
    %211 = arith.maximumf %209, %210 : vector<32x8xf32>
    %c0_120 = arith.constant 0 : index
    %c0_121 = arith.constant 0 : index
    %212 = vector.load %arg9[%c0_120, %c0_121] : memref<10x32xf32, #tpu.memory_space<vmem>>, vector<10x32xf32>
    %cst_122 = arith.constant dense<0.000000e+00> : vector<10x8xf32>
    %213 = tpu.matmul %212, %211, %cst_122 {dimension_numbers = #tpu.dot_dimension_numbers<[1], [0], [0], [1], [0, 0, 1, 1], [], []>} : vector<10x32xf32>, vector<32x8xf32>, vector<10x8xf32> -> vector<10x8xf32>
    %c0_123 = arith.constant 0 : index
    %c0_124 = arith.constant 0 : index
    %214 = vector.load %arg10[%c0_123, %c0_124] : memref<10x1xf32, #tpu.memory_space<vmem>>, vector<10x1xf32>
    %215 = vector.broadcast %214 : vector<10x1xf32> to vector<10x8xf32>
    %216 = arith.addf %213, %215 : vector<10x8xf32>
    %c0_125 = arith.constant 0 : index
    %c0_126 = arith.constant 0 : index
    %c0_127 = arith.constant 0 : index
    %217 = vector.load %arg11[%c0_125, %c0_126, %c0_127] : memref<1x10x8xf32, #tpu.memory_space<vmem>>, vector<1x10x8xf32>
    %218 = vector.shape_cast %217 : vector<1x10x8xf32> to vector<10x8xf32>
    %219 = vector.shape_cast %216 : vector<10x8xf32> to vector<1x10x8xf32>
    tpu.vector_store %arg11[%c0_125, %c0_126, %c0_127], %219 {strides = array<i32>} : memref<1x10x8xf32, #tpu.memory_space<vmem>>, vector<1x10x8xf32>,
    return
  }
  func.func @transform_0(%arg0: i32) -> (i32, i32, i32) {
    %c0_i32 = arith.constant 0 : i32
    %c0_i32_0 = arith.constant 0 : i32
    %c0_i32_1 = arith.constant 0 : i32
    return %arg0, %c0_i32, %c0_i32_0 : i32, i32, i32
  }
  func.func @transform_1(%arg0: i32) -> (i32, i32) {
    %c0_i32 = arith.constant 0 : i32
    %c0_i32_0 = arith.constant 0 : i32
    %c0_i32_1 = arith.constant 0 : i32
    return %c0_i32, %c0_i32_0 : i32, i32
  }
  func.func @transform_2(%arg0: i32) -> (i32, i32) {
    %c0_i32 = arith.constant 0 : i32
    %c0_i32_0 = arith.constant 0 : i32
    %c0_i32_1 = arith.constant 0 : i32
    return %c0_i32, %c0_i32_0 : i32, i32
  }
  func.func @transform_3(%arg0: i32) -> (i32, i32) {
    %c0_i32 = arith.constant 0 : i32
    %c0_i32_0 = arith.constant 0 : i32
    %c0_i32_1 = arith.constant 0 : i32
    return %c0_i32, %c0_i32_0 : i32, i32
  }
  func.func @transform_4(%arg0: i32) -> (i32, i32) {
    %c0_i32 = arith.constant 0 : i32
    %c0_i32_0 = arith.constant 0 : i32
    %c0_i32_1 = arith.constant 0 : i32
    return %c0_i32, %c0_i32_0 : i32, i32
  }
  func.func @transform_5(%arg0: i32) -> (i32, i32) {
    %c0_i32 = arith.constant 0 : i32
    %c0_i32_0 = arith.constant 0 : i32
    %c0_i32_1 = arith.constant 0 : i32
    return %c0_i32, %c0_i32_0 : i32, i32
  }
  func.func @transform_6(%arg0: i32) -> (i32, i32) {
    %c0_i32 = arith.constant 0 : i32
    %c0_i32_0 = arith.constant 0 : i32
    %c0_i32_1 = arith.constant 0 : i32
    return %c0_i32, %c0_i32_0 : i32, i32
  }
  func.func @transform_7(%arg0: i32) -> (i32, i32) {
    %c0_i32 = arith.constant 0 : i32
    %c0_i32_0 = arith.constant 0 : i32
    %c0_i32_1 = arith.constant 0 : i32
    return %c0_i32, %c0_i32_0 : i32, i32
  }
  func.func @transform_8(%arg0: i32) -> (i32, i32) {
    %c0_i32 = arith.constant 0 : i32
    %c0_i32_0 = arith.constant 0 : i32
    %c0_i32_1 = arith.constant 0 : i32
    return %c0_i32, %c0_i32_0 : i32, i32
  }
  func.func @transform_9(%arg0: i32) -> (i32, i32) {
    %c0_i32 = arith.constant 0 : i32
    %c0_i32_0 = arith.constant 0 : i32
    %c0_i32_1 = arith.constant 0 : i32
    return %c0_i32, %c0_i32_0 : i32, i32
  }
  func.func @transform_10(%arg0: i32) -> (i32, i32, i32) {
    %c0_i32 = arith.constant 0 : i32
    %c0_i32_0 = arith.constant 0 : i32
    %c0_i32_1 = arith.constant 0 : i32
    return %arg0, %c0_i32, %c0_i32_0 : i32, i32, i32
  }
}

</mosaic_0001>

<bundles_post_ra>
// kernel: cnn_forward.1
= control target key start
LH: loop header
LB: loop body
LE: loop exit
PB: predicated region body
PF: predicated region fallthrough
CT: control target
= control target key end

     0   :  { %v4764_v0 = vmov 0.0|0.0   ;;  %vm4765_vm0 = vmmov 0   ;;  %v4766_v4 = vmov 0.0   ;;  %vm70_vm1 = vcmask 654336   ;;  %s4767_s22 = smov 120   ;;  %s4769_s23 = smov 104   ;;  %s7052_s0 = inlined_call_operand.vmem [shape: f32[1,80,320], index: 0, kind: input, shape index: {}]   ;;  %s7053_s1 = inlined_call_operand.vmem [shape: f32[40,80], index: 1, kind: input, shape index: {}]   ;;  %s7054_s2 = inlined_call_operand.vmem [shape: f32[320,200], index: 2, kind: input, shape index: {}]   ;;  %s7055_s3 = inlined_call_operand.vmem [shape: f32[160,1], index: 3, kind: input, shape index: {}]   ;;  %s7056_s4 = inlined_call_operand.vmem [shape: f32[80,800], index: 4, kind: input, shape index: {}]   ;;  %s7057_s5 = inlined_call_operand.vmem [shape: f32[80,1], index: 5, kind: input, shape index: {}]   ;;  %s7058_s6 = inlined_call_operand.vmem [shape: f32[32,320], index: 6, kind: input, shape index: {}]   ;;  %s7059_s7 = inlined_call_operand.vmem [shape: f32[32,1], index: 7, kind: input, shape index: {}]   ;;  %s7060_s9 = inlined_call_operand.vmem [shape: f32[10,1], index: 9, kind: input, shape index: {}]   ;;  %s7061_s8 = inlined_call_operand.vmem [shape: f32[10,32], index: 8, kind: input, shape index: {}]   ;;  %s7062_s10 = inlined_call_operand.vmem [shape: f32[1,10,8], index: 10, kind: output, shape index: {}]  }
   0x1   :  { %4437 = vmatprep.subr.bf16.mxu1 %v4764_v0  ;;  %v36_v1 = vld [vmem:[%s7052_s0 + $0x8] sm:$0xff]  ;;  %v39_v2 = vld [vmem:[%s7052_s0 + $0x20] sm:$0xff]  ;;  %v37_v3 = vld [vmem:[%s7052_s0 + $0x10] sm:$0xff]  ;;  %4346 = vmatprep.mubr.msk.f32.mxu1 %vm4765_vm0, %v4766_v4  ;;  %vm301_vm2 = vcmask 64512   ;;  %s4770_s24 = smov 88   ;;  %s4771_s25 = smov 72  }
   0x2   :  { %v4417_v5 = vpack.c.bf16 %v39_v2, %v36_v1  ;;  %v40_v6 = vld [vmem:[%s7052_s0 + $0x28] sm:$0xff]  ;;  %v35_v7 = vld [vmem:[%s7052_s0] sm:$0xff]  ;;  %v38_v8 = vld [vmem:[%s7052_s0 + $0x18] sm:$0xff]  ;;  %150 = vmatprep.mubr.f32.mxu0 %v4766_v4  ;;  %s4772_s26 = smov 96   ;;  %s4773_s27 = smov 56   ;;  %vm327_vm3 = vcmask 130112  }
   0x3   :  { %v4438_v9 = vpack.c.bf16 %v40_v6, %v37_v3  ;;  %v4419_v10 = vpack.c.bf16 %v38_v8, %v35_v7  ;;  %v42_v11 = vld [vmem:[%s7052_s0 + $0x38] sm:$0xff]  ;;  %v45_v12 = vld [vmem:[%s7052_s0 + $0x50] sm:$0xff]  ;;  %v43_v13 = vld [vmem:[%s7052_s0 + $0x40] sm:$0xff]  ;;  %s4774_s28 = smov 80   ;;  %s4775_s29 = smov 40   ;;  %vm348_vm4 = vcmask 195712  }
   0x4   :  { %4418 = vmatprep.subr.bf16.mxu0 %v4417_v5  ;;  %v4421_v14 = vpack.c.bf16 %v45_v12, %v42_v11  ;;  %v46_v15 = vld [vmem:[%s7052_s0 + $0x58] sm:$0xff]  ;;  %v41_v16 = vld [vmem:[%s7052_s0 + $0x30] sm:$0xff]  ;;  %v44_v17 = vld [vmem:[%s7052_s0 + $0x48] sm:$0xff]  ;;  %s4776_s30 = smov 64   ;;  %s4777_s11 = smov 24   ;;  %vm369_vm5 = vcmask 261312  }
   0x5   :  { %4439 = vmatpush3.bf16.msra.mxu1 %v4438_v9  ;;  %4420 = vmatpush1.bf16.msra.mxu0 %v4419_v10  ;;  %v4441_v18 = vpack.c.bf16 %v46_v15, %v43_v13  ;;  %v4423_v19 = vpack.c.bf16 %v44_v17, %v41_v16  ;;  %v48_v20 = vld [vmem:[%s7052_s0 + $0x68] sm:$0xff]  ;;  %v51_v21 = vld [vmem:[%s7052_s0 + $0x80] sm:$0xff]  ;;  %v49_v22 = vld [vmem:[%s7052_s0 + $0x70] sm:$0xff]  ;;  %s4778_s12 = smov 48   ;;  %s4779_s13 = smov 16   ;;  %vm390_vm6 = vcmask 326912  }
   0x6   :  { %4440 = vmatprep.subr.bf16.mxu1 %v4764_v0  ;;  %4422 = vmatprep.subr.bf16.mxu0 %v4421_v14  ;;  %v4425_v23 = vpack.c.bf16 %v51_v21, %v48_v20  ;;  %v52_v24 = vld [vmem:[%s7052_s0 + $0x88] sm:$0xff]  ;;  %v47_v25 = vld [vmem:[%s7052_s0 + $0x60] sm:$0xff]  ;;  %v50_v26 = vld [vmem:[%s7052_s0 + $0x78] sm:$0xff]  ;;  %s4780_s14 = smov 32   ;;  %vm411_vm7 = vcmask 392512   ;;  %vm432_vm8 = vcmask 458112  }
   0x7   :  { %v54_v27 = vld [vmem:[%s7052_s0 + $0x98] sm:$0xff]  ;;  %v57_v28 = vld [vmem:[%s7052_s0 + $0xb0] sm:$0xff]  ;;  %v4444_v29 = vpack.c.bf16 %v52_v24, %v49_v22  ;;  %v4427_v30 = vpack.c.bf16 %v50_v26, %v47_v25  ;;  %v55_v31 = vld [vmem:[%s7052_s0 + $0xa0] sm:$0xff]  ;;  %vm453_vm9 = vcmask 523712   ;;  %vm509_vm10 = vcmask 589312  }
   0x8   :  { %v4429_v32 = vpack.c.bf16 %v57_v28, %v54_v27  ;;  %v58_v33 = vld [vmem:[%s7052_s0 + $0xb8] sm:$0xff]  ;;  %v53_v34 = vld [vmem:[%s7052_s0 + $0x90] sm:$0xff]  ;;  %v56_v35 = vld [vmem:[%s7052_s0 + $0xa8] sm:$0xff]  ;;  %vm530_vm11 = vcmask 654912   ;;  %vm551_vm12 = vcmask 720512   ;;  %vm572_vm13 = vcmask 786112  }
   0x9   :  { %4442 = vmatpush3.bf16.msra.mxu1 %v4441_v18  ;;  %4424 = vmatpush1.bf16.msra.mxu0 %v4423_v19  ;;  %v60_v36 = vld [vmem:[%s7052_s0 + $0xc8] sm:$0xff]  ;;  %v63_v37 = vld [vmem:[%s7052_s0 + $0xe0] sm:$0xff]  ;;  %v4447_v38 = vpack.c.bf16 %v58_v33, %v55_v31  ;;  %v4431_v39 = vpack.c.bf16 %v56_v35, %v53_v34  ;;  %v61_v40 = vld [vmem:[%s7052_s0 + $0xd0] sm:$0xff]  ;;  %vm593_vm14 = vcmask 851712   ;;  %vm614_vm15 = vcmask 917312  }
   0xa   :  { %4443 = vmatprep.subr.bf16.mxu1 %v4764_v0  ;;  %4426 = vmatprep.subr.bf16.mxu0 %v4425_v23  ;;  %v4433_v41 = vpack.c.bf16 %v63_v37, %v60_v36  ;;  %v64_v42 = vld [vmem:[%s7052_s0 + $0xe8] sm:$0xff]  ;;  %v59_v43 = vld [vmem:[%s7052_s0 + $0xc0] sm:$0xff]  ;;  %v62_v44 = vld [vmem:[%s7052_s0 + $0xd8] sm:$0xff]  ;;  %s4781_s0 = smov 8  }
   0xb   :  { %v4450_v45 = vpack.c.bf16 %v64_v42, %v61_v40  ;;  %v4435_v46 = vpack.c.bf16 %v62_v44, %v59_v43  ;;  %v65_v47 = vld [vmem:[%s7053_s1] sm:$0xff]  ;;  %v66_v48 = vld [vmem:[%s7053_s1 + $0x8] sm:$0xff]  ;;  %v67_v49 = vld [vmem:[%s7053_s1 + $0x10] sm:$0xff] }
   0xc   :  { %v68_v50 = vld [vmem:[%s7053_s1 + $0x18] sm:$0xff]  ;;  %v69_v51 = vld [vmem:[%s7053_s1 + $0x20] sm:$0xff]  ;;  %s4768_s1 = smov 112  }
   0xd   :  { %4445 = vmatpush3.bf16.msra.mxu1 %v4444_v29  ;;  %4428 = vmatpush1.bf16.msra.mxu0 %v4427_v30 }
   0xe   :  { %4446 = vmatprep.subr.bf16.mxu1 %v4764_v0  ;;  %4430 = vmatprep.subr.bf16.mxu0 %v4429_v32 }
  0x11   :  { %4448 = vmatpush3.bf16.msra.mxu1 %v4447_v38  ;;  %4432 = vmatpush1.bf16.msra.mxu0 %v4431_v39 }
  0x12   :  { %4449 = vmatprep.subr.bf16.mxu1 %v4764_v0  ;;  %4434 = vmatprep.subr.bf16.mxu0 %v4433_v41 }
  0x15   :  { %4451 = vmatpush3.bf16.msra.mxu1 %v4450_v45  ;;  %4436 = vmatpush1.bf16.msra.mxu0 %v4435_v46 }
  0x16   :  { %4452 = vmatprep.subr.bf16.mxu0 %v4764_v0 }
  0x18   :  { %4347 = vmatmul.mubr.msk.f32.vlgmr.msra.gmra.mrb[0].mxu1 %vm70_vm1, %v65_v47  ;;  %3983 = vmatmul.mubr.msk.f32.vlgmr.msra.gmra.mrb[0].mxu0 %vm70_vm1, %v65_v47 }
  0x19   :  { %156 = vmatprep.mubr.f32.mxu0 %v4766_v4  ;;  %4349 = vmatprep.mubr.msk.f32.mxu1 %vm4765_vm0, %v4766_v4 }
  0x1c   :  { %3984 = vmatmul.mubr.msk.f32.gmra.mrb[2].mxu0 %vm70_vm1, %v66_v48  ;;  %4350 = vmatmul.mubr.msk.f32.gmra.mrb[2].mxu1 %vm70_vm1, %v66_v48 }
  0x1d   :  { %162 = vmatprep.mubr.f32.mxu0 %v4766_v4  ;;  %4352 = vmatprep.mubr.msk.f32.mxu1 %vm4765_vm0, %v4766_v4 }
  0x20   :  { %3985 = vmatmul.mubr.msk.f32.gmra.mrb[4].mxu0 %vm70_vm1, %v67_v49  ;;  %4353 = vmatmul.mubr.msk.f32.gmra.mrb[4].mxu1 %vm70_vm1, %v67_v49 }
  0x21   :  { %4355 = vmatprep.mubr.msk.f32.mxu1 %vm4765_vm0, %v4766_v4  ;;  %168 = vmatprep.mubr.f32.mxu0 %v4766_v4 }
  0x24   :  { %4356 = vmatmul.mubr.msk.f32.gmra.mrb[6].mxu1 %vm70_vm1, %v68_v50  ;;  %3986 = vmatmul.mubr.msk.f32.gmra.mrb[6].mxu0 %vm70_vm1, %v68_v50 }
  0x25   :  { %4358 = vmatprep.mubr.msk.f32.mxu1 %vm4765_vm0, %v4766_v4  ;;  %174 = vmatprep.mubr.f32.mxu0 %v4766_v4  ;;  %vm635_vm0 = vcmask 982912  }
  0x28   :  { %4359 = vmatmul.mubr.msk.f32.gmra.mrb[8].mxu1 %vm70_vm1, %v69_v51  ;;  %3987 = vmatmul.mubr.msk.f32.gmra.mrb[8].mxu0 %vm70_vm1, %v69_v51  ;;  %vm656_vm1 = vcmask 1048512  }
  0xeb   :  { %v247_v52 = vpop.f32.mrb[0].mxu1  ;;  %v152_v53 = vpop.f32.mrb[0].mxu0 }
  0xec   :  { %667 = vrot.lane.b32.xlu0 %v247_v52, %s4767_s22  ;;  %v4348_v54 = vpop.f32.mrb[1].mxu1  ;;  %v4975_v55 = vpop.f32.mrb[1].mxu0 }
  0xed   :  { %464 = vrot.lane.b32.xlu1 %v4975_v55, %s4767_s22 }
  0xef   :  { %v252_v56 = vpop.f32.mrb[2].mxu1  ;;  %v158_v57 = vpop.f32.mrb[2].mxu0 }
  0xf0   :  { %276 = vrot.lane.b32.xlu0 %v152_v53, %s4767_s22  ;;  %v4980_v58 = vpop.f32.mrb[3].mxu0  ;;  %v4351_v59 = vpop.f32.mrb[3].mxu1 }
  0xf1   :  { %669 = vrot.lane.b32.xlu1 %v252_v56, %s4767_s22 }
  0xf3   :  { %v164_v60 = vpop.f32.mrb[4].mxu0  ;;  %v257_v61 = vpop.f32.mrb[4].mxu1 }
  0xf4   :  { %278 = vrot.lane.b32.xlu0 %v158_v57, %s4767_s22  ;;  %v4984_v62 = vpop.f32.mrb[5].mxu0  ;;  %v4354_v63 = vpop.f32.mrb[5].mxu1 }
  0xf5   :  { %280 = vrot.lane.b32.xlu1 %v164_v60, %s4767_s22 }
  0xf7   :  { %v262_v1 = vpop.f32.mrb[6].mxu1  ;;  %v170_v2 = vpop.f32.mrb[6].mxu0 }
  0xf8   :  { %466 = vrot.lane.b32.xlu0 %v4980_v58, %s4767_s22  ;;  %v4989_v3 = vpop.f32.mrb[7].mxu0  ;;  %v4357_v5 = vpop.f32.mrb[7].mxu1 }
  0xf9   :  { %468 = vrot.lane.b32.xlu1 %v4984_v62, %s4767_s22 }
  0xfb   :  { %v4993_v6 = vpop.f32.mrb[8].mxu1  ;;  %v4995_v7 = vpop.f32.mrb[8].mxu0 }
  0xfc   :  { %671 = vrot.lane.b32.xlu0 %v257_v61, %s4767_s22  ;;  %v4998_v8 = vpop.f32.mrb[9].mxu0  ;;  %v4360_v9 = vpop.f32.mrb[9].mxu1 }
  0xfd   :  { %673 = vrot.lane.b32.xlu1 %v262_v1, %s4767_s22 }
 0x100   :  { %282 = vrot.lane.b32.xlu0 %v170_v2, %s4767_s22 }
 0x101   :  { %470 = vrot.lane.b32.xlu1 %v4989_v3, %s4767_s22 }
 0x104   :  { %675 = vrot.lane.b32.xlu0 %v4993_v6, %s4767_s22 }
 0x105   :  { %284 = vrot.lane.b32.xlu1 %v4995_v7, %s4767_s22 }
 0x108   :  { %472 = vrot.lane.b32.xlu0 %v4998_v8, %s4767_s22 }
 0x15e   :  { %v668_v10 = vpop.permute.xlu0 %667 }
 0x15f   :  { %v682_v11 = vadd.f32 %v668_v10, %v247_v52  ;;  %v465_v12 = vpop.permute.xlu1 %464 }
 0x160   :  { %v479_v32 = vadd.f32 %v465_v12, %v4975_v55 }
 0x161   :  { %v687_v13 = vmul.f32 0.5, %v682_v11 }
 0x162   :  { %v277_v14 = vpop.permute.xlu0 %276  ;;  %v484_v38 = vmul.f32 0.5, %v479_v32 }
 0x163   :  { %v291_v15 = vadd.f32 %v277_v14, %v152_v53  ;;  %702 = vrot.lane.b32.xlu0 %v687_v13, %s4767_s22  ;;  %v670_v16 = vpop.permute.xlu1 %669  ;;  %692 = vst.msk [vmem:[#allocation2 + $0x8] sm:$0xff] %vm301_vm2, %v687_v13 }
 0x164   :  { %v683_v17 = vadd.f32 %v670_v16, %v252_v56 }
 0x165   :  { %v296_v18 = vmul.f32 0.5, %v291_v15 }
 0x166   :  { %v5012_v19 = vmul.f32 0.5, %v683_v17  ;;  %v279_v20 = vpop.permute.xlu0 %278 }
 0x167   :  { %v292_v21 = vadd.f32 %v279_v20, %v158_v57  ;;  %312 = vrot.lane.b32.xlu1 %v296_v18, %s4767_s22  ;;  %722 = vrot.lane.b32.xlu0 %v687_v13, %s4768_s1  ;;  %v281_v22 = vpop.permute.xlu1 %280  ;;  %302 = vst.msk [vmem:[#allocation2] sm:$0xff] %vm301_vm2, %v296_v18 }
 0x168   :  { %v293_v23 = vadd.f32 %v281_v22, %v164_v60  ;;  %693 = vst.msk [vmem:[#allocation2 + $0x18] sm:$0xff] %vm301_vm2, %v5012_v19 }
 0x169   :  { %v5019_v24 = vmul.f32 0.5, %v292_v21 }
 0x16a   :  { %v5021_v25 = vmul.f32 0.5, %v293_v23  ;;  %v467_v26 = vpop.permute.xlu0 %466 }
 0x16b   :  { %354 = vrot.lane.b32.xlu1 %v296_v18, %s4769_s23  ;;  %742 = vrot.lane.b32.xlu0 %v687_v13, %s4769_s23  ;;  %v5025_v27 = vpop.permute.xlu1 %468  ;;  %303 = vst.msk [vmem:[#allocation2 + $0x10] sm:$0xff] %vm301_vm2, %v5019_v24  ;;  %v480_v46 = vadd.f32 %v467_v26, %v4980_v58 }
 0x16c   :  { %304 = vst.msk [vmem:[#allocation2 + $0x20] sm:$0xff] %vm301_vm2, %v5021_v25  ;;  %v481_v48 = vadd.f32 %v5025_v27, %v4984_v62 }
 0x16d   :  { %v485_v47 = vmul.f32 0.5, %v480_v46 }
 0x16e   :  { %v672_v28 = vpop.permute.xlu0 %671  ;;  %v486_v49 = vmul.f32 0.5, %v481_v48 }
 0x16f   :  { %v684_v29 = vadd.f32 %v672_v28, %v257_v61  ;;  %396 = vrot.lane.b32.xlu1 %v296_v18, %s4770_s24  ;;  %333 = vrot.lane.b32.xlu0 %v296_v18, %s4768_s1  ;;  %v674_v30 = vpop.permute.xlu1 %673 }
 0x170   :  { %v685_v31 = vadd.f32 %v674_v30, %v262_v1 }
 0x171   :  { %v689_v33 = vmul.f32 0.5, %v684_v29 }
 0x172   :  { %v5034_v34 = vmul.f32 0.5, %v685_v31  ;;  %v283_v35 = vpop.permute.xlu0 %282 }
 0x173   :  { %v294_v36 = vadd.f32 %v283_v35, %v170_v2  ;;  %438 = vrot.lane.b32.xlu1 %v296_v18, %s4771_s25  ;;  %375 = vrot.lane.b32.xlu0 %v296_v18, %s4772_s26  ;;  %v5038_v37 = vpop.permute.xlu1 %470  ;;  %694 = vst.msk [vmem:[#allocation2 + $0x28] sm:$0xff] %vm301_vm2, %v689_v33 }
 0x174   :  { %695 = vst.msk [vmem:[#allocation2 + $0x38] sm:$0xff] %vm301_vm2, %v5034_v34  ;;  %v482_v58 = vadd.f32 %v5038_v37, %v4989_v3 }
 0x175   :  { %v5043_v39 = vmul.f32 0.5, %v294_v36 }
 0x176   :  { %v676_v40 = vpop.permute.xlu0 %675  ;;  %v5158_v61 = vmul.f32 0.5, %v482_v58 }
 0x177   :  { %v686_v41 = vadd.f32 %v676_v40, %v4993_v6  ;;  %515 = vrot.lane.b32.xlu1 %v484_v38, %s4773_s27  ;;  %417 = vrot.lane.b32.xlu0 %v296_v18, %s4774_s28  ;;  %v285_v42 = vpop.permute.xlu1 %284  ;;  %305 = vst.msk [vmem:[#allocation2 + $0x30] sm:$0xff] %vm301_vm2, %v5043_v39 }
 0x178   :  { %v295_v43 = vadd.f32 %v285_v42, %v4995_v7 }
 0x179   :  { %v5051_v44 = vmul.f32 0.5, %v686_v41 }
 0x17a   :  { %v5053_v45 = vmul.f32 0.5, %v295_v43  ;;  %v473_v50 = vpop.permute.xlu0 %472 }
 0x17b   :  { %557 = vrot.lane.b32.xlu1 %v484_v38, %s4775_s29  ;;  %494 = vrot.lane.b32.xlu0 %v484_v38, %s4776_s30  ;;  %696 = vst.msk [vmem:[#allocation2 + $0x48] sm:$0xff] %vm301_vm2, %v5051_v44  ;;  %v483_v1 = vadd.f32 %v473_v50, %v4998_v8 }
 0x17c   :  { %306 = vst.msk [vmem:[#allocation2 + $0x40] sm:$0xff] %vm301_vm2, %v5053_v45 }
 0x17d   :  { %v488_v5 = vmul.f32 0.5, %v483_v1 }
 0x17f   :  { %599 = vrot.lane.b32.xlu1 %v484_v38, %s4777_s11  ;;  %536 = vrot.lane.b32.xlu0 %v484_v38, %s4778_s12 }
 0x183   :  { %620 = vrot.lane.b32.xlu1 %v484_v38, %s4779_s13  ;;  %578 = vrot.lane.b32.xlu0 %v484_v38, %s4780_s14 }
 0x187   :  { %641 = vrot.lane.b32.xlu1 %v484_v38, %s4781_s0  ;;  %335 = vrot.lane.b32.xlu0 %v5019_v24, %s4768_s1 }
 0x18b   :  { %704 = vrot.lane.b32.xlu1 %v5012_v19, %s4767_s22  ;;  %377 = vrot.lane.b32.xlu0 %v5019_v24, %s4772_s26 }
 0x18f   :  { %724 = vrot.lane.b32.xlu1 %v5012_v19, %s4768_s1  ;;  %419 = vrot.lane.b32.xlu0 %v5019_v24, %s4774_s28 }
 0x193   :  { %744 = vrot.lane.b32.xlu1 %v5012_v19, %s4769_s23  ;;  %496 = vrot.lane.b32.xlu0 %v485_v47, %s4776_s30 }
 0x197   :  { %314 = vrot.lane.b32.xlu1 %v5019_v24, %s4767_s22  ;;  %706 = vrot.lane.b32.xlu0 %v689_v33, %s4767_s22 }
 0x19b   :  { %356 = vrot.lane.b32.xlu1 %v5019_v24, %s4769_s23  ;;  %726 = vrot.lane.b32.xlu0 %v689_v33, %s4768_s1 }
 0x19f   :  { %398 = vrot.lane.b32.xlu1 %v5019_v24, %s4770_s24  ;;  %746 = vrot.lane.b32.xlu0 %v689_v33, %s4769_s23 }
 0x1a3   :  { %440 = vrot.lane.b32.xlu1 %v5019_v24, %s4771_s25  ;;  %316 = vrot.lane.b32.xlu0 %v5021_v25, %s4767_s22 }
 0x1a7   :  { %517 = vrot.lane.b32.xlu1 %v485_v47, %s4773_s27  ;;  %358 = vrot.lane.b32.xlu0 %v5021_v25, %s4769_s23 }
 0x1ab   :  { %538 = vrot.lane.b32.xlu1 %v485_v47, %s4778_s12  ;;  %400 = vrot.lane.b32.xlu0 %v5021_v25, %s4770_s24 }
 0x1af   :  { %559 = vrot.lane.b32.xlu1 %v485_v47, %s4775_s29  ;;  %442 = vrot.lane.b32.xlu0 %v5021_v25, %s4771_s25 }
 0x1b3   :  { %580 = vrot.lane.b32.xlu1 %v485_v47, %s4780_s14  ;;  %519 = vrot.lane.b32.xlu0 %v486_v49, %s4773_s27 }
 0x1b7   :  { %601 = vrot.lane.b32.xlu1 %v485_v47, %s4777_s11  ;;  %540 = vrot.lane.b32.xlu0 %v486_v49, %s4778_s12 }
 0x1bb   :  { %622 = vrot.lane.b32.xlu1 %v485_v47, %s4779_s13  ;;  %561 = vrot.lane.b32.xlu0 %v486_v49, %s4775_s29 }
 0x1bf   :  { %643 = vrot.lane.b32.xlu1 %v485_v47, %s4781_s0  ;;  %582 = vrot.lane.b32.xlu0 %v486_v49, %s4780_s14 }
 0x1c3   :  { %337 = vrot.lane.b32.xlu1 %v5021_v25, %s4768_s1  ;;  %603 = vrot.lane.b32.xlu0 %v486_v49, %s4777_s11 }
 0x1c7   :  { %379 = vrot.lane.b32.xlu1 %v5021_v25, %s4772_s26  ;;  %624 = vrot.lane.b32.xlu0 %v486_v49, %s4779_s13 }
 0x1cb   :  { %421 = vrot.lane.b32.xlu1 %v5021_v25, %s4774_s28  ;;  %645 = vrot.lane.b32.xlu0 %v486_v49, %s4781_s0 }
 0x1cf   :  { %498 = vrot.lane.b32.xlu1 %v486_v49, %s4776_s30  ;;  %339 = vrot.lane.b32.xlu0 %v5043_v39, %s4768_s1 }
 0x1d3   :  { %708 = vrot.lane.b32.xlu1 %v5034_v34, %s4767_s22  ;;  %381 = vrot.lane.b32.xlu0 %v5043_v39, %s4772_s26 }
 0x1d5   :  { %v703_v51 = vpop.permute.xlu0 %702 }
 0x1d6   :  { %717 = vst.msk [vmem:[#allocation2 + $0x8] sm:$0xff] %vm327_vm3, %v703_v51 }
 0x1d7   :  { %318 = vrot.lane.b32.xlu1 %v5043_v39, %s4767_s22  ;;  %710 = vrot.lane.b32.xlu0 %v5051_v44, %s4767_s22 }
 0x1d9   :  { %v313_v52 = vpop.permute.xlu1 %312  ;;  %v723_v53 = vpop.permute.xlu0 %722 }
 0x1da   :  { %328 = vst.msk [vmem:[#allocation2] sm:$0xff] %vm327_vm3, %v313_v52 }
 0x1db   :  { %737 = vst.msk [vmem:[#allocation2 + $0x8] sm:$0xff] %vm348_vm4, %v723_v53  ;;  %360 = vrot.lane.b32.xlu1 %v5043_v39, %s4769_s23  ;;  %320 = vrot.lane.b32.xlu0 %v5053_v45, %s4767_s22 }
 0x1dd   :  { %v355_v54 = vpop.permute.xlu1 %354  ;;  %v743_v55 = vpop.permute.xlu0 %742 }
 0x1de   :  { %757 = vst.msk [vmem:[#allocation2 + $0x8] sm:$0xff] %vm369_vm5, %v743_v55 }
 0x1df   :  { %402 = vrot.lane.b32.xlu1 %v5043_v39, %s4770_s24  ;;  %362 = vrot.lane.b32.xlu0 %v5053_v45, %s4769_s23 }
 0x1e1   :  { %v397_v56 = vpop.permute.xlu1 %396  ;;  %v334_v57 = vpop.permute.xlu0 %333 }
 0x1e2   :  { %349 = vst.msk [vmem:[#allocation2] sm:$0xff] %vm348_vm4, %v334_v57 }
 0x1e3   :  { %370 = vst.msk [vmem:[#allocation2] sm:$0xff] %vm369_vm5, %v355_v54  ;;  %423 = vrot.lane.b32.xlu1 %v5043_v39, %s4774_s28  ;;  %730 = vrot.lane.b32.xlu0 %v5051_v44, %s4768_s1 }
 0x1e5   :  { %v439_v59 = vpop.permute.xlu1 %438  ;;  %v376_v60 = vpop.permute.xlu0 %375  ;;  %v773_v27 = vld [vmem:[#allocation2 + $0x8] sm:$0xff] }
 0x1e6   :  { %391 = vst.msk [vmem:[#allocation2] sm:$0xff] %vm390_vm6, %v376_v60 }
 0x1e7   :  { %444 = vrot.lane.b32.xlu1 %v5043_v39, %s4771_s25  ;;  %404 = vrot.lane.b32.xlu0 %v5053_v45, %s4770_s24  ;;  %412 = vst.msk [vmem:[#allocation2] sm:$0xff] %vm411_vm7, %v397_v56 }
 0x1e9   :  { %v516_v62 = vpop.permute.xlu1 %515  ;;  %v418_v63 = vpop.permute.xlu0 %417 }
 0x1ea   :  { %433 = vst.msk [vmem:[#allocation2] sm:$0xff] %vm432_vm8, %v418_v63 }
 0x1eb   :  { %500 = vrot.lane.b32.xlu1 %v5158_v61, %s4776_s30  ;;  %425 = vrot.lane.b32.xlu0 %v5053_v45, %s4774_s28  ;;  %454 = vst.msk [vmem:[#allocation2] sm:$0xff] %vm453_vm9, %v439_v59 }
 0x1ed   :  { %v558_v2 = vpop.permute.xlu1 %557  ;;  %v495_v3 = vpop.permute.xlu0 %494 }
 0x1ee   :  { %510 = vst.msk [vmem:[#allocation2] sm:$0xff] %vm509_vm10, %v495_v3 }
 0x1ef   :  { %521 = vrot.lane.b32.xlu1 %v5158_v61, %s4773_s27  ;;  %446 = vrot.lane.b32.xlu0 %v5053_v45, %s4771_s25  ;;  %531 = vst.msk [vmem:[#allocation2] sm:$0xff] %vm530_vm11, %v516_v62 }
 0x1f1   :  { %v600_v6 = vpop.permute.xlu1 %599  ;;  %v537_v7 = vpop.permute.xlu0 %536 }
 0x1f2   :  { %552 = vst.msk [vmem:[#allocation2] sm:$0xff] %vm551_vm12, %v537_v7 }
 0x1f3   :  { %542 = vrot.lane.b32.xlu1 %v5158_v61, %s4778_s12  ;;  %502 = vrot.lane.b32.xlu0 %v488_v5, %s4776_s30  ;;  %573 = vst.msk [vmem:[#allocation2] sm:$0xff] %vm572_vm13, %v558_v2 }
 0x1f5   :  { %v621_v8 = vpop.permute.xlu1 %620  ;;  %v579_v9 = vpop.permute.xlu0 %578 }
 0x1f6   :  { %594 = vst.msk [vmem:[#allocation2] sm:$0xff] %vm593_vm14, %v579_v9 }
 0x1f7   :  { %615 = vst.msk [vmem:[#allocation2] sm:$0xff] %vm614_vm15, %v600_v6  ;;  %563 = vrot.lane.b32.xlu1 %v5158_v61, %s4775_s29  ;;  %523 = vrot.lane.b32.xlu0 %v488_v5, %s4773_s27 }
 0x1f8   :  { %636 = vst.msk [vmem:[#allocation2] sm:$0xff] %vm635_vm0, %v621_v8 }
 0x1f9   :  { %v642_v10 = vpop.permute.xlu1 %641  ;;  %v336_v11 = vpop.permute.xlu0 %335 }
 0x1fa   :  { %657 = vst.msk [vmem:[#allocation2] sm:$0xff] %vm656_vm1, %v642_v10 }
 0x1fb   :  { %584 = vrot.lane.b32.xlu1 %v5158_v61, %s4780_s14  ;;  %544 = vrot.lane.b32.xlu0 %v488_v5, %s4778_s12 }
 0x1fd   :  { %v705_v12 = vpop.permute.xlu1 %704  ;;  %v378_v13 = vpop.permute.xlu0 %377 }
 0x1fe   :  { %718 = vst.msk [vmem:[#allocation2 + $0x18] sm:$0xff] %vm327_vm3, %v705_v12 }
 0x1ff   :  { %605 = vrot.lane.b32.xlu1 %v5158_v61, %s4777_s11  ;;  %565 = vrot.lane.b32.xlu0 %v488_v5, %s4775_s29 }
 0x201   :  { %v725_v14 = vpop.permute.xlu1 %724  ;;  %v420_v15 = vpop.permute.xlu0 %419  ;;  %v772_v26 = vld [vmem:[#allocation2] sm:$0xff] }
 0x202   :  { %738 = vst.msk [vmem:[#allocation2 + $0x18] sm:$0xff] %vm348_vm4, %v725_v14  ;;  %v5224_v30 = vpack.i.bf16 %v773_v27, %v772_v26 }
 0x203   :  { %626 = vrot.lane.b32.xlu1 %v5158_v61, %s4779_s13  ;;  %586 = vrot.lane.b32.xlu0 %v488_v5, %s4780_s14 }
 0x205   :  { %v745_v16 = vpop.permute.xlu1 %744  ;;  %v497_v17 = vpop.permute.xlu0 %496 }
 0x206   :  { %758 = vst.msk [vmem:[#allocation2 + $0x18] sm:$0xff] %vm369_vm5, %v745_v16 }
 0x207   :  { %341 = vrot.lane.b32.xlu1 %v5053_v45, %s4768_s1  ;;  %607 = vrot.lane.b32.xlu0 %v488_v5, %s4777_s11 }
 0x209   :  { %v315_v18 = vpop.permute.xlu1 %314  ;;  %v707_v19 = vpop.permute.xlu0 %706 }
 0x20a   :  { %329 = vst.msk [vmem:[#allocation2 + $0x10] sm:$0xff] %vm327_vm3, %v315_v18  ;;  %719 = vst.msk [vmem:[#allocation2 + $0x28] sm:$0xff] %vm327_vm3, %v707_v19 }
 0x20b   :  { %350 = vst.msk [vmem:[#allocation2 + $0x10] sm:$0xff] %vm348_vm4, %v336_v11  ;;  %383 = vrot.lane.b32.xlu1 %v5053_v45, %s4772_s26  ;;  %628 = vrot.lane.b32.xlu0 %v488_v5, %s4779_s13 }
 0x20d   :  { %v357_v20 = vpop.permute.xlu1 %356  ;;  %v727_v21 = vpop.permute.xlu0 %726  ;;  %v775_v48 = vld [vmem:[#allocation2 + $0x18] sm:$0xff] }
 0x20e   :  { %371 = vst.msk [vmem:[#allocation2 + $0x10] sm:$0xff] %vm369_vm5, %v357_v20 }
 0x20f   :  { %739 = vst.msk [vmem:[#allocation2 + $0x28] sm:$0xff] %vm348_vm4, %v727_v21  ;;  %728 = vrot.lane.b32.xlu1 %v5034_v34, %s4768_s1  ;;  %649 = vrot.lane.b32.xlu0 %v488_v5, %s4781_s0 }
 0x210   :  { %392 = vst.msk [vmem:[#allocation2 + $0x10] sm:$0xff] %vm390_vm6, %v378_v13 }
 0x211   :  { %v399_v22 = vpop.permute.xlu1 %398  ;;  %v747_v23 = vpop.permute.xlu0 %746 }
 0x212   :  { %413 = vst.msk [vmem:[#allocation2 + $0x10] sm:$0xff] %vm411_vm7, %v399_v22 }
 0x213   :  { %759 = vst.msk [vmem:[#allocation2 + $0x28] sm:$0xff] %vm369_vm5, %v747_v23  ;;  %647 = vrot.lane.b32.xlu1 %v5158_v61, %s4781_s0  ;;  %750 = vrot.lane.b32.xlu0 %v5051_v44, %s4769_s23 }
 0x214   :  { %434 = vst.msk [vmem:[#allocation2 + $0x10] sm:$0xff] %vm432_vm8, %v420_v15 }
 0x215   :  { %v441_v24 = vpop.permute.xlu1 %440  ;;  %v317_v25 = vpop.permute.xlu0 %316 }
 0x216   :  { %455 = vst.msk [vmem:[#allocation2 + $0x10] sm:$0xff] %vm453_vm9, %v441_v24 }
 0x217   :  { %330 = vst.msk [vmem:[#allocation2 + $0x20] sm:$0xff] %vm327_vm3, %v317_v25  ;;  %748 = vrot.lane.b32.xlu1 %v5034_v34, %s4769_s23 }
 0x218   :  { %511 = vst.msk [vmem:[#allocation2 + $0x10] sm:$0xff] %vm509_vm10, %v497_v17 }
 0x219   :  { %v518_v28 = vpop.permute.xlu1 %517  ;;  %v359_v29 = vpop.permute.xlu0 %358 }
 0x21a   :  { %532 = vst.msk [vmem:[#allocation2 + $0x10] sm:$0xff] %vm530_vm11, %v518_v28  ;;  %v777_v62 = vld [vmem:[#allocation2 + $0x28] sm:$0xff] }
 0x21b   :  { %4668 = vrot.lane.b32.xlu1 %v5224_v30, %s4767_s22 }
 0x21d   :  { %v539_v31 = vpop.permute.xlu1 %538  ;;  %v401_v32 = vpop.permute.xlu0 %400 }
 0x21e   :  { %553 = vst.msk [vmem:[#allocation2 + $0x10] sm:$0xff] %vm551_vm12, %v539_v31 }
 0x221   :  { %v560_v33 = vpop.permute.xlu1 %559  ;;  %v443_v35 = vpop.permute.xlu0 %442 }
 0x222   :  { %574 = vst.msk [vmem:[#allocation2 + $0x10] sm:$0xff] %vm572_vm13, %v560_v33 }
 0x225   :  { %v581_v36 = vpop.permute.xlu1 %580  ;;  %v520_v34 = vpop.permute.xlu0 %519 }
 0x226   :  { %595 = vst.msk [vmem:[#allocation2 + $0x10] sm:$0xff] %vm593_vm14, %v581_v36 }
 0x229   :  { %v602_v37 = vpop.permute.xlu1 %601  ;;  %v541_v38 = vpop.permute.xlu0 %540 }
 0x22a   :  { %616 = vst.msk [vmem:[#allocation2 + $0x10] sm:$0xff] %vm614_vm15, %v602_v37 }
 0x22d   :  { %v623_v39 = vpop.permute.xlu1 %622  ;;  %v562_v40 = vpop.permute.xlu0 %561 }
 0x22e   :  { %637 = vst.msk [vmem:[#allocation2 + $0x10] sm:$0xff] %vm635_vm0, %v623_v39 }
 0x231   :  { %v644_v41 = vpop.permute.xlu1 %643  ;;  %v583_v42 = vpop.permute.xlu0 %582 }
 0x232   :  { %658 = vst.msk [vmem:[#allocation2 + $0x10] sm:$0xff] %vm656_vm1, %v644_v41 }
 0x235   :  { %v338_v43 = vpop.permute.xlu1 %337  ;;  %v604_v44 = vpop.permute.xlu0 %603 }
 0x236   :  { %351 = vst.msk [vmem:[#allocation2 + $0x20] sm:$0xff] %vm348_vm4, %v338_v43 }
 0x237   :  { %372 = vst.msk [vmem:[#allocation2 + $0x20] sm:$0xff] %vm369_vm5, %v359_v29 }
 0x239   :  { %v380_v45 = vpop.permute.xlu1 %379  ;;  %v625_v46 = vpop.permute.xlu0 %624  ;;  %v774_v47 = vld [vmem:[#allocation2 + $0x10] sm:$0xff] }
 0x23a   :  { %393 = vst.msk [vmem:[#allocation2 + $0x20] sm:$0xff] %vm390_vm6, %v380_v45  ;;  %v5238_v49 = vpack.i.bf16 %v775_v48, %v774_v47  ;;  %v4453_v50 = vpack.c.bf16 %v774_v47, %v772_v26 }
 0x23b   :  { %414 = vst.msk [vmem:[#allocation2 + $0x20] sm:$0xff] %vm411_vm7, %v401_v32 }
 0x23c   :  { %4673 = vrot.lane.b32.xlu0 %v5238_v49, %s4767_s22  ;;  %4454 = vmatpush1.bf16.msra.mxu0 %v4453_v50 }
 0x23d   :  { %v422_v51 = vpop.permute.xlu1 %421  ;;  %v646_v52 = vpop.permute.xlu0 %645  ;;  %4455 = vmatprep.subr.bf16.mxu0 %v4764_v0 }
 0x23e   :  { %435 = vst.msk [vmem:[#allocation2 + $0x20] sm:$0xff] %vm432_vm8, %v422_v51 }
 0x23f   :  { %456 = vst.msk [vmem:[#allocation2 + $0x20] sm:$0xff] %vm453_vm9, %v443_v35 }
 0x241   :  { %v499_v53 = vpop.permute.xlu1 %498  ;;  %v340_v54 = vpop.permute.xlu0 %339 }
 0x242   :  { %512 = vst.msk [vmem:[#allocation2 + $0x20] sm:$0xff] %vm509_vm10, %v499_v53 }
 0x243   :  { %533 = vst.msk [vmem:[#allocation2 + $0x20] sm:$0xff] %vm530_vm11, %v520_v34 }
 0x244   :  { %554 = vst.msk [vmem:[#allocation2 + $0x20] sm:$0xff] %vm551_vm12, %v541_v38 }
 0x245   :  { %575 = vst.msk [vmem:[#allocation2 + $0x20] sm:$0xff] %vm572_vm13, %v562_v40  ;;  %v709_v55 = vpop.permute.xlu1 %708  ;;  %v382_v56 = vpop.permute.xlu0 %381 }
 0x246   :  { %596 = vst.msk [vmem:[#allocation2 + $0x20] sm:$0xff] %vm593_vm14, %v583_v42 }
 0x247   :  { %720 = vst.msk [vmem:[#allocation2 + $0x38] sm:$0xff] %vm327_vm3, %v709_v55 }
 0x248   :  { %617 = vst.msk [vmem:[#allocation2 + $0x20] sm:$0xff] %vm614_vm15, %v604_v44  ;;  %v997_v44 = vld [vmem:[%s7054_s2 + $0x8] sm:$0xff] }
 0x249   :  { %638 = vst.msk [vmem:[#allocation2 + $0x20] sm:$0xff] %vm635_vm0, %v625_v46  ;;  %v319_v57 = vpop.permute.xlu1 %318  ;;  %v711_v58 = vpop.permute.xlu0 %710 }
 0x24a   :  { %659 = vst.msk [vmem:[#allocation2 + $0x20] sm:$0xff] %vm656_vm1, %v646_v52 }
 0x24b   :  { %331 = vst.msk [vmem:[#allocation2 + $0x30] sm:$0xff] %vm327_vm3, %v319_v57  ;;  %721 = vst.msk [vmem:[#allocation2 + $0x48] sm:$0xff] %vm327_vm3, %v711_v58 }
 0x24c   :  { %352 = vst.msk [vmem:[#allocation2 + $0x30] sm:$0xff] %vm348_vm4, %v340_v54 }
 0x24d   :  { %v361_v59 = vpop.permute.xlu1 %360  ;;  %v321_v60 = vpop.permute.xlu0 %320 }
 0x24e   :  { %373 = vst.msk [vmem:[#allocation2 + $0x30] sm:$0xff] %vm369_vm5, %v361_v59 }
 0x24f   :  { %332 = vst.msk [vmem:[#allocation2 + $0x40] sm:$0xff] %vm327_vm3, %v321_v60 }
 0x250   :  { %394 = vst.msk [vmem:[#allocation2 + $0x30] sm:$0xff] %vm390_vm6, %v382_v56 }
 0x251   :  { %v5261_v61 = vld [vmem:[#allocation2 + $0x20] sm:$0xff]  ;;  %v403_v63 = vpop.permute.xlu1 %402  ;;  %v363_v1 = vpop.permute.xlu0 %362 }
 0x252   :  { %v5264_v2 = vpack.i.bf16 %v777_v62, %v5261_v61  ;;  %415 = vst.msk [vmem:[#allocation2 + $0x30] sm:$0xff] %vm411_vm7, %v403_v63 }
 0x254   :  { %4678 = vrot.lane.b32.xlu1 %v5264_v2, %s4767_s22 }
 0x255   :  { %v424_v3 = vpop.permute.xlu1 %423  ;;  %v731_v5 = vpop.permute.xlu0 %730 }
 0x256   :  { %436 = vst.msk [vmem:[#allocation2 + $0x30] sm:$0xff] %vm432_vm8, %v424_v3 }
 0x257   :  { %741 = vst.msk [vmem:[#allocation2 + $0x48] sm:$0xff] %vm348_vm4, %v731_v5 }
 0x259   :  { %v445_v6 = vpop.permute.xlu1 %444  ;;  %v405_v7 = vpop.permute.xlu0 %404 }
 0x25a   :  { %457 = vst.msk [vmem:[#allocation2 + $0x30] sm:$0xff] %vm453_vm9, %v445_v6 }
 0x25d   :  { %v501_v8 = vpop.permute.xlu1 %500  ;;  %v426_v9 = vpop.permute.xlu0 %425 }
 0x25e   :  { %513 = vst.msk [vmem:[#allocation2 + $0x30] sm:$0xff] %vm509_vm10, %v501_v8 }
 0x261   :  { %v522_v10 = vpop.permute.xlu1 %521  ;;  %v447_v11 = vpop.permute.xlu0 %446 }
 0x262   :  { %534 = vst.msk [vmem:[#allocation2 + $0x30] sm:$0xff] %vm530_vm11, %v522_v10 }
 0x265   :  { %v543_v12 = vpop.permute.xlu1 %542  ;;  %v503_v13 = vpop.permute.xlu0 %502 }
 0x266   :  { %555 = vst.msk [vmem:[#allocation2 + $0x30] sm:$0xff] %vm551_vm12, %v543_v12 }
 0x269   :  { %v564_v14 = vpop.permute.xlu1 %563  ;;  %v524_v15 = vpop.permute.xlu0 %523 }
 0x26a   :  { %576 = vst.msk [vmem:[#allocation2 + $0x30] sm:$0xff] %vm572_vm13, %v564_v14 }
 0x26d   :  { %v585_v16 = vpop.permute.xlu1 %584  ;;  %v545_v17 = vpop.permute.xlu0 %544 }
 0x26e   :  { %597 = vst.msk [vmem:[#allocation2 + $0x30] sm:$0xff] %vm593_vm14, %v585_v16 }
 0x271   :  { %v606_v18 = vpop.permute.xlu1 %605  ;;  %v566_v19 = vpop.permute.xlu0 %565 }
 0x272   :  { %618 = vst.msk [vmem:[#allocation2 + $0x30] sm:$0xff] %vm614_vm15, %v606_v18 }
 0x275   :  { %v627_v20 = vpop.permute.xlu1 %626  ;;  %v587_v21 = vpop.permute.xlu0 %586 }
 0x276   :  { %639 = vst.msk [vmem:[#allocation2 + $0x30] sm:$0xff] %vm635_vm0, %v627_v20 }
 0x279   :  { %v342_v22 = vpop.permute.xlu1 %341  ;;  %v608_v23 = vpop.permute.xlu0 %607 }
 0x27a   :  { %353 = vst.msk [vmem:[#allocation2 + $0x40] sm:$0xff] %vm348_vm4, %v342_v22 }
 0x27b   :  { %374 = vst.msk [vmem:[#allocation2 + $0x40] sm:$0xff] %vm369_vm5, %v363_v1 }
 0x27d   :  { %v384_v24 = vpop.permute.xlu1 %383  ;;  %v629_v25 = vpop.permute.xlu0 %628 }
 0x27e   :  { %395 = vst.msk [vmem:[#allocation2 + $0x40] sm:$0xff] %vm390_vm6, %v384_v24 }
 0x27f   :  { %416 = vst.msk [vmem:[#allocation2 + $0x40] sm:$0xff] %vm411_vm7, %v405_v7 }
 0x280   :  { %437 = vst.msk [vmem:[#allocation2 + $0x40] sm:$0xff] %vm432_vm8, %v426_v9 }
 0x281   :  { %458 = vst.msk [vmem:[#allocation2 + $0x40] sm:$0xff] %vm453_vm9, %v447_v11  ;;  %v729_v26 = vpop.permute.xlu1 %728  ;;  %v650_v27 = vpop.permute.xlu0 %649 }
 0x282   :  { %514 = vst.msk [vmem:[#allocation2 + $0x40] sm:$0xff] %vm509_vm10, %v503_v13  ;;  %vm812_vm10 = vcmask 982016  }
 0x283   :  { %740 = vst.msk [vmem:[#allocation2 + $0x38] sm:$0xff] %vm348_vm4, %v729_v26 }
 0x284   :  { %535 = vst.msk [vmem:[#allocation2 + $0x40] sm:$0xff] %vm530_vm11, %v524_v15  ;;  %vm1101_vm11 = vcmask 588800  }
 0x285   :  { %556 = vst.msk [vmem:[#allocation2 + $0x40] sm:$0xff] %vm551_vm12, %v545_v17  ;;  %v648_v28 = vpop.permute.xlu1 %647  ;;  %v751_v29 = vpop.permute.xlu0 %750  ;;  %3993 = vmatprep.mubr.msk.f32.mxu0 %vm1101_vm11, %v997_v44  ;;  %vm868_vm12 = vcmask 916480  }
 0x286   :  { %577 = vst.msk [vmem:[#allocation2 + $0x40] sm:$0xff] %vm572_vm13, %v566_v19  ;;  %vm924_vm13 = vcmask 850944  }
 0x287   :  { %598 = vst.msk [vmem:[#allocation2 + $0x40] sm:$0xff] %vm593_vm14, %v587_v21  ;;  %vm980_vm14 = vcmask 785408  }
 0x288   :  { %660 = vst.msk [vmem:[#allocation2 + $0x30] sm:$0xff] %vm656_vm1, %v648_v28 }
 0x289   :  { %761 = vst.msk [vmem:[#allocation2 + $0x48] sm:$0xff] %vm369_vm5, %v751_v29  ;;  %v749_v31 = vpop.permute.xlu1 %748 }
 0x28a   :  { %619 = vst.msk [vmem:[#allocation2 + $0x40] sm:$0xff] %vm614_vm15, %v608_v23  ;;  %vm2387_vm15 = vcmask 261120  }
 0x28b   :  { %640 = vst.msk [vmem:[#allocation2 + $0x40] sm:$0xff] %vm635_vm0, %v629_v25 }
 0x28c   :  { %661 = vst.msk [vmem:[#allocation2 + $0x40] sm:$0xff] %vm656_vm1, %v650_v27 }
 0x28d   :  { %760 = vst.msk [vmem:[#allocation2 + $0x38] sm:$0xff] %vm369_vm5, %v749_v31  ;;  %v4669_v32 = vpop.permute.xlu1 %4668 }
 0x28e   :  { %v4671_v35 = vunpack.i.h.bf16 %v4669_v32  ;;  %v4670_v36 = vunpack.i.l.bf16 %v4669_v32 }
 0x28f   :  { %v765_v33 = vld [vmem:[#allocation2 + $0x30] sm:$0xff] }
 0x290   :  { %v4456_v34 = vpack.c.bf16 %v765_v33, %v5261_v61  ;;  %v813_v37 = vsel %vm812_vm10, %v4670_v36, %v4671_v35  ;;  %v781_v39 = vld [vmem:[#allocation2 + $0x48] sm:$0xff] }
 0x292   :  { %4457 = vmatpush1.bf16.msra.mxu0 %v4456_v34 }
 0x293   :  { %v780_v38 = vld [vmem:[#allocation2 + $0x40] sm:$0xff]  ;;  %4458 = vmatprep.subr.bf16.mxu0 %v4764_v0 }
 0x294   :  { %v4692_v40 = vpack.i.bf16 %v781_v39, %v780_v38  ;;  %v779_v41 = vld [vmem:[#allocation2 + $0x38] sm:$0xff]  ;;  %v4459_v42 = vpack.c.bf16 %v813_v37, %v780_v38 }
 0x295   :  { %v4682_v43 = vpack.i.bf16 %v779_v41, %v765_v33 }
 0x296   :  { %4693 = vrot.lane.b32.xlu1 %v4692_v40, %s4767_s22  ;;  %4460 = vmatpush1.bf16.msra.mxu0 %v4459_v42 }
 0x297   :  { %4683 = vrot.lane.b32.xlu0 %v4682_v43, %s4767_s22  ;;  %4461 = vmatprep.subr.bf16.mxu0 %v4764_v0 }
 0x29a   :  { %4698 = vrot.lane.b32.xlu1 %v5238_v49, %s4768_s1 }
 0x29b   :  { %4688 = vrot.lane.b32.xlu0 %v5224_v30, %s4768_s1 }
 0x29e   :  { %4708 = vrot.lane.b32.xlu1 %v4682_v43, %s4768_s1 }
 0x29f   :  { %4703 = vrot.lane.b32.xlu0 %v5264_v2, %s4768_s1 }
 0x2a2   :  { %4713 = vrot.lane.b32.xlu1 %v5224_v30, %s4769_s23 }
 0x2a3   :  { %4718 = vrot.lane.b32.xlu0 %v4692_v40, %s4768_s1 }
 0x2a6   :  { %4728 = vrot.lane.b32.xlu1 %v5264_v2, %s4769_s23 }
 0x2a7   :  { %4723 = vrot.lane.b32.xlu0 %v5238_v49, %s4769_s23 }
 0x2aa   :  { %4743 = vrot.lane.b32.xlu1 %v4692_v40, %s4769_s23 }
 0x2ab   :  { %4733 = vrot.lane.b32.xlu0 %v4682_v43, %s4769_s23 }
 0x2ae   :  { %4748 = vrot.lane.b32.xlu1 %v5238_v49, %s4772_s26  ;;  %v4674_v45 = vpop.permute.xlu0 %4673 }
 0x2af   :  { %4738 = vrot.lane.b32.xlu0 %v5224_v30, %s4772_s26  ;;  %v4676_v46 = vunpack.i.h.bf16 %v4674_v45  ;;  %v4675_v47 = vunpack.i.l.bf16 %v4674_v45 }
 0x2b1   :  { %v814_v51 = vsel %vm812_vm10, %v4675_v47, %v4676_v46 }
 0x2b2   :  { %4758 = vrot.lane.b32.xlu1 %v4682_v43, %s4772_s26 }
 0x2b3   :  { %4753 = vrot.lane.b32.xlu0 %v5264_v2, %s4772_s26 }
 0x2b6   :  { %978 = vrot.lane.b32.xlu1 %v781_v39, %s4772_s26 }
 0x2b7   :  { %976 = vrot.lane.b32.xlu0 %v780_v38, %s4772_s26 }
 0x2c6   :  { %v4679_v48 = vpop.permute.xlu1 %4678 }
 0x2c7   :  { %v4681_v49 = vunpack.i.h.bf16 %v4679_v48  ;;  %v4680_v50 = vunpack.i.l.bf16 %v4679_v48 }
 0x2c9   :  { %v815_v30 = vsel %vm812_vm10, %v4680_v50, %v4681_v49 }
 0x2ca   :  { %v4462_v52 = vpack.c.bf16 %v815_v30, %v814_v51 }
 0x2cc   :  { %4463 = vmatpush1.bf16.msra.mxu0 %v4462_v52 }
 0x2cd   :  { %4464 = vmatprep.subr.bf16.mxu0 %v4764_v0 }
 0x308   :  { %v4694_v53 = vpop.permute.xlu1 %4693 }
 0x309   :  { %v4696_v54 = vunpack.i.h.bf16 %v4694_v53  ;;  %v4695_v55 = vunpack.i.l.bf16 %v4694_v53  ;;  %v4684_v56 = vpop.permute.xlu0 %4683 }
 0x30a   :  { %v4686_v57 = vunpack.i.h.bf16 %v4684_v56  ;;  %v4685_v58 = vunpack.i.l.bf16 %v4684_v56 }
 0x30b   :  { %v817_v59 = vsel %vm812_vm10, %v4695_v55, %v4696_v54 }
 0x30c   :  { %v816_v60 = vsel %vm812_vm10, %v4685_v58, %v4686_v57  ;;  %v4699_v61 = vpop.permute.xlu1 %4698 }
 0x30d   :  { %v4701_v62 = vunpack.i.h.bf16 %v4699_v61  ;;  %v4700_v63 = vunpack.i.l.bf16 %v4699_v61  ;;  %v4689_v1 = vpop.permute.xlu0 %4688  ;;  %v4465_v2 = vpack.c.bf16 %v817_v59, %v816_v60 }
 0x30e   :  { %v4691_v3 = vunpack.i.h.bf16 %v4689_v1  ;;  %v4690_v5 = vunpack.i.l.bf16 %v4689_v1 }
 0x30f   :  { %v870_v6 = vsel %vm868_vm12, %v4700_v63, %v4701_v62  ;;  %4466 = vmatpush1.bf16.msra.mxu0 %v4465_v2  ;;  %v996_v2 = vld [vmem:[%s7054_s2] sm:$0xff] }
 0x310   :  { %v869_v7 = vsel %vm868_vm12, %v4690_v5, %v4691_v3  ;;  %v4709_v8 = vpop.permute.xlu1 %4708  ;;  %4467 = vmatprep.subr.bf16.mxu0 %v4764_v0  ;;  %v999_v5 = vld [vmem:[%s7054_s2 + $0x18] sm:$0xff] }
 0x311   :  { %v4711_v9 = vunpack.i.h.bf16 %v4709_v8  ;;  %v4710_v10 = vunpack.i.l.bf16 %v4709_v8  ;;  %v4704_v11 = vpop.permute.xlu0 %4703  ;;  %v4468_v12 = vpack.c.bf16 %v870_v6, %v869_v7  ;;  %v1000_v6 = vld [vmem:[%s7054_s2 + $0x20] sm:$0xff]  ;;  %v1003_v7 = vld [vmem:[%s7054_s2 + $0x38] sm:$0xff]  ;;  %v1002_v8 = vld [vmem:[%s7054_s2 + $0x30] sm:$0xff] }
 0x312   :  { %v4706_v13 = vunpack.i.h.bf16 %v4704_v11  ;;  %v4705_v14 = vunpack.i.l.bf16 %v4704_v11  ;;  %v1007_v11 = vld [vmem:[%s7054_s2 + $0x58] sm:$0xff] }
 0x313   :  { %v872_v15 = vsel %vm868_vm12, %v4710_v10, %v4711_v9  ;;  %4469 = vmatpush1.bf16.msra.mxu0 %v4468_v12  ;;  %v1005_v9 = vld [vmem:[%s7054_s2 + $0x48] sm:$0xff]  ;;  %v1004_v10 = vld [vmem:[%s7054_s2 + $0x40] sm:$0xff]  ;;  %v1006_v12 = vld [vmem:[%s7054_s2 + $0x50] sm:$0xff] }
 0x314   :  { %v871_v16 = vsel %vm868_vm12, %v4705_v14, %v4706_v13  ;;  %v4714_v17 = vpop.permute.xlu1 %4713  ;;  %4470 = vmatprep.subr.bf16.mxu0 %v4764_v0  ;;  %v1009_v13 = vld [vmem:[%s7054_s2 + $0x68] sm:$0xff]  ;;  %v1008_v14 = vld [vmem:[%s7054_s2 + $0x60] sm:$0xff] }
 0x315   :  { %v4716_v18 = vunpack.i.h.bf16 %v4714_v17  ;;  %v4715_v19 = vunpack.i.l.bf16 %v4714_v17  ;;  %v4719_v20 = vpop.permute.xlu0 %4718  ;;  %v4471_v21 = vpack.c.bf16 %v872_v15, %v871_v16  ;;  %v1011_v15 = vld [vmem:[%s7054_s2 + $0x78] sm:$0xff]  ;;  %v1010_v16 = vld [vmem:[%s7054_s2 + $0x70] sm:$0xff]  ;;  %v1013_v17 = vld [vmem:[%s7054_s2 + $0x88] sm:$0xff] }
 0x316   :  { %v4721_v22 = vunpack.i.h.bf16 %v4719_v20  ;;  %v4720_v23 = vunpack.i.l.bf16 %v4719_v20  ;;  %v2227_v20 = vld [vmem:[%s7055_s3] sm:$0xff] }
 0x317   :  { %v925_v24 = vsel %vm924_vm13, %v4715_v19, %v4716_v18  ;;  %4472 = vmatpush1.bf16.msra.mxu0 %v4471_v21  ;;  %v1012_v18 = vld [vmem:[%s7054_s2 + $0x80] sm:$0xff]  ;;  %v4782_v19 = vmov 0   ;;  %v2228_v21 = vld [vmem:[%s7055_s3 + $0x8] sm:$0xff] }
 0x318   :  { %v873_v25 = vsel %vm868_vm12, %v4720_v23, %v4721_v22  ;;  %v4729_v26 = vpop.permute.xlu1 %4728  ;;  %4473 = vmatprep.subr.bf16.mxu0 %v4764_v0  ;;  %4763 = vset.pattern.permute.xlu1 %v4782_v19  ;;  %v1015_v22 = vld [vmem:[%s7054_s2 + $0x98] sm:$0xff]  ;;  %v1014_v23 = vld [vmem:[%s7054_s2 + $0x90] sm:$0xff] }
 0x319   :  { %v4731_v27 = vunpack.i.h.bf16 %v4729_v26  ;;  %v4730_v28 = vunpack.i.l.bf16 %v4729_v26  ;;  %v4724_v29 = vpop.permute.xlu0 %4723  ;;  %v4474_v31 = vpack.c.bf16 %v925_v24, %v873_v25  ;;  %4762 = vset.pattern.permute.xlu0 %v4782_v19  ;;  %2254 = vperm.xlu1 %4763, %v2228_v21   ;;  %v1017_v24 = vld [vmem:[%s7054_s2 + $0xa8] sm:$0xff]  ;;  %v1016_v25 = vld [vmem:[%s7054_s2 + $0xa0] sm:$0xff]  ;;  %v1019_v26 = vld [vmem:[%s7054_s2 + $0xb8] sm:$0xff] }
 0x31a   :  { %v4726_v32 = vunpack.i.h.bf16 %v4724_v29  ;;  %v4725_v33 = vunpack.i.l.bf16 %v4724_v29  ;;  %2249 = vperm.xlu0 %4762, %v2227_v20   ;;  %v1020_v29 = vld [vmem:[%s7054_s2 + $0xc0] sm:$0xff]  ;;  %v1059_v20 = vld [vmem:[%s7054_s2 + $0x1f8] sm:$0xff]  ;;  %v1058_v21 = vld [vmem:[%s7054_s2 + $0x1f0] sm:$0xff] }
 0x31b   :  { %v927_v35 = vsel %vm924_vm13, %v4730_v28, %v4731_v27  ;;  %4475 = vmatpush1.bf16.msra.mxu0 %v4474_v31  ;;  %v1018_v27 = vld [vmem:[%s7054_s2 + $0xb0] sm:$0xff]  ;;  %v1021_v28 = vld [vmem:[%s7054_s2 + $0xc8] sm:$0xff]  ;;  %v1023_v31 = vld [vmem:[%s7054_s2 + $0xd8] sm:$0xff] }
 0x31c   :  { %v926_v36 = vsel %vm924_vm13, %v4725_v33, %v4726_v32  ;;  %v4744_v34 = vpop.permute.xlu1 %4743  ;;  %4476 = vmatprep.subr.bf16.mxu0 %v4764_v0  ;;  %v1022_v32 = vld [vmem:[%s7054_s2 + $0xd0] sm:$0xff]  ;;  %v1025_v33 = vld [vmem:[%s7054_s2 + $0xe8] sm:$0xff]  ;;  %v1056_v19 = vld [vmem:[%s7054_s2 + $0x1e0] sm:$0xff] }
 0x31d   :  { %v4746_v37 = vunpack.i.h.bf16 %v4744_v34  ;;  %v4745_v38 = vunpack.i.l.bf16 %v4744_v34  ;;  %v4734_v39 = vpop.permute.xlu0 %4733  ;;  %v4477_v40 = vpack.c.bf16 %v927_v35, %v926_v36  ;;  %v1024_v35 = vld [vmem:[%s7054_s2 + $0xe0] sm:$0xff]  ;;  %v1027_v36 = vld [vmem:[%s7054_s2 + $0xf8] sm:$0xff]  ;;  %v1026_v34 = vld [vmem:[%s7054_s2 + $0xf0] sm:$0xff] }
 0x31e   :  { %v4736_v41 = vunpack.i.h.bf16 %v4734_v39  ;;  %v4735_v42 = vunpack.i.l.bf16 %v4734_v39  ;;  %v1031_v39 = vld [vmem:[%s7054_s2 + $0x118] sm:$0xff] }
 0x31f   :  { %v929_v43 = vsel %vm924_vm13, %v4745_v38, %v4746_v37  ;;  %4478 = vmatpush1.bf16.msra.mxu0 %v4477_v40  ;;  %v1029_v37 = vld [vmem:[%s7054_s2 + $0x108] sm:$0xff]  ;;  %v1028_v38 = vld [vmem:[%s7054_s2 + $0x100] sm:$0xff]  ;;  %v1030_v40 = vld [vmem:[%s7054_s2 + $0x110] sm:$0xff] }
 0x320   :  { %v928_v44 = vsel %vm924_vm13, %v4735_v42, %v4736_v41  ;;  %v4749_v45 = vpop.permute.xlu1 %4748  ;;  %4479 = vmatprep.subr.bf16.mxu0 %v4764_v0  ;;  %v1033_v41 = vld [vmem:[%s7054_s2 + $0x128] sm:$0xff]  ;;  %v1032_v42 = vld [vmem:[%s7054_s2 + $0x120] sm:$0xff] }
 0x321   :  { %v4751_v46 = vunpack.i.h.bf16 %v4749_v45  ;;  %v4750_v47 = vunpack.i.l.bf16 %v4749_v45  ;;  %v4739_v48 = vpop.permute.xlu0 %4738  ;;  %v4480_v49 = vpack.c.bf16 %v929_v43, %v928_v44  ;;  %v1035_v43 = vld [vmem:[%s7054_s2 + $0x138] sm:$0xff]  ;;  %v1034_v44 = vld [vmem:[%s7054_s2 + $0x130] sm:$0xff]  ;;  %v1037_v45 = vld [vmem:[%s7054_s2 + $0x148] sm:$0xff] }
 0x322   :  { %v4741_v50 = vunpack.i.h.bf16 %v4739_v48  ;;  %v4740_v51 = vunpack.i.l.bf16 %v4739_v48  ;;  %v1038_v48 = vld [vmem:[%s7054_s2 + $0x150] sm:$0xff] }
 0x323   :  { %v982_v30 = vsel %vm980_vm14, %v4750_v47, %v4751_v46  ;;  %4481 = vmatpush1.bf16.msra.mxu0 %v4480_v49  ;;  %v1036_v46 = vld [vmem:[%s7054_s2 + $0x140] sm:$0xff]  ;;  %v1039_v47 = vld [vmem:[%s7054_s2 + $0x158] sm:$0xff]  ;;  %v1041_v49 = vld [vmem:[%s7054_s2 + $0x168] sm:$0xff] }
 0x324   :  { %v981_v52 = vsel %vm980_vm14, %v4740_v51, %v4741_v50  ;;  %v4759_v53 = vpop.permute.xlu1 %4758  ;;  %4482 = vmatprep.subr.bf16.mxu0 %v4764_v0  ;;  %v2230_v50 = vld [vmem:[%s7055_s3 + $0x18] sm:$0xff]  ;;  %v2229_v51 = vld [vmem:[%s7055_s3 + $0x10] sm:$0xff] }
 0x325   :  { %v4761_v54 = vunpack.i.h.bf16 %v4759_v53  ;;  %v4760_v55 = vunpack.i.l.bf16 %v4759_v53  ;;  %v4754_v56 = vpop.permute.xlu0 %4753  ;;  %v4483_v57 = vpack.c.bf16 %v982_v30, %v981_v52  ;;  %v1040_v30 = vld [vmem:[%s7054_s2 + $0x160] sm:$0xff]  ;;  %2264 = vperm.xlu0 %4762, %v2230_v50   ;;  %v1043_v52 = vld [vmem:[%s7054_s2 + $0x178] sm:$0xff]  ;;  %2259 = vperm.xlu1 %4763, %v2229_v51   ;;  %v2232_v53 = vld [vmem:[%s7055_s3 + $0x28] sm:$0xff] }
 0x326   :  { %v4756_v58 = vunpack.i.h.bf16 %v4754_v56  ;;  %v4755_v59 = vunpack.i.l.bf16 %v4754_v56  ;;  %v1045_v56 = vld [vmem:[%s7054_s2 + $0x188] sm:$0xff] }
 0x327   :  { %v984_v60 = vsel %vm980_vm14, %v4760_v55, %v4761_v54  ;;  %4484 = vmatpush1.bf16.msra.mxu0 %v4483_v57  ;;  %v2231_v54 = vld [vmem:[%s7055_s3 + $0x20] sm:$0xff]  ;;  %v1042_v55 = vld [vmem:[%s7054_s2 + $0x170] sm:$0xff]  ;;  %v2234_v57 = vld [vmem:[%s7055_s3 + $0x38] sm:$0xff] }
 0x328   :  { %v983_v61 = vsel %vm980_vm14, %v4755_v59, %v4756_v58  ;;  %4485 = vmatprep.subr.bf16.mxu0 %v4764_v0  ;;  %v979_v63 = vpop.permute.xlu1 %978  ;;  %v998_v0 = vld [vmem:[%s7054_s2 + $0x10] sm:$0xff]  ;;  %v1044_v59 = vld [vmem:[%s7054_s2 + $0x180] sm:$0xff] }
 0x329   :  { %v4486_v62 = vpack.c.bf16 %v984_v60, %v983_v61  ;;  %v977_v1 = vpop.permute.xlu0 %976  ;;  %2274 = vperm.xlu0 %4762, %v2232_v53   ;;  %2269 = vperm.xlu1 %4763, %v2231_v54   ;;  %v2233_v58 = vld [vmem:[%s7055_s3 + $0x30] sm:$0xff]  ;;  %v1047_v60 = vld [vmem:[%s7054_s2 + $0x198] sm:$0xff]  ;;  %v2236_v61 = vld [vmem:[%s7055_s3 + $0x48] sm:$0xff] }
 0x32a   :  { %v985_v3 = vsel %vm980_vm14, %v977_v1, %v979_v63  ;;  %v1046_v63 = vld [vmem:[%s7054_s2 + $0x190] sm:$0xff]  ;;  %v1049_v1 = vld [vmem:[%s7054_s2 + $0x1a8] sm:$0xff] }
 0x32b   :  { %4487 = vmatpush1.bf16.msra.mxu0 %v4486_v62  ;;  %v2235_v62 = vld [vmem:[%s7055_s3 + $0x40] sm:$0xff] }
 0x32c   :  { %1270 = vmatprep.subr.mxu0 %v4766_v4  ;;  %v1001_v4 = vld [vmem:[%s7054_s2 + $0x28] sm:$0xff] }
 0x32d   :  { %2284 = vperm.xlu0 %4762, %v2234_v57   ;;  %2279 = vperm.xlu1 %4763, %v2233_v58  }
 0x32f   :  { %1271 = vmatpush1.msra.mxu0 %v985_v3  ;;  %v2237_v3 = vld [vmem:[%s7055_s3 + $0x50] sm:$0xff] }
 0x330   :  { %1287 = vmatmul.mubr.f32.vlgmr.msra.gmra.mrb[10].mxu0 %v996_v2  ;;  %v2238_v2 = vld [vmem:[%s7055_s3 + $0x58] sm:$0xff] }
 0x331   :  { %3994 = vmatprep.mubr.msk.f32.mxu0 %vm1101_vm11, %v999_v5  ;;  %2294 = vperm.xlu0 %4762, %v2236_v61   ;;  %v1048_v5 = vld [vmem:[%s7054_s2 + $0x1a0] sm:$0xff] }
 0x332   :  { %2289 = vperm.xlu1 %4763, %v2235_v62  }
 0x334   :  { %1292 = vmatmul.mubr.f32.gmra.mrb[12].mxu0 %v998_v0  ;;  %v1051_v0 = vld [vmem:[%s7054_s2 + $0x1b8] sm:$0xff] }
 0x335   :  { %3995 = vmatprep.mubr.msk.f32.mxu0 %vm1101_vm11, %v1001_v4  ;;  %2304 = vperm.xlu0 %4762, %v2238_v2   ;;  %v2240_v4 = vld [vmem:[%s7055_s3 + $0x68] sm:$0xff] }
 0x336   :  { %2299 = vperm.xlu1 %4763, %v2237_v3  }
 0x338   :  { %1297 = vmatmul.mubr.f32.gmra.mrb[14].mxu0 %v1000_v6  ;;  %v2239_v6 = vld [vmem:[%s7055_s3 + $0x60] sm:$0xff] }
 0x339   :  { %3996 = vmatprep.mubr.msk.f32.mxu0 %vm1101_vm11, %v1003_v7  ;;  %v1050_v7 = vld [vmem:[%s7054_s2 + $0x1b0] sm:$0xff]  ;;  %2314 = vperm.xlu0 %4762, %v2240_v4  }
 0x33a   :  { %2309 = vperm.xlu1 %4763, %v2239_v6  }
 0x33c   :  { %1302 = vmatmul.mubr.f32.gmra.mrb[16].mxu0 %v1002_v8  ;;  %v1053_v8 = vld [vmem:[%s7054_s2 + $0x1c8] sm:$0xff] }
 0x33d   :  { %3997 = vmatprep.mubr.msk.f32.mxu0 %vm1101_vm11, %v1005_v9  ;;  %v2242_v9 = vld [vmem:[%s7055_s3 + $0x78] sm:$0xff] }
 0x33e   :  { %2324 = vperm.xlu0 %4762, %v2242_v9  }
 0x340   :  { %1307 = vmatmul.mubr.f32.gmra.mrb[18].mxu0 %v1004_v10  ;;  %v2241_v10 = vld [vmem:[%s7055_s3 + $0x70] sm:$0xff] }
 0x341   :  { %3998 = vmatprep.mubr.msk.f32.mxu0 %vm1101_vm11, %v1007_v11  ;;  %v1052_v11 = vld [vmem:[%s7054_s2 + $0x1c0] sm:$0xff]  ;;  %2319 = vperm.xlu1 %4763, %v2241_v10  }
 0x344   :  { %1312 = vmatmul.mubr.f32.gmra.mrb[20].mxu0 %v1006_v12  ;;  %v1055_v12 = vld [vmem:[%s7054_s2 + $0x1d8] sm:$0xff] }
 0x345   :  { %3999 = vmatprep.mubr.msk.f32.mxu0 %vm1101_vm11, %v1009_v13  ;;  %v2244_v13 = vld [vmem:[%s7055_s3 + $0x88] sm:$0xff] }
 0x346   :  { %2334 = vperm.xlu0 %4762, %v2244_v13  }
 0x348   :  { %1317 = vmatmul.mubr.f32.gmra.mrb[22].mxu0 %v1008_v14  ;;  %v2243_v14 = vld [vmem:[%s7055_s3 + $0x80] sm:$0xff] }
 0x349   :  { %4000 = vmatprep.mubr.msk.f32.mxu0 %vm1101_vm11, %v1011_v15  ;;  %v1054_v15 = vld [vmem:[%s7054_s2 + $0x1d0] sm:$0xff]  ;;  %2329 = vperm.xlu1 %4763, %v2243_v14  }
 0x34c   :  { %1322 = vmatmul.mubr.f32.gmra.mrb[24].mxu0 %v1010_v16  ;;  %v1057_v16 = vld [vmem:[%s7054_s2 + $0x1e8] sm:$0xff] }
 0x34d   :  { %4001 = vmatprep.mubr.msk.f32.mxu0 %vm1101_vm11, %v1013_v17  ;;  %v2246_v17 = vld [vmem:[%s7055_s3 + $0x98] sm:$0xff] }
 0x34e   :  { %2344 = vperm.xlu0 %4762, %v2246_v17  }
 0x350   :  { %1327 = vmatmul.mubr.f32.gmra.mrb[26].mxu0 %v1012_v18  ;;  %v2245_v18 = vld [vmem:[%s7055_s3 + $0x90] sm:$0xff] }
 0x351   :  { %4002 = vmatprep.mubr.msk.f32.mxu0 %vm1101_vm11, %v1015_v22  ;;  %2339 = vperm.xlu1 %4763, %v2245_v18   ;;  %v1061_v22 = vld [vmem:[%s7054_s2 + $0x208] sm:$0xff] }
 0x354   :  { %1332 = vmatmul.mubr.f32.gmra.mrb[28].mxu0 %v1014_v23  ;;  %v1060_v23 = vld [vmem:[%s7054_s2 + $0x200] sm:$0xff] }
 0x355   :  { %4003 = vmatprep.mubr.msk.f32.mxu0 %vm1101_vm11, %v1017_v24  ;;  %v1063_v24 = vld [vmem:[%s7054_s2 + $0x218] sm:$0xff] }
 0x358   :  { %1337 = vmatmul.mubr.f32.gmra.mrb[30].mxu0 %v1016_v25  ;;  %v1062_v25 = vld [vmem:[%s7054_s2 + $0x210] sm:$0xff] }
 0x359   :  { %4004 = vmatprep.mubr.msk.f32.mxu0 %vm1101_vm11, %v1019_v26  ;;  %v1065_v26 = vld [vmem:[%s7054_s2 + $0x228] sm:$0xff] }
 0x35c   :  { %1342 = vmatmul.mubr.f32.gmra.mrb[32].mxu0 %v1018_v27  ;;  %v1064_v27 = vld [vmem:[%s7054_s2 + $0x220] sm:$0xff] }
 0x35d   :  { %4005 = vmatprep.mubr.msk.f32.mxu0 %vm1101_vm11, %v1021_v28  ;;  %v1067_v28 = vld [vmem:[%s7054_s2 + $0x238] sm:$0xff] }
 0x360   :  { %1347 = vmatmul.mubr.f32.gmra.mrb[34].mxu0 %v1020_v29  ;;  %v1066_v29 = vld [vmem:[%s7054_s2 + $0x230] sm:$0xff] }
 0x361   :  { %4006 = vmatprep.mubr.msk.f32.mxu0 %vm1101_vm11, %v1023_v31  ;;  %v1069_v31 = vld [vmem:[%s7054_s2 + $0x248] sm:$0xff] }
 0x364   :  { %1352 = vmatmul.mubr.f32.gmra.mrb[36].mxu0 %v1022_v32  ;;  %v1068_v32 = vld [vmem:[%s7054_s2 + $0x240] sm:$0xff] }
 0x365   :  { %4007 = vmatprep.mubr.msk.f32.mxu0 %vm1101_vm11, %v1025_v33  ;;  %v1071_v33 = vld [vmem:[%s7054_s2 + $0x258] sm:$0xff] }
 0x368   :  { %1357 = vmatmul.mubr.f32.gmra.mrb[38].mxu0 %v1024_v35  ;;  %v1070_v35 = vld [vmem:[%s7054_s2 + $0x250] sm:$0xff] }
 0x369   :  { %4008 = vmatprep.mubr.msk.f32.mxu0 %vm1101_vm11, %v1027_v36  ;;  %v1073_v36 = vld [vmem:[%s7054_s2 + $0x268] sm:$0xff] }
 0x36c   :  { %1362 = vmatmul.mubr.f32.gmra.mrb[40].mxu0 %v1026_v34  ;;  %v1072_v34 = vld [vmem:[%s7054_s2 + $0x260] sm:$0xff] }
 0x36d   :  { %4009 = vmatprep.mubr.msk.f32.mxu0 %vm1101_vm11, %v1029_v37  ;;  %v1075_v37 = vld [vmem:[%s7054_s2 + $0x278] sm:$0xff] }
 0x370   :  { %1367 = vmatmul.mubr.f32.gmra.mrb[42].mxu0 %v1028_v38  ;;  %v1074_v38 = vld [vmem:[%s7054_s2 + $0x270] sm:$0xff] }
 0x371   :  { %4010 = vmatprep.mubr.msk.f32.mxu0 %vm1101_vm11, %v1031_v39 }
 0x374   :  { %1372 = vmatmul.mubr.f32.gmra.mrb[44].mxu0 %v1030_v40 }
 0x375   :  { %4011 = vmatprep.mubr.msk.f32.mxu0 %vm1101_vm11, %v1033_v41 }
 0x378   :  { %1377 = vmatmul.mubr.f32.gmra.mrb[46].mxu0 %v1032_v42 }
 0x379   :  { %4012 = vmatprep.mubr.msk.f32.mxu0 %vm1101_vm11, %v1035_v43 }
 0x37c   :  { %1382 = vmatmul.mubr.f32.gmra.mrb[48].mxu0 %v1034_v44 }
 0x37d   :  { %4013 = vmatprep.mubr.msk.f32.mxu0 %vm1101_vm11, %v1037_v45 }
 0x380   :  { %1387 = vmatmul.mubr.f32.gmra.mrb[50].mxu0 %v1036_v46 }
 0x381   :  { %4014 = vmatprep.mubr.msk.f32.mxu0 %vm1101_vm11, %v1039_v47 }
 0x384   :  { %1392 = vmatmul.mubr.f32.gmra.mrb[52].mxu0 %v1038_v48 }
 0x385   :  { %4015 = vmatprep.mubr.msk.f32.mxu0 %vm1101_vm11, %v1041_v49 }
 0x388   :  { %1397 = vmatmul.mubr.f32.gmra.mrb[54].mxu0 %v1040_v30 }
 0x389   :  { %4016 = vmatprep.mubr.msk.f32.mxu0 %vm1101_vm11, %v1043_v52 }
 0x38c   :  { %1402 = vmatmul.mubr.f32.gmra.mrb[56].mxu0 %v1042_v55 }
 0x38d   :  { %4017 = vmatprep.mubr.msk.f32.mxu0 %vm1101_vm11, %v1045_v56 }
 0x390   :  { %1407 = vmatmul.mubr.f32.gmra.mrb[58].mxu0 %v1044_v59 }
 0x391   :  { %4018 = vmatprep.mubr.msk.f32.mxu0 %vm1101_vm11, %v1047_v60 }
 0x394   :  { %1412 = vmatmul.mubr.f32.gmra.mrb[60].mxu0 %v1046_v63 }
 0x395   :  { %4019 = vmatprep.mubr.msk.f32.mxu0 %vm1101_vm11, %v1049_v1 }
 0x398   :  { %1417 = vmatmul.mubr.f32.gmra.mrb[62].mxu0 %v1048_v5 }
 0x399   :  { %4020 = vmatprep.mubr.msk.f32.mxu0 %vm1101_vm11, %v1051_v0 }
 0x39c   :  { %1422 = vmatmul.mubr.f32.gmra.mrb[64].mxu0 %v1050_v7 }
 0x39d   :  { %4021 = vmatprep.mubr.msk.f32.mxu0 %vm1101_vm11, %v1053_v8 }
 0x3a0   :  { %1427 = vmatmul.mubr.f32.gmra.mrb[66].mxu0 %v1052_v11 }
 0x3a1   :  { %4022 = vmatprep.mubr.msk.f32.mxu0 %vm1101_vm11, %v1055_v12 }
 0x3a4   :  { %1432 = vmatmul.mubr.f32.gmra.mrb[68].mxu0 %v1054_v15 }
 0x3a5   :  { %4023 = vmatprep.mubr.msk.f32.mxu0 %vm1101_vm11, %v1057_v16 }
 0x3a8   :  { %1437 = vmatmul.mubr.f32.gmra.mrb[70].mxu0 %v1056_v19 }
 0x3a9   :  { %4024 = vmatprep.mubr.msk.f32.mxu0 %vm1101_vm11, %v1059_v20 }
 0x3ac   :  { %1442 = vmatmul.mubr.f32.gmra.mrb[72].mxu0 %v1058_v21 }
 0x3ad   :  { %4025 = vmatprep.mubr.msk.f32.mxu0 %vm1101_vm11, %v1061_v22 }
 0x3b0   :  { %1447 = vmatmul.mubr.f32.gmra.mrb[74].mxu0 %v1060_v23 }
 0x3b1   :  { %4026 = vmatprep.mubr.msk.f32.mxu0 %vm1101_vm11, %v1063_v24 }
 0x3b4   :  { %1452 = vmatmul.mubr.f32.gmra.mrb[76].mxu0 %v1062_v25 }
 0x3b5   :  { %4027 = vmatprep.mubr.msk.f32.mxu0 %vm1101_vm11, %v1065_v26 }
 0x3b8   :  { %1457 = vmatmul.mubr.f32.gmra.mrb[78].mxu0 %v1064_v27 }
 0x3b9   :  { %4028 = vmatprep.mubr.msk.f32.mxu0 %vm1101_vm11, %v1067_v28 }
 0x3bc   :  { %1462 = vmatmul.mubr.f32.gmra.mrb[80].mxu0 %v1066_v29 }
 0x3bd   :  { %4029 = vmatprep.mubr.msk.f32.mxu0 %vm1101_vm11, %v1069_v31 }
 0x3c0   :  { %1467 = vmatmul.mubr.f32.gmra.mrb[82].mxu0 %v1068_v32 }
 0x3c1   :  { %4030 = vmatprep.mubr.msk.f32.mxu0 %vm1101_vm11, %v1071_v33 }
 0x3c4   :  { %1472 = vmatmul.mubr.f32.gmra.mrb[84].mxu0 %v1070_v35 }
 0x3c5   :  { %4031 = vmatprep.mubr.msk.f32.mxu0 %vm1101_vm11, %v1073_v36 }
 0x3c8   :  { %1477 = vmatmul.mubr.f32.gmra.mrb[86].mxu0 %v1072_v34 }
 0x3c9   :  { %4032 = vmatprep.mubr.msk.f32.mxu0 %vm1101_vm11, %v1075_v37 }
 0x3cc   :  { %1482 = vmatmul.mubr.f32.gmra.mrb[88].mxu0 %v1074_v38 }
 0x403   :  { %v1288_v39 = vpop.f32.mrb[10].mxu0 }
 0x404   :  { %v1290_v40 = vpop.f32.mrb[11].mxu0 }
 0x407   :  { %v1293_v41 = vpop.f32.mrb[12].mxu0 }
 0x408   :  { %v1295_v42 = vpop.f32.mrb[13].mxu0 }
 0x40b   :  { %v1298_v43 = vpop.f32.mrb[14].mxu0 }
 0x40c   :  { %v1300_v44 = vpop.f32.mrb[15].mxu0 }
 0x40f   :  { %v1303_v45 = vpop.f32.mrb[16].mxu0 }
 0x410   :  { %v1305_v46 = vpop.f32.mrb[17].mxu0 }
 0x413   :  { %v1308_v47 = vpop.f32.mrb[18].mxu0 }
 0x414   :  { %v1310_v48 = vpop.f32.mrb[19].mxu0 }
 0x417   :  { %v1313_v49 = vpop.f32.mrb[20].mxu0 }
 0x418   :  { %v1315_v50 = vpop.f32.mrb[21].mxu0 }
 0x41b   :  { %v1318_v51 = vpop.f32.mrb[22].mxu0 }
 0x41c   :  { %v1320_v30 = vpop.f32.mrb[23].mxu0 }
 0x41f   :  { %v1323_v52 = vpop.f32.mrb[24].mxu0 }
 0x420   :  { %v1325_v53 = vpop.f32.mrb[25].mxu0 }
 0x423   :  { %v1328_v54 = vpop.f32.mrb[26].mxu0 }
 0x424   :  { %v1330_v55 = vpop.f32.mrb[27].mxu0 }
 0x427   :  { %v1333_v56 = vpop.f32.mrb[28].mxu0 }
 0x428   :  { %v1335_v57 = vpop.f32.mrb[29].mxu0 }
 0x42b   :  { %v1338_v58 = vpop.f32.mrb[30].mxu0 }
 0x42c   :  { %v1340_v59 = vpop.f32.mrb[31].mxu0 }
 0x42d   :  { %v5776_v59 = vpop.permute.xlu0 %2249 }
 0x42f   :  { %v5696_v60 = vpop.f32.mrb[32].mxu0 }
 0x430   :  { %v1345_v61 = vpop.f32.mrb[33].mxu0 }
 0x433   :  { %v5698_v62 = vpop.f32.mrb[34].mxu0 }
 0x434   :  { %v1350_v63 = vpop.f32.mrb[35].mxu0 }
 0x435   :  { %v5783_v63 = vpop.permute.xlu1 %2254 }
 0x437   :  { %v5700_v1 = vpop.f32.mrb[36].mxu0 }
 0x438   :  { %v1355_v2 = vpop.f32.mrb[37].mxu0 }
 0x439   :  { %v5787_v2 = vpop.permute.xlu0 %2264 }
 0x43b   :  { %v5702_v3 = vpop.f32.mrb[38].mxu0 }
 0x43c   :  { %v1360_v5 = vpop.f32.mrb[39].mxu0 }
 0x43f   :  { %v5704_v0 = vpop.f32.mrb[40].mxu0 }
 0x440   :  { %v1365_v4 = vpop.f32.mrb[41].mxu0 }
 0x443   :  { %v5706_v6 = vpop.f32.mrb[42].mxu0 }
 0x444   :  { %v1370_v7 = vpop.f32.mrb[43].mxu0 }
 0x445   :  { %v5794_v7 = vpop.permute.xlu1 %2259 }
 0x447   :  { %v5708_v8 = vpop.f32.mrb[44].mxu0 }
 0x448   :  { %v1375_v9 = vpop.f32.mrb[45].mxu0 }
 0x44b   :  { %v5710_v10 = vpop.f32.mrb[46].mxu0 }
 0x44c   :  { %v1380_v11 = vpop.f32.mrb[47].mxu0 }
 0x44d   :  { %v5799_v11 = vpop.permute.xlu0 %2274 }
 0x44f   :  { %v5712_v12 = vpop.f32.mrb[48].mxu0 }
 0x450   :  { %v1385_v13 = vpop.f32.mrb[49].mxu0 }
 0x453   :  { %v1388_v14 = vpop.f32.mrb[50].mxu0 }
 0x454   :  { %v5714_v15 = vmax.f32 %v1288_v39, %v1388_v14  ;;  %v1390_v16 = vpop.f32.mrb[51].mxu0 }
 0x455   :  { %v5806_v16 = vpop.permute.xlu1 %2269 }
 0x456   :  { %1527 = vrot.lane.b32.xlu0 %v5714_v15, %s4767_s22 }
 0x457   :  { %v1393_v17 = vpop.f32.mrb[52].mxu0 }
 0x458   :  { %v5718_v18 = vmax.f32 %v1293_v41, %v1393_v17  ;;  %v1395_v19 = vpop.f32.mrb[53].mxu0 }
 0x459   :  { %v5810_v19 = vpop.permute.xlu0 %2284 }
 0x45a   :  { %1529 = vrot.lane.b32.xlu1 %v5718_v18, %s4767_s22 }
 0x45b   :  { %v1398_v20 = vpop.f32.mrb[54].mxu0 }
 0x45c   :  { %v5722_v21 = vmax.f32 %v1298_v43, %v1398_v20  ;;  %v1400_v22 = vpop.f32.mrb[55].mxu0 }
 0x45d   :  { %v5817_v22 = vpop.permute.xlu1 %2279 }
 0x45e   :  { %1531 = vrot.lane.b32.xlu0 %v5722_v21, %s4767_s22 }
 0x45f   :  { %v1403_v23 = vpop.f32.mrb[56].mxu0 }
 0x460   :  { %v5726_v24 = vmax.f32 %v1303_v45, %v1403_v23  ;;  %v1405_v25 = vpop.f32.mrb[57].mxu0 }
 0x461   :  { %v5821_v23 = vpop.permute.xlu1 %2289 }
 0x462   :  { %1533 = vrot.lane.b32.xlu1 %v5726_v24, %s4767_s22 }
 0x463   :  { %v1408_v26 = vpop.f32.mrb[58].mxu0 }
 0x464   :  { %v5730_v27 = vmax.f32 %v1308_v47, %v1408_v26  ;;  %v1410_v28 = vpop.f32.mrb[59].mxu0 }
 0x465   :  { %v5825_v26 = vpop.permute.xlu1 %2299 }
 0x466   :  { %1535 = vrot.lane.b32.xlu0 %v5730_v27, %s4767_s22 }
 0x467   :  { %v1413_v29 = vpop.f32.mrb[60].mxu0 }
 0x468   :  { %v5734_v31 = vmax.f32 %v1313_v49, %v1413_v29  ;;  %v1415_v32 = vpop.f32.mrb[61].mxu0 }
 0x469   :  { %v5829_v29 = vpop.permute.xlu1 %2309 }
 0x46a   :  { %1537 = vrot.lane.b32.xlu1 %v5734_v31, %s4767_s22 }
 0x46b   :  { %v1418_v33 = vpop.f32.mrb[62].mxu0 }
 0x46c   :  { %v5738_v35 = vmax.f32 %v1318_v51, %v1418_v33  ;;  %v1420_v36 = vpop.f32.mrb[63].mxu0 }
 0x46d   :  { %v5833_v32 = vpop.permute.xlu1 %2319 }
 0x46e   :  { %1539 = vrot.lane.b32.xlu0 %v5738_v35, %s4767_s22 }
 0x46f   :  { %v1423_v34 = vpop.f32.mrb[64].mxu0 }
 0x470   :  { %v5742_v37 = vmax.f32 %v1323_v52, %v1423_v34  ;;  %v1425_v38 = vpop.f32.mrb[65].mxu0 }
 0x471   :  { %v5837_v36 = vpop.permute.xlu1 %2329 }
 0x472   :  { %1541 = vrot.lane.b32.xlu1 %v5742_v37, %s4767_s22 }
 0x473   :  { %v1428_v39 = vpop.f32.mrb[66].mxu0 }
 0x474   :  { %v5746_v40 = vmax.f32 %v1328_v54, %v1428_v39  ;;  %v1430_v41 = vpop.f32.mrb[67].mxu0 }
 0x475   :  { %v5841_v38 = vpop.permute.xlu1 %2339 }
 0x476   :  { %1543 = vrot.lane.b32.xlu0 %v5746_v40, %s4767_s22 }
 0x477   :  { %v1433_v42 = vpop.f32.mrb[68].mxu0 }
 0x478   :  { %v5750_v43 = vmax.f32 %v1333_v56, %v1433_v42  ;;  %v1435_v44 = vpop.f32.mrb[69].mxu0 }
 0x47a   :  { %1545 = vrot.lane.b32.xlu1 %v5750_v43, %s4767_s22 }
 0x47b   :  { %v1438_v45 = vpop.f32.mrb[70].mxu0 }
 0x47c   :  { %v5754_v46 = vmax.f32 %v1338_v58, %v1438_v45  ;;  %v1440_v47 = vpop.f32.mrb[71].mxu0 }
 0x47e   :  { %1547 = vrot.lane.b32.xlu0 %v5754_v46, %s4767_s22 }
 0x47f   :  { %v1443_v48 = vpop.f32.mrb[72].mxu0 }
 0x480   :  { %v5759_v49 = vmax.f32 %v5696_v60, %v1443_v48  ;;  %v1445_v50 = vpop.f32.mrb[73].mxu0 }
 0x482   :  { %1549 = vrot.lane.b32.xlu1 %v5759_v49, %s4767_s22 }
 0x483   :  { %v1448_v51 = vpop.f32.mrb[74].mxu0 }
 0x484   :  { %v5764_v30 = vmax.f32 %v5698_v62, %v1448_v51  ;;  %v1450_v52 = vpop.f32.mrb[75].mxu0 }
 0x486   :  { %1551 = vrot.lane.b32.xlu0 %v5764_v30, %s4767_s22 }
 0x487   :  { %v1453_v53 = vpop.f32.mrb[76].mxu0 }
 0x488   :  { %v5769_v54 = vmax.f32 %v5700_v1, %v1453_v53  ;;  %v1455_v55 = vpop.f32.mrb[77].mxu0 }
 0x48a   :  { %1553 = vrot.lane.b32.xlu1 %v5769_v54, %s4767_s22 }
 0x48b   :  { %v1458_v56 = vpop.f32.mrb[78].mxu0 }
 0x48c   :  { %v5774_v57 = vmax.f32 %v5702_v3, %v1458_v56  ;;  %v1460_v58 = vpop.f32.mrb[79].mxu0 }
 0x48e   :  { %1555 = vrot.lane.b32.xlu0 %v5774_v57, %s4767_s22 }
 0x48f   :  { %v1463_v60 = vpop.f32.mrb[80].mxu0 }
 0x490   :  { %v5781_v61 = vmax.f32 %v5704_v0, %v1463_v60  ;;  %v1465_v62 = vpop.f32.mrb[81].mxu0 }
 0x492   :  { %1557 = vrot.lane.b32.xlu1 %v5781_v61, %s4767_s22 }
 0x493   :  { %v1468_v1 = vpop.f32.mrb[82].mxu0 }
 0x494   :  { %v5790_v3 = vmax.f32 %v5706_v6, %v1468_v1  ;;  %v1470_v5 = vpop.f32.mrb[83].mxu0 }
 0x496   :  { %1559 = vrot.lane.b32.xlu0 %v5790_v3, %s4767_s22 }
 0x497   :  { %v1473_v4 = vpop.f32.mrb[84].mxu0 }
 0x498   :  { %v5797_v0 = vmax.f32 %v5708_v8, %v1473_v4  ;;  %v1475_v9 = vpop.f32.mrb[85].mxu0 }
 0x49a   :  { %1561 = vrot.lane.b32.xlu1 %v5797_v0, %s4767_s22 }
 0x49b   :  { %v1478_v13 = vpop.f32.mrb[86].mxu0 }
 0x49c   :  { %v5804_v6 = vmax.f32 %v5710_v10, %v1478_v13  ;;  %v1480_v14 = vpop.f32.mrb[87].mxu0  ;;  %v5819_v10 = vpop.permute.xlu0 %2294 }
 0x49e   :  { %1563 = vrot.lane.b32.xlu0 %v5804_v6, %s4767_s22 }
 0x49f   :  { %v1483_v17 = vpop.f32.mrb[88].mxu0 }
 0x4a0   :  { %v5813_v8 = vmax.f32 %v5712_v12, %v1483_v17  ;;  %v1485_v20 = vpop.f32.mrb[89].mxu0  ;;  %v5823_v25 = vpop.permute.xlu0 %2304 }
 0x4a2   :  { %1565 = vrot.lane.b32.xlu1 %v5813_v8, %s4767_s22 }
 0x4a4   :  { %v5827_v28 = vpop.permute.xlu0 %2314 }
 0x4a8   :  { %v5831_v12 = vpop.permute.xlu0 %2324 }
 0x4ac   :  { %v5835_v33 = vpop.permute.xlu0 %2334 }
 0x4b0   :  { %v5839_v34 = vpop.permute.xlu0 %2344 }
 0x4c8   :  { %v1528_v39 = vpop.permute.xlu0 %1527 }
 0x4c9   :  { %v1587_v41 = vmax.f32 %v5714_v15, %v1528_v39 }
 0x4cb   :  { %1607 = vst.msk [vmem:[#allocation4] sm:$0xff] %vm301_vm2, %v1587_v41  ;;  %1647 = vrot.lane.b32.xlu0 %v1587_v41, %s4767_s22 }
 0x4cc   :  { %v1530_v42 = vpop.permute.xlu1 %1529 }
 0x4cd   :  { %v1588_v44 = vmax.f32 %v5718_v18, %v1530_v42 }
 0x4cf   :  { %1608 = vst.msk [vmem:[#allocation4 + $0x8] sm:$0xff] %vm301_vm2, %v1588_v44  ;;  %1727 = vrot.lane.b32.xlu0 %v1587_v41, %s4768_s1  ;;  %1649 = vrot.lane.b32.xlu1 %v1588_v44, %s4767_s22 }
 0x4d0   :  { %v1532_v45 = vpop.permute.xlu0 %1531 }
 0x4d1   :  { %v1589_v47 = vmax.f32 %v5722_v21, %v1532_v45 }
 0x4d3   :  { %1609 = vst.msk [vmem:[#allocation4 + $0x10] sm:$0xff] %vm301_vm2, %v1589_v47  ;;  %1807 = vrot.lane.b32.xlu0 %v1587_v41, %s4769_s23  ;;  %1729 = vrot.lane.b32.xlu1 %v1588_v44, %s4768_s1 }
 0x4d4   :  { %v1534_v15 = vpop.permute.xlu1 %1533 }
 0x4d5   :  { %v1590_v48 = vmax.f32 %v5726_v24, %v1534_v15 }
 0x4d7   :  { %1610 = vst.msk [vmem:[#allocation4 + $0x18] sm:$0xff] %vm301_vm2, %v1590_v48  ;;  %1887 = vrot.lane.b32.xlu0 %v1587_v41, %s4772_s26  ;;  %1809 = vrot.lane.b32.xlu1 %v1588_v44, %s4769_s23 }
 0x4d8   :  { %v1536_v18 = vpop.permute.xlu0 %1535 }
 0x4d9   :  { %v5859_v50 = vmax.f32 %v5730_v27, %v1536_v18 }
 0x4db   :  { %1611 = vst.msk [vmem:[#allocation4 + $0x20] sm:$0xff] %vm301_vm2, %v5859_v50  ;;  %1967 = vrot.lane.b32.xlu0 %v1587_v41, %s4770_s24  ;;  %1889 = vrot.lane.b32.xlu1 %v1588_v44, %s4772_s26 }
 0x4dc   :  { %v1538_v21 = vpop.permute.xlu1 %1537 }
 0x4dd   :  { %v5866_v24 = vmax.f32 %v5734_v31, %v1538_v21 }
 0x4df   :  { %1612 = vst.msk [vmem:[#allocation4 + $0x28] sm:$0xff] %vm301_vm2, %v5866_v24  ;;  %2047 = vrot.lane.b32.xlu0 %v1587_v41, %s4774_s28  ;;  %1969 = vrot.lane.b32.xlu1 %v1588_v44, %s4770_s24 }
 0x4e0   :  { %v1540_v27 = vpop.permute.xlu0 %1539 }
 0x4e1   :  { %v5873_v51 = vmax.f32 %v5738_v35, %v1540_v27 }
 0x4e3   :  { %1613 = vst.msk [vmem:[#allocation4 + $0x30] sm:$0xff] %vm301_vm2, %v5873_v51  ;;  %2127 = vrot.lane.b32.xlu0 %v1587_v41, %s4771_s25  ;;  %2049 = vrot.lane.b32.xlu1 %v1588_v44, %s4774_s28 }
 0x4e4   :  { %v1542_v31 = vpop.permute.xlu1 %1541 }
 0x4e5   :  { %v5880_v52 = vmax.f32 %v5742_v37, %v1542_v31 }
 0x4e7   :  { %1614 = vst.msk [vmem:[#allocation4 + $0x38] sm:$0xff] %vm301_vm2, %v5880_v52  ;;  %1651 = vrot.lane.b32.xlu0 %v1589_v47, %s4767_s22  ;;  %2129 = vrot.lane.b32.xlu1 %v1588_v44, %s4771_s25 }
 0x4e8   :  { %v1544_v35 = vpop.permute.xlu0 %1543 }
 0x4e9   :  { %v5887_v53 = vmax.f32 %v5746_v40, %v1544_v35 }
 0x4eb   :  { %1615 = vst.msk [vmem:[#allocation4 + $0x40] sm:$0xff] %vm301_vm2, %v5887_v53  ;;  %1731 = vrot.lane.b32.xlu0 %v1589_v47, %s4768_s1  ;;  %1971 = vrot.lane.b32.xlu1 %v1589_v47, %s4770_s24 }
 0x4ec   :  { %v1546_v37 = vpop.permute.xlu1 %1545 }
 0x4ed   :  { %v5894_v55 = vmax.f32 %v5750_v43, %v1546_v37 }
 0x4ef   :  { %1616 = vst.msk [vmem:[#allocation4 + $0x48] sm:$0xff] %vm301_vm2, %v5894_v55  ;;  %1811 = vrot.lane.b32.xlu0 %v1589_v47, %s4769_s23  ;;  %2051 = vrot.lane.b32.xlu1 %v1589_v47, %s4774_s28 }
 0x4f0   :  { %v1548_v40 = vpop.permute.xlu0 %1547 }
 0x4f1   :  { %v5901_v56 = vmax.f32 %v5754_v46, %v1548_v40 }
 0x4f3   :  { %1617 = vst.msk [vmem:[#allocation4 + $0x50] sm:$0xff] %vm301_vm2, %v5901_v56  ;;  %1891 = vrot.lane.b32.xlu0 %v1589_v47, %s4772_s26  ;;  %2131 = vrot.lane.b32.xlu1 %v1589_v47, %s4771_s25 }
 0x4f4   :  { %v1550_v43 = vpop.permute.xlu1 %1549 }
 0x4f5   :  { %v5908_v58 = vmax.f32 %v5759_v49, %v1550_v43 }
 0x4f7   :  { %1618 = vst.msk [vmem:[#allocation4 + $0x58] sm:$0xff] %vm301_vm2, %v5908_v58  ;;  %1973 = vrot.lane.b32.xlu0 %v1590_v48, %s4770_s24  ;;  %1653 = vrot.lane.b32.xlu1 %v1590_v48, %s4767_s22 }
 0x4f8   :  { %v1552_v46 = vpop.permute.xlu0 %1551 }
 0x4f9   :  { %v5915_v60 = vmax.f32 %v5764_v30, %v1552_v46 }
 0x4fb   :  { %1619 = vst.msk [vmem:[#allocation4 + $0x60] sm:$0xff] %vm301_vm2, %v5915_v60  ;;  %2053 = vrot.lane.b32.xlu0 %v1590_v48, %s4774_s28  ;;  %1733 = vrot.lane.b32.xlu1 %v1590_v48, %s4768_s1 }
 0x4fc   :  { %v1554_v49 = vpop.permute.xlu1 %1553 }
 0x4fd   :  { %v5922_v62 = vmax.f32 %v5769_v54, %v1554_v49 }
 0x4ff   :  { %1620 = vst.msk [vmem:[#allocation4 + $0x68] sm:$0xff] %vm301_vm2, %v5922_v62  ;;  %2133 = vrot.lane.b32.xlu0 %v1590_v48, %s4771_s25  ;;  %1813 = vrot.lane.b32.xlu1 %v1590_v48, %s4769_s23 }
 0x500   :  { %v1556_v30 = vpop.permute.xlu0 %1555 }
 0x501   :  { %v5929_v1 = vmax.f32 %v5774_v57, %v1556_v30 }
 0x503   :  { %1621 = vst.msk [vmem:[#allocation4 + $0x70] sm:$0xff] %vm301_vm2, %v5929_v1  ;;  %1657 = vrot.lane.b32.xlu0 %v5866_v24, %s4767_s22  ;;  %1893 = vrot.lane.b32.xlu1 %v1590_v48, %s4772_s26 }
 0x504   :  { %v1558_v54 = vpop.permute.xlu1 %1557 }
 0x505   :  { %v5937_v5 = vmax.f32 %v5781_v61, %v1558_v54 }
 0x507   :  { %1622 = vst.msk [vmem:[#allocation4 + $0x78] sm:$0xff] %vm301_vm2, %v5937_v5  ;;  %1737 = vrot.lane.b32.xlu0 %v5866_v24, %s4768_s1  ;;  %1655 = vrot.lane.b32.xlu1 %v5859_v50, %s4767_s22 }
 0x508   :  { %v1560_v57 = vpop.permute.xlu0 %1559 }
 0x509   :  { %v5946_v4 = vmax.f32 %v5790_v3, %v1560_v57 }
 0x50b   :  { %1623 = vst.msk [vmem:[#allocation4 + $0x80] sm:$0xff] %vm301_vm2, %v5946_v4  ;;  %1817 = vrot.lane.b32.xlu0 %v5866_v24, %s4769_s23  ;;  %1735 = vrot.lane.b32.xlu1 %v5859_v50, %s4768_s1 }
 0x50c   :  { %v1562_v61 = vpop.permute.xlu1 %1561 }
 0x50d   :  { %v5955_v9 = vmax.f32 %v5797_v0, %v1562_v61 }
 0x50f   :  { %1624 = vst.msk [vmem:[#allocation4 + $0x88] sm:$0xff] %vm301_vm2, %v5955_v9  ;;  %1897 = vrot.lane.b32.xlu0 %v5866_v24, %s4772_s26  ;;  %1815 = vrot.lane.b32.xlu1 %v5859_v50, %s4769_s23 }
 0x510   :  { %v1564_v3 = vpop.permute.xlu0 %1563 }
 0x511   :  { %v5964_v13 = vmax.f32 %v5804_v6, %v1564_v3 }
 0x513   :  { %1625 = vst.msk [vmem:[#allocation4 + $0x90] sm:$0xff] %vm301_vm2, %v5964_v13  ;;  %1977 = vrot.lane.b32.xlu0 %v5866_v24, %s4770_s24  ;;  %1895 = vrot.lane.b32.xlu1 %v5859_v50, %s4772_s26 }
 0x514   :  { %v1566_v0 = vpop.permute.xlu1 %1565 }
 0x515   :  { %v5973_v14 = vmax.f32 %v5813_v8, %v1566_v0 }
 0x517   :  { %1626 = vst.msk [vmem:[#allocation4 + $0x98] sm:$0xff] %vm301_vm2, %v5973_v14  ;;  %2057 = vrot.lane.b32.xlu0 %v5866_v24, %s4774_s28  ;;  %1975 = vrot.lane.b32.xlu1 %v5859_v50, %s4770_s24 }
 0x51b   :  { %2137 = vrot.lane.b32.xlu0 %v5866_v24, %s4771_s25  ;;  %2055 = vrot.lane.b32.xlu1 %v5859_v50, %s4774_s28 }
 0x51f   :  { %1661 = vrot.lane.b32.xlu0 %v5880_v52, %s4767_s22  ;;  %2135 = vrot.lane.b32.xlu1 %v5859_v50, %s4771_s25 }
 0x523   :  { %1741 = vrot.lane.b32.xlu0 %v5880_v52, %s4768_s1  ;;  %1659 = vrot.lane.b32.xlu1 %v5873_v51, %s4767_s22 }
 0x527   :  { %1821 = vrot.lane.b32.xlu0 %v5880_v52, %s4769_s23  ;;  %1739 = vrot.lane.b32.xlu1 %v5873_v51, %s4768_s1 }
 0x52b   :  { %1901 = vrot.lane.b32.xlu0 %v5880_v52, %s4772_s26  ;;  %1819 = vrot.lane.b32.xlu1 %v5873_v51, %s4769_s23 }
 0x52f   :  { %1981 = vrot.lane.b32.xlu0 %v5880_v52, %s4770_s24  ;;  %1899 = vrot.lane.b32.xlu1 %v5873_v51, %s4772_s26 }
 0x533   :  { %2061 = vrot.lane.b32.xlu0 %v5880_v52, %s4774_s28  ;;  %1979 = vrot.lane.b32.xlu1 %v5873_v51, %s4770_s24 }
 0x537   :  { %2141 = vrot.lane.b32.xlu0 %v5880_v52, %s4771_s25  ;;  %2059 = vrot.lane.b32.xlu1 %v5873_v51, %s4774_s28 }
 0x53b   :  { %1665 = vrot.lane.b32.xlu0 %v5894_v55, %s4767_s22  ;;  %2139 = vrot.lane.b32.xlu1 %v5873_v51, %s4771_s25 }
 0x53d   :  { %v1648_v6 = vpop.permute.xlu0 %1647 }
 0x53e   :  { %1707 = vst.msk [vmem:[#allocation4] sm:$0xff] %vm327_vm3, %v1648_v6 }
 0x53f   :  { %1745 = vrot.lane.b32.xlu0 %v5894_v55, %s4768_s1  ;;  %1663 = vrot.lane.b32.xlu1 %v5887_v53, %s4767_s22 }
 0x541   :  { %v1728_v17 = vpop.permute.xlu0 %1727  ;;  %v1650_v8 = vpop.permute.xlu1 %1649 }
 0x542   :  { %1787 = vst.msk [vmem:[#allocation4] sm:$0xff] %vm348_vm4, %v1728_v17 }
 0x543   :  { %1708 = vst.msk [vmem:[#allocation4 + $0x8] sm:$0xff] %vm327_vm3, %v1650_v8  ;;  %1825 = vrot.lane.b32.xlu0 %v5894_v55, %s4769_s23  ;;  %1743 = vrot.lane.b32.xlu1 %v5887_v53, %s4768_s1 }
 0x545   :  { %v1808_v20 = vpop.permute.xlu0 %1807  ;;  %v1730_v39 = vpop.permute.xlu1 %1729 }
 0x546   :  { %1867 = vst.msk [vmem:[#allocation4] sm:$0xff] %vm369_vm5, %v1808_v20 }
 0x547   :  { %1788 = vst.msk [vmem:[#allocation4 + $0x8] sm:$0xff] %vm348_vm4, %v1730_v39  ;;  %1905 = vrot.lane.b32.xlu0 %v5894_v55, %s4772_s26  ;;  %1823 = vrot.lane.b32.xlu1 %v5887_v53, %s4769_s23 }
 0x549   :  { %v1888_v41 = vpop.permute.xlu0 %1887  ;;  %v1810_v42 = vpop.permute.xlu1 %1809 }
 0x54a   :  { %1947 = vst.msk [vmem:[#allocation4] sm:$0xff] %vm390_vm6, %v1888_v41 }
 0x54b   :  { %1868 = vst.msk [vmem:[#allocation4 + $0x8] sm:$0xff] %vm369_vm5, %v1810_v42  ;;  %1985 = vrot.lane.b32.xlu0 %v5894_v55, %s4770_s24  ;;  %1903 = vrot.lane.b32.xlu1 %v5887_v53, %s4772_s26 }
 0x54d   :  { %v1968_v44 = vpop.permute.xlu0 %1967  ;;  %v1890_v45 = vpop.permute.xlu1 %1889 }
 0x54e   :  { %2027 = vst.msk [vmem:[#allocation4] sm:$0xff] %vm411_vm7, %v1968_v44 }
 0x54f   :  { %1948 = vst.msk [vmem:[#allocation4 + $0x8] sm:$0xff] %vm390_vm6, %v1890_v45  ;;  %2065 = vrot.lane.b32.xlu0 %v5894_v55, %s4774_s28  ;;  %1983 = vrot.lane.b32.xlu1 %v5887_v53, %s4770_s24 }
 0x551   :  { %v2048_v47 = vpop.permute.xlu0 %2047  ;;  %v1970_v15 = vpop.permute.xlu1 %1969 }
 0x552   :  { %2107 = vst.msk [vmem:[#allocation4] sm:$0xff] %vm432_vm8, %v2048_v47 }
 0x553   :  { %2028 = vst.msk [vmem:[#allocation4 + $0x8] sm:$0xff] %vm411_vm7, %v1970_v15  ;;  %2145 = vrot.lane.b32.xlu0 %v5894_v55, %s4771_s25  ;;  %2063 = vrot.lane.b32.xlu1 %v5887_v53, %s4774_s28 }
 0x555   :  { %v2128_v48 = vpop.permute.xlu0 %2127  ;;  %v2050_v18 = vpop.permute.xlu1 %2049 }
 0x556   :  { %2187 = vst.msk [vmem:[#allocation4] sm:$0xff] %vm453_vm9, %v2128_v48 }
 0x557   :  { %2108 = vst.msk [vmem:[#allocation4 + $0x8] sm:$0xff] %vm432_vm8, %v2050_v18  ;;  %1669 = vrot.lane.b32.xlu0 %v5908_v58, %s4767_s22  ;;  %2143 = vrot.lane.b32.xlu1 %v5887_v53, %s4771_s25 }
 0x559   :  { %v1652_v50 = vpop.permute.xlu0 %1651  ;;  %v2130_v21 = vpop.permute.xlu1 %2129 }
 0x55a   :  { %1709 = vst.msk [vmem:[#allocation4 + $0x10] sm:$0xff] %vm327_vm3, %v1652_v50 }
 0x55b   :  { %2188 = vst.msk [vmem:[#allocation4 + $0x8] sm:$0xff] %vm453_vm9, %v2130_v21  ;;  %1749 = vrot.lane.b32.xlu0 %v5908_v58, %s4768_s1  ;;  %1667 = vrot.lane.b32.xlu1 %v5901_v56, %s4767_s22 }
 0x55d   :  { %v1732_v24 = vpop.permute.xlu0 %1731  ;;  %v1972_v27 = vpop.permute.xlu1 %1971  ;;  %v2207_v51 = vld [vmem:[#allocation4] sm:$0xff] }
 0x55e   :  { %1789 = vst.msk [vmem:[#allocation4 + $0x10] sm:$0xff] %vm348_vm4, %v1732_v24  ;;  %v2347_v31 = vadd.f32 %v5776_v59, %v2207_v51 }
 0x55f   :  { %1829 = vrot.lane.b32.xlu0 %v5908_v58, %s4769_s23  ;;  %1747 = vrot.lane.b32.xlu1 %v5901_v56, %s4768_s1 }
 0x560   :  { %v6070_v52 = vmax.f32 %v2347_v31, 0.0 }
 0x561   :  { %v1812_v35 = vpop.permute.xlu0 %1811  ;;  %v2052_v53 = vpop.permute.xlu1 %2051 }
 0x562   :  { %v2208_v37 = vld [vmem:[#allocation4 + $0x8] sm:$0xff]  ;;  %1869 = vst.msk [vmem:[#allocation4 + $0x10] sm:$0xff] %vm369_vm5, %v1812_v35 }
 0x563   :  { %v2348_v55 = vadd.f32 %v5783_v63, %v2208_v37  ;;  %2388 = vst.msk [vmem:[#allocation5] sm:$0xff] %vm2387_vm15, %v6070_v52  ;;  %1909 = vrot.lane.b32.xlu0 %v5908_v58, %s4772_s26  ;;  %1827 = vrot.lane.b32.xlu1 %v5901_v56, %s4769_s23 }
 0x565   :  { %v6080_v59 = vmax.f32 %v2348_v55, 0.0  ;;  %v1892_v40 = vpop.permute.xlu0 %1891  ;;  %v2132_v43 = vpop.permute.xlu1 %2131 }
 0x566   :  { %1949 = vst.msk [vmem:[#allocation4 + $0x10] sm:$0xff] %vm390_vm6, %v1892_v40 }
 0x567   :  { %2389 = vst.msk [vmem:[#allocation5 + $0x8] sm:$0xff] %vm2387_vm15, %v6080_v59  ;;  %1989 = vrot.lane.b32.xlu0 %v5908_v58, %s4770_s24  ;;  %1907 = vrot.lane.b32.xlu1 %v5901_v56, %s4772_s26 }
 0x568   :  { %2029 = vst.msk [vmem:[#allocation4 + $0x10] sm:$0xff] %vm411_vm7, %v1972_v27 }
 0x569   :  { %2109 = vst.msk [vmem:[#allocation4 + $0x10] sm:$0xff] %vm432_vm8, %v2052_v53  ;;  %v1974_v63 = vpop.permute.xlu0 %1973  ;;  %v1654_v46 = vpop.permute.xlu1 %1653 }
 0x56a   :  { %2189 = vst.msk [vmem:[#allocation4 + $0x10] sm:$0xff] %vm453_vm9, %v2132_v43 }
 0x56b   :  { %1710 = vst.msk [vmem:[#allocation4 + $0x18] sm:$0xff] %vm327_vm3, %v1654_v46  ;;  %2069 = vrot.lane.b32.xlu0 %v5908_v58, %s4774_s28  ;;  %1987 = vrot.lane.b32.xlu1 %v5901_v56, %s4770_s24 }
 0x56d   :  { %v2054_v49 = vpop.permute.xlu0 %2053  ;;  %v1734_v30 = vpop.permute.xlu1 %1733 }
 0x56e   :  { %1790 = vst.msk [vmem:[#allocation4 + $0x18] sm:$0xff] %vm348_vm4, %v1734_v30 }
 0x56f   :  { %2149 = vrot.lane.b32.xlu0 %v5908_v58, %s4771_s25  ;;  %2067 = vrot.lane.b32.xlu1 %v5901_v56, %s4774_s28 }
 0x571   :  { %v2209_v54 = vld [vmem:[#allocation4 + $0x10] sm:$0xff]  ;;  %v2134_v57 = vpop.permute.xlu0 %2133  ;;  %v1814_v61 = vpop.permute.xlu1 %1813 }
 0x572   :  { %v2349_v3 = vadd.f32 %v5794_v7, %v2209_v54  ;;  %1870 = vst.msk [vmem:[#allocation4 + $0x18] sm:$0xff] %vm369_vm5, %v1814_v61 }
 0x573   :  { %1673 = vrot.lane.b32.xlu0 %v5922_v62, %s4767_s22  ;;  %2147 = vrot.lane.b32.xlu1 %v5901_v56, %s4771_s25 }
 0x574   :  { %v6108_v0 = vmax.f32 %v2349_v3, 0.0 }
 0x575   :  { %v1658_v6 = vpop.permute.xlu0 %1657  ;;  %v1894_v58 = vpop.permute.xlu1 %1893 }
 0x576   :  { %2390 = vst.msk [vmem:[#allocation5 + $0x10] sm:$0xff] %vm2387_vm15, %v6108_v0 }
 0x577   :  { %1712 = vst.msk [vmem:[#allocation4 + $0x28] sm:$0xff] %vm327_vm3, %v1658_v6  ;;  %1753 = vrot.lane.b32.xlu0 %v5922_v62, %s4768_s1  ;;  %1671 = vrot.lane.b32.xlu1 %v5915_v60, %s4767_s22 }
 0x578   :  { %1950 = vst.msk [vmem:[#allocation4 + $0x18] sm:$0xff] %vm390_vm6, %v1894_v58 }
 0x579   :  { %2030 = vst.msk [vmem:[#allocation4 + $0x18] sm:$0xff] %vm411_vm7, %v1974_v63  ;;  %v1738_v7 = vpop.permute.xlu0 %1737  ;;  %v1656_v56 = vpop.permute.xlu1 %1655 }
 0x57a   :  { %2110 = vst.msk [vmem:[#allocation4 + $0x18] sm:$0xff] %vm432_vm8, %v2054_v49 }
 0x57b   :  { %2190 = vst.msk [vmem:[#allocation4 + $0x18] sm:$0xff] %vm453_vm9, %v2134_v57  ;;  %1833 = vrot.lane.b32.xlu0 %v5922_v62, %s4769_s23  ;;  %1751 = vrot.lane.b32.xlu1 %v5915_v60, %s4768_s1 }
 0x57c   :  { %1792 = vst.msk [vmem:[#allocation4 + $0x28] sm:$0xff] %vm348_vm4, %v1738_v7 }
 0x57d   :  { %1711 = vst.msk [vmem:[#allocation4 + $0x20] sm:$0xff] %vm327_vm3, %v1656_v56  ;;  %v1818_v17 = vpop.permute.xlu0 %1817  ;;  %v1736_v8 = vpop.permute.xlu1 %1735 }
 0x57e   :  { %1872 = vst.msk [vmem:[#allocation4 + $0x28] sm:$0xff] %vm369_vm5, %v1818_v17 }
 0x57f   :  { %1791 = vst.msk [vmem:[#allocation4 + $0x20] sm:$0xff] %vm348_vm4, %v1736_v8  ;;  %1913 = vrot.lane.b32.xlu0 %v5922_v62, %s4772_s26  ;;  %1831 = vrot.lane.b32.xlu1 %v5915_v60, %s4769_s23 }
 0x581   :  { %v1898_v39 = vpop.permute.xlu0 %1897  ;;  %v1816_v41 = vpop.permute.xlu1 %1815 }
 0x582   :  { %v2210_v20 = vld [vmem:[#allocation4 + $0x18] sm:$0xff]  ;;  %1952 = vst.msk [vmem:[#allocation4 + $0x28] sm:$0xff] %vm390_vm6, %v1898_v39 }
 0x583   :  { %v2350_v42 = vadd.f32 %v5787_v2, %v2210_v20  ;;  %1871 = vst.msk [vmem:[#allocation4 + $0x20] sm:$0xff] %vm369_vm5, %v1816_v41  ;;  %1993 = vrot.lane.b32.xlu0 %v5922_v62, %s4770_s24  ;;  %1911 = vrot.lane.b32.xlu1 %v5915_v60, %s4772_s26 }
 0x585   :  { %v6140_v44 = vmax.f32 %v2350_v42, 0.0  ;;  %v1978_v45 = vpop.permute.xlu0 %1977  ;;  %v1896_v47 = vpop.permute.xlu1 %1895 }
 0x586   :  { %2032 = vst.msk [vmem:[#allocation4 + $0x28] sm:$0xff] %vm411_vm7, %v1978_v45 }
 0x587   :  { %2391 = vst.msk [vmem:[#allocation5 + $0x18] sm:$0xff] %vm2387_vm15, %v6140_v44  ;;  %2073 = vrot.lane.b32.xlu0 %v5922_v62, %s4774_s28  ;;  %1991 = vrot.lane.b32.xlu1 %v5915_v60, %s4770_s24 }
 0x588   :  { %1951 = vst.msk [vmem:[#allocation4 + $0x20] sm:$0xff] %vm390_vm6, %v1896_v47 }
 0x589   :  { %v2058_v2 = vpop.permute.xlu0 %2057  ;;  %v1976_v15 = vpop.permute.xlu1 %1975 }
 0x58a   :  { %2112 = vst.msk [vmem:[#allocation4 + $0x28] sm:$0xff] %vm432_vm8, %v2058_v2 }
 0x58b   :  { %2031 = vst.msk [vmem:[#allocation4 + $0x20] sm:$0xff] %vm411_vm7, %v1976_v15  ;;  %2153 = vrot.lane.b32.xlu0 %v5922_v62, %s4771_s25  ;;  %2071 = vrot.lane.b32.xlu1 %v5915_v60, %s4774_s28 }
 0x58d   :  { %v2138_v48 = vpop.permute.xlu0 %2137  ;;  %v2056_v18 = vpop.permute.xlu1 %2055 }
 0x58e   :  { %2192 = vst.msk [vmem:[#allocation4 + $0x28] sm:$0xff] %vm453_vm9, %v2138_v48 }
 0x58f   :  { %2111 = vst.msk [vmem:[#allocation4 + $0x20] sm:$0xff] %vm432_vm8, %v2056_v18  ;;  %1677 = vrot.lane.b32.xlu0 %v5937_v5, %s4767_s22  ;;  %2151 = vrot.lane.b32.xlu1 %v5915_v60, %s4771_s25 }
 0x591   :  { %v1662_v50 = vpop.permute.xlu0 %1661  ;;  %v2136_v21 = vpop.permute.xlu1 %2135 }
 0x592   :  { %1714 = vst.msk [vmem:[#allocation4 + $0x38] sm:$0xff] %vm327_vm3, %v1662_v50 }
 0x593   :  { %2191 = vst.msk [vmem:[#allocation4 + $0x20] sm:$0xff] %vm453_vm9, %v2136_v21  ;;  %1757 = vrot.lane.b32.xlu0 %v5937_v5, %s4768_s1  ;;  %1675 = vrot.lane.b32.xlu1 %v5929_v1, %s4767_s22 }
 0x595   :  { %v1742_v62 = vpop.permute.xlu0 %1741  ;;  %v1660_v24 = vpop.permute.xlu1 %1659  ;;  %v2212_v27 = vld [vmem:[#allocation4 + $0x28] sm:$0xff] }
 0x596   :  { %1794 = vst.msk [vmem:[#allocation4 + $0x38] sm:$0xff] %vm348_vm4, %v1742_v62  ;;  %v2352_v60 = vadd.f32 %v5799_v11, %v2212_v27 }
 0x597   :  { %1713 = vst.msk [vmem:[#allocation4 + $0x30] sm:$0xff] %vm327_vm3, %v1660_v24  ;;  %1837 = vrot.lane.b32.xlu0 %v5937_v5, %s4769_s23  ;;  %1755 = vrot.lane.b32.xlu1 %v5929_v1, %s4768_s1 }
 0x598   :  { %v6175_v51 = vmax.f32 %v2352_v60, 0.0 }
 0x599   :  { %v1822_v31 = vpop.permute.xlu0 %1821  ;;  %v1740_v35 = vpop.permute.xlu1 %1739 }
 0x59a   :  { %v2211_v53 = vld [vmem:[#allocation4 + $0x20] sm:$0xff]  ;;  %1874 = vst.msk [vmem:[#allocation4 + $0x38] sm:$0xff] %vm369_vm5, %v1822_v31 }
 0x59b   :  { %1793 = vst.msk [vmem:[#allocation4 + $0x30] sm:$0xff] %vm348_vm4, %v1740_v35  ;;  %v2351_v11 = vadd.f32 %v5806_v16, %v2211_v53  ;;  %1917 = vrot.lane.b32.xlu0 %v5937_v5, %s4772_s26  ;;  %1835 = vrot.lane.b32.xlu1 %v5929_v1, %s4769_s23 }
 0x59c   :  { %2393 = vst.msk [vmem:[#allocation5 + $0x28] sm:$0xff] %vm2387_vm15, %v6175_v51 }
 0x59d   :  { %v6186_v37 = vmax.f32 %v2351_v11, 0.0  ;;  %v1902_v55 = vpop.permute.xlu0 %1901  ;;  %v1820_v40 = vpop.permute.xlu1 %1819 }
 0x59e   :  { %1954 = vst.msk [vmem:[#allocation4 + $0x38] sm:$0xff] %vm390_vm6, %v1902_v55 }
 0x59f   :  { %1873 = vst.msk [vmem:[#allocation4 + $0x30] sm:$0xff] %vm369_vm5, %v1820_v40  ;;  %1997 = vrot.lane.b32.xlu0 %v5937_v5, %s4770_s24  ;;  %1915 = vrot.lane.b32.xlu1 %v5929_v1, %s4772_s26 }
 0x5a0   :  { %2392 = vst.msk [vmem:[#allocation5 + $0x20] sm:$0xff] %vm2387_vm15, %v6186_v37 }
 0x5a1   :  { %v1982_v16 = vpop.permute.xlu0 %1981  ;;  %v1900_v43 = vpop.permute.xlu1 %1899 }
 0x5a2   :  { %2034 = vst.msk [vmem:[#allocation4 + $0x38] sm:$0xff] %vm411_vm7, %v1982_v16 }
 0x5a3   :  { %1953 = vst.msk [vmem:[#allocation4 + $0x30] sm:$0xff] %vm390_vm6, %v1900_v43  ;;  %2077 = vrot.lane.b32.xlu0 %v5937_v5, %s4774_s28  ;;  %1995 = vrot.lane.b32.xlu1 %v5929_v1, %s4770_s24 }
 0x5a5   :  { %v2062_v63 = vpop.permute.xlu0 %2061  ;;  %v1980_v46 = vpop.permute.xlu1 %1979 }
 0x5a6   :  { %2114 = vst.msk [vmem:[#allocation4 + $0x38] sm:$0xff] %vm432_vm8, %v2062_v63 }
 0x5a7   :  { %2033 = vst.msk [vmem:[#allocation4 + $0x30] sm:$0xff] %vm411_vm7, %v1980_v46  ;;  %2157 = vrot.lane.b32.xlu0 %v5937_v5, %s4771_s25  ;;  %2075 = vrot.lane.b32.xlu1 %v5929_v1, %s4774_s28 }
 0x5a9   :  { %v2142_v49 = vpop.permute.xlu0 %2141  ;;  %v2060_v30 = vpop.permute.xlu1 %2059 }
 0x5aa   :  { %2194 = vst.msk [vmem:[#allocation4 + $0x38] sm:$0xff] %vm453_vm9, %v2142_v49 }
 0x5ab   :  { %2113 = vst.msk [vmem:[#allocation4 + $0x30] sm:$0xff] %vm432_vm8, %v2060_v30  ;;  %1681 = vrot.lane.b32.xlu0 %v5955_v9, %s4767_s22  ;;  %2155 = vrot.lane.b32.xlu1 %v5929_v1, %s4771_s25 }
 0x5ad   :  { %v1666_v54 = vpop.permute.xlu0 %1665  ;;  %v2140_v57 = vpop.permute.xlu1 %2139 }
 0x5ae   :  { %1716 = vst.msk [vmem:[#allocation4 + $0x48] sm:$0xff] %vm327_vm3, %v1666_v54 }
 0x5af   :  { %2193 = vst.msk [vmem:[#allocation4 + $0x30] sm:$0xff] %vm453_vm9, %v2140_v57  ;;  %1761 = vrot.lane.b32.xlu0 %v5955_v9, %s4768_s1  ;;  %1679 = vrot.lane.b32.xlu1 %v5946_v4, %s4767_s22 }
 0x5b1   :  { %v1746_v5 = vpop.permute.xlu0 %1745  ;;  %v1664_v61 = vpop.permute.xlu1 %1663  ;;  %v2214_v3 = vld [vmem:[#allocation4 + $0x38] sm:$0xff] }
 0x5b2   :  { %1796 = vst.msk [vmem:[#allocation4 + $0x48] sm:$0xff] %vm348_vm4, %v1746_v5  ;;  %v2354_v1 = vadd.f32 %v5810_v19, %v2214_v3 }
 0x5b3   :  { %1715 = vst.msk [vmem:[#allocation4 + $0x40] sm:$0xff] %vm327_vm3, %v1664_v61  ;;  %1841 = vrot.lane.b32.xlu0 %v5955_v9, %s4769_s23  ;;  %1759 = vrot.lane.b32.xlu1 %v5946_v4, %s4768_s1 }
 0x5b4   :  { %v6227_v6 = vmax.f32 %v2354_v1, 0.0 }
 0x5b5   :  { %v1826_v58 = vpop.permute.xlu0 %1825  ;;  %v1744_v7 = vpop.permute.xlu1 %1743 }
 0x5b6   :  { %v2213_v56 = vld [vmem:[#allocation4 + $0x30] sm:$0xff]  ;;  %1876 = vst.msk [vmem:[#allocation4 + $0x48] sm:$0xff] %vm369_vm5, %v1826_v58 }
 0x5b7   :  { %1795 = vst.msk [vmem:[#allocation4 + $0x40] sm:$0xff] %vm348_vm4, %v1744_v7  ;;  %v2353_v19 = vadd.f32 %v5817_v22, %v2213_v56  ;;  %1921 = vrot.lane.b32.xlu0 %v5955_v9, %s4772_s26  ;;  %1839 = vrot.lane.b32.xlu1 %v5946_v4, %s4769_s23 }
 0x5b8   :  { %2395 = vst.msk [vmem:[#allocation5 + $0x38] sm:$0xff] %vm2387_vm15, %v6227_v6 }
 0x5b9   :  { %v6238_v17 = vmax.f32 %v2353_v19, 0.0  ;;  %v1906_v8 = vpop.permute.xlu0 %1905  ;;  %v1824_v20 = vpop.permute.xlu1 %1823 }
 0x5ba   :  { %1956 = vst.msk [vmem:[#allocation4 + $0x48] sm:$0xff] %vm390_vm6, %v1906_v8 }
 0x5bb   :  { %1875 = vst.msk [vmem:[#allocation4 + $0x40] sm:$0xff] %vm369_vm5, %v1824_v20  ;;  %2001 = vrot.lane.b32.xlu0 %v5955_v9, %s4770_s24  ;;  %1919 = vrot.lane.b32.xlu1 %v5946_v4, %s4772_s26 }
 0x5bc   :  { %2394 = vst.msk [vmem:[#allocation5 + $0x30] sm:$0xff] %vm2387_vm15, %v6238_v17 }
 0x5bd   :  { %v1986_v22 = vpop.permute.xlu0 %1985  ;;  %v1904_v39 = vpop.permute.xlu1 %1903 }
 0x5be   :  { %2036 = vst.msk [vmem:[#allocation4 + $0x48] sm:$0xff] %vm411_vm7, %v1986_v22 }
 0x5bf   :  { %1955 = vst.msk [vmem:[#allocation4 + $0x40] sm:$0xff] %vm390_vm6, %v1904_v39  ;;  %2081 = vrot.lane.b32.xlu0 %v5955_v9, %s4774_s28  ;;  %1999 = vrot.lane.b32.xlu1 %v5946_v4, %s4770_s24 }
 0x5c1   :  { %v2066_v41 = vpop.permute.xlu0 %2065  ;;  %v1984_v42 = vpop.permute.xlu1 %1983 }
 0x5c2   :  { %2116 = vst.msk [vmem:[#allocation4 + $0x48] sm:$0xff] %vm432_vm8, %v2066_v41 }
 0x5c3   :  { %2035 = vst.msk [vmem:[#allocation4 + $0x40] sm:$0xff] %vm411_vm7, %v1984_v42  ;;  %2161 = vrot.lane.b32.xlu0 %v5955_v9, %s4771_s25  ;;  %2079 = vrot.lane.b32.xlu1 %v5946_v4, %s4774_s28 }
 0x5c5   :  { %v2146_v45 = vpop.permute.xlu0 %2145  ;;  %v2064_v47 = vpop.permute.xlu1 %2063 }
 0x5c6   :  { %2196 = vst.msk [vmem:[#allocation4 + $0x48] sm:$0xff] %vm453_vm9, %v2146_v45 }
 0x5c7   :  { %2115 = vst.msk [vmem:[#allocation4 + $0x40] sm:$0xff] %vm432_vm8, %v2064_v47  ;;  %1685 = vrot.lane.b32.xlu0 %v5973_v14, %s4767_s22  ;;  %2159 = vrot.lane.b32.xlu1 %v5946_v4, %s4771_s25 }
 0x5c9   :  { %v1670_v2 = vpop.permute.xlu0 %1669  ;;  %v2144_v15 = vpop.permute.xlu1 %2143 }
 0x5ca   :  { %1718 = vst.msk [vmem:[#allocation4 + $0x58] sm:$0xff] %vm327_vm3, %v1670_v2 }
 0x5cb   :  { %2195 = vst.msk [vmem:[#allocation4 + $0x40] sm:$0xff] %vm453_vm9, %v2144_v15  ;;  %1765 = vrot.lane.b32.xlu0 %v5973_v14, %s4768_s1  ;;  %1683 = vrot.lane.b32.xlu1 %v5964_v13, %s4767_s22 }
 0x5cd   :  { %v1750_v9 = vpop.permute.xlu0 %1749  ;;  %v1668_v48 = vpop.permute.xlu1 %1667  ;;  %v2216_v18 = vld [vmem:[#allocation4 + $0x48] sm:$0xff] }
 0x5ce   :  { %1798 = vst.msk [vmem:[#allocation4 + $0x58] sm:$0xff] %vm348_vm4, %v1750_v9  ;;  %v2356_v4 = vadd.f32 %v5819_v10, %v2216_v18 }
 0x5cf   :  { %1717 = vst.msk [vmem:[#allocation4 + $0x50] sm:$0xff] %vm327_vm3, %v1668_v48  ;;  %1845 = vrot.lane.b32.xlu0 %v5973_v14, %s4769_s23  ;;  %1763 = vrot.lane.b32.xlu1 %v5964_v13, %s4768_s1 }
 0x5d0   :  { %v6279_v50 = vmax.f32 %v2356_v4, 0.0 }
 0x5d1   :  { %v1830_v21 = vpop.permute.xlu0 %1829  ;;  %v1748_v62 = vpop.permute.xlu1 %1747 }
 0x5d2   :  { %v2215_v24 = vld [vmem:[#allocation4 + $0x40] sm:$0xff]  ;;  %1878 = vst.msk [vmem:[#allocation4 + $0x58] sm:$0xff] %vm369_vm5, %v1830_v21 }
 0x5d3   :  { %1797 = vst.msk [vmem:[#allocation4 + $0x50] sm:$0xff] %vm348_vm4, %v1748_v62  ;;  %v2355_v10 = vadd.f32 %v5821_v23, %v2215_v24  ;;  %1925 = vrot.lane.b32.xlu0 %v5973_v14, %s4772_s26  ;;  %1843 = vrot.lane.b32.xlu1 %v5964_v13, %s4769_s23 }
 0x5d4   :  { %2397 = vst.msk [vmem:[#allocation5 + $0x48] sm:$0xff] %vm2387_vm15, %v6279_v50 }
 0x5d5   :  { %v6290_v27 = vmax.f32 %v2355_v10, 0.0  ;;  %v1910_v60 = vpop.permute.xlu0 %1909  ;;  %v1828_v31 = vpop.permute.xlu1 %1827 }
 0x5d6   :  { %1958 = vst.msk [vmem:[#allocation4 + $0x58] sm:$0xff] %vm390_vm6, %v1910_v60 }
 0x5d7   :  { %1877 = vst.msk [vmem:[#allocation4 + $0x50] sm:$0xff] %vm369_vm5, %v1828_v31  ;;  %2005 = vrot.lane.b32.xlu0 %v5973_v14, %s4770_s24  ;;  %1923 = vrot.lane.b32.xlu1 %v5964_v13, %s4772_s26 }
 0x5d8   :  { %2396 = vst.msk [vmem:[#allocation5 + $0x40] sm:$0xff] %vm2387_vm15, %v6290_v27 }
 0x5d9   :  { %v1990_v23 = vpop.permute.xlu0 %1989  ;;  %v1908_v35 = vpop.permute.xlu1 %1907 }
 0x5da   :  { %2038 = vst.msk [vmem:[#allocation4 + $0x58] sm:$0xff] %vm411_vm7, %v1990_v23  ;;  %v2749_v23 = vld [vmem:[%s7056_s4 + $0x8] sm:$0xff] }
 0x5db   :  { %1957 = vst.msk [vmem:[#allocation4 + $0x50] sm:$0xff] %vm390_vm6, %v1908_v35  ;;  %2085 = vrot.lane.b32.xlu0 %v5973_v14, %s4774_s28  ;;  %2003 = vrot.lane.b32.xlu1 %v5964_v13, %s4770_s24 }
 0x5dc   :  { %3072 = vmatprep.mubr.f32.mxu1 %v2749_v23 }
 0x5dd   :  { %v2070_v53 = vpop.permute.xlu0 %2069  ;;  %v1988_v11 = vpop.permute.xlu1 %1987 }
 0x5de   :  { %2118 = vst.msk [vmem:[#allocation4 + $0x58] sm:$0xff] %vm432_vm8, %v2070_v53 }
 0x5df   :  { %2037 = vst.msk [vmem:[#allocation4 + $0x50] sm:$0xff] %vm411_vm7, %v1988_v11  ;;  %2165 = vrot.lane.b32.xlu0 %v5973_v14, %s4771_s25  ;;  %2083 = vrot.lane.b32.xlu1 %v5964_v13, %s4774_s28 }
 0x5e1   :  { %v2150_v55 = vpop.permute.xlu0 %2149  ;;  %v2068_v40 = vpop.permute.xlu1 %2067 }
 0x5e2   :  { %2198 = vst.msk [vmem:[#allocation4 + $0x58] sm:$0xff] %vm453_vm9, %v2150_v55 }
 0x5e3   :  { %2117 = vst.msk [vmem:[#allocation4 + $0x50] sm:$0xff] %vm432_vm8, %v2068_v40  ;;  %2430 = vrot.lane.b32.xlu0 %v6080_v59, %s4767_s22  ;;  %2163 = vrot.lane.b32.xlu1 %v5964_v13, %s4771_s25 }
 0x5e5   :  { %v1674_v16 = vpop.permute.xlu0 %1673  ;;  %v2148_v43 = vpop.permute.xlu1 %2147 }
 0x5e6   :  { %1720 = vst.msk [vmem:[#allocation4 + $0x68] sm:$0xff] %vm327_vm3, %v1674_v16 }
 0x5e7   :  { %2197 = vst.msk [vmem:[#allocation4 + $0x50] sm:$0xff] %vm453_vm9, %v2148_v43  ;;  %2510 = vrot.lane.b32.xlu0 %v6080_v59, %s4768_s1  ;;  %2428 = vrot.lane.b32.xlu1 %v6070_v52, %s4767_s22 }
 0x5e9   :  { %v1754_v14 = vpop.permute.xlu0 %1753  ;;  %v1672_v63 = vpop.permute.xlu1 %1671  ;;  %v2218_v46 = vld [vmem:[#allocation4 + $0x58] sm:$0xff] }
 0x5ea   :  { %1800 = vst.msk [vmem:[#allocation4 + $0x68] sm:$0xff] %vm348_vm4, %v1754_v14  ;;  %v2358_v13 = vadd.f32 %v5823_v25, %v2218_v46 }
 0x5eb   :  { %1719 = vst.msk [vmem:[#allocation4 + $0x60] sm:$0xff] %vm327_vm3, %v1672_v63  ;;  %2590 = vrot.lane.b32.xlu0 %v6080_v59, %s4769_s23  ;;  %2508 = vrot.lane.b32.xlu1 %v6070_v52, %s4768_s1 }
 0x5ec   :  { %v6331_v49 = vmax.f32 %v2358_v13, 0.0 }
 0x5ed   :  { %v1834_v30 = vpop.permute.xlu0 %1833  ;;  %v1752_v54 = vpop.permute.xlu1 %1751 }
 0x5ee   :  { %v2217_v57 = vld [vmem:[#allocation4 + $0x50] sm:$0xff]  ;;  %1880 = vst.msk [vmem:[#allocation4 + $0x68] sm:$0xff] %vm369_vm5, %v1834_v30 }
 0x5ef   :  { %1799 = vst.msk [vmem:[#allocation4 + $0x60] sm:$0xff] %vm348_vm4, %v1752_v54  ;;  %v2357_v25 = vadd.f32 %v5825_v26, %v2217_v57  ;;  %2670 = vrot.lane.b32.xlu0 %v6080_v59, %s4772_s26  ;;  %2588 = vrot.lane.b32.xlu1 %v6070_v52, %s4769_s23 }
 0x5f0   :  { %2399 = vst.msk [vmem:[#allocation5 + $0x58] sm:$0xff] %vm2387_vm15, %v6331_v49 }
 0x5f1   :  { %v6342_v5 = vmax.f32 %v2357_v25, 0.0  ;;  %v1914_v61 = vpop.permute.xlu0 %1913  ;;  %v1832_v3 = vpop.permute.xlu1 %1831 }
 0x5f2   :  { %1960 = vst.msk [vmem:[#allocation4 + $0x68] sm:$0xff] %vm390_vm6, %v1914_v61 }
 0x5f3   :  { %1879 = vst.msk [vmem:[#allocation4 + $0x60] sm:$0xff] %vm369_vm5, %v1832_v3  ;;  %2434 = vrot.lane.b32.xlu0 %v6140_v44, %s4767_s22  ;;  %2668 = vrot.lane.b32.xlu1 %v6070_v52, %s4772_s26 }
 0x5f4   :  { %2398 = vst.msk [vmem:[#allocation5 + $0x50] sm:$0xff] %vm2387_vm15, %v6342_v5 }
 0x5f5   :  { %v1994_v26 = vpop.permute.xlu0 %1993  ;;  %v1912_v59 = vpop.permute.xlu1 %1911 }
 0x5f6   :  { %2040 = vst.msk [vmem:[#allocation4 + $0x68] sm:$0xff] %vm411_vm7, %v1994_v26 }
 0x5f7   :  { %1959 = vst.msk [vmem:[#allocation4 + $0x60] sm:$0xff] %vm390_vm6, %v1912_v59  ;;  %2514 = vrot.lane.b32.xlu0 %v6140_v44, %s4768_s1  ;;  %2432 = vrot.lane.b32.xlu1 %v6108_v0, %s4767_s22 }
 0x5f9   :  { %v2074_v1 = vpop.permute.xlu0 %2073  ;;  %v1992_v58 = vpop.permute.xlu1 %1991 }
 0x5fa   :  { %2120 = vst.msk [vmem:[#allocation4 + $0x68] sm:$0xff] %vm432_vm8, %v2074_v1 }
 0x5fb   :  { %2039 = vst.msk [vmem:[#allocation4 + $0x60] sm:$0xff] %vm411_vm7, %v1992_v58  ;;  %2594 = vrot.lane.b32.xlu0 %v6140_v44, %s4769_s23  ;;  %2512 = vrot.lane.b32.xlu1 %v6108_v0, %s4768_s1 }
 0x5fd   :  { %v2154_v52 = vpop.permute.xlu0 %2153  ;;  %v2072_v7 = vpop.permute.xlu1 %2071 }
 0x5fe   :  { %2200 = vst.msk [vmem:[#allocation4 + $0x68] sm:$0xff] %vm453_vm9, %v2154_v52 }
 0x5ff   :  { %2119 = vst.msk [vmem:[#allocation4 + $0x60] sm:$0xff] %vm432_vm8, %v2072_v7  ;;  %2674 = vrot.lane.b32.xlu0 %v6140_v44, %s4772_s26  ;;  %2592 = vrot.lane.b32.xlu1 %v6108_v0, %s4769_s23 }
 0x601   :  { %v1678_v56 = vpop.permute.xlu0 %1677  ;;  %v2152_v19 = vpop.permute.xlu1 %2151 }
 0x602   :  { %1722 = vst.msk [vmem:[#allocation4 + $0x78] sm:$0xff] %vm327_vm3, %v1678_v56 }
 0x603   :  { %2199 = vst.msk [vmem:[#allocation4 + $0x60] sm:$0xff] %vm453_vm9, %v2152_v19  ;;  %2438 = vrot.lane.b32.xlu0 %v6175_v51, %s4767_s22  ;;  %2672 = vrot.lane.b32.xlu1 %v6108_v0, %s4772_s26 }
 0x605   :  { %v1758_v8 = vpop.permute.xlu0 %1757  ;;  %v1676_v20 = vpop.permute.xlu1 %1675  ;;  %v2220_v22 = vld [vmem:[#allocation4 + $0x68] sm:$0xff] }
 0x606   :  { %1802 = vst.msk [vmem:[#allocation4 + $0x78] sm:$0xff] %vm348_vm4, %v1758_v8  ;;  %v2360_v44 = vadd.f32 %v5827_v28, %v2220_v22 }
 0x607   :  { %1721 = vst.msk [vmem:[#allocation4 + $0x70] sm:$0xff] %vm327_vm3, %v1676_v20  ;;  %2518 = vrot.lane.b32.xlu0 %v6175_v51, %s4768_s1  ;;  %2436 = vrot.lane.b32.xlu1 %v6186_v37, %s4767_s22 }
 0x608   :  { %v6383_v39 = vmax.f32 %v2360_v44, 0.0 }
 0x609   :  { %v1838_v41 = vpop.permute.xlu0 %1837  ;;  %v1756_v42 = vpop.permute.xlu1 %1755 }
 0x60a   :  { %v2219_v0 = vld [vmem:[#allocation4 + $0x60] sm:$0xff]  ;;  %1882 = vst.msk [vmem:[#allocation4 + $0x78] sm:$0xff] %vm369_vm5, %v1838_v41 }
 0x60b   :  { %1801 = vst.msk [vmem:[#allocation4 + $0x70] sm:$0xff] %vm348_vm4, %v1756_v42  ;;  %v2359_v28 = vadd.f32 %v5829_v29, %v2219_v0  ;;  %2598 = vrot.lane.b32.xlu0 %v6175_v51, %s4769_s23  ;;  %2516 = vrot.lane.b32.xlu1 %v6186_v37, %s4768_s1 }
 0x60c   :  { %2401 = vst.msk [vmem:[#allocation5 + $0x68] sm:$0xff] %vm2387_vm15, %v6383_v39 }
 0x60d   :  { %v6394_v45 = vmax.f32 %v2359_v28, 0.0  ;;  %v1918_v47 = vpop.permute.xlu0 %1917  ;;  %v1836_v2 = vpop.permute.xlu1 %1835  ;;  %v2818_v28 = vld [vmem:[#allocation5] sm:$0xff] }
 0x60e   :  { %1962 = vst.msk [vmem:[#allocation4 + $0x78] sm:$0xff] %vm390_vm6, %v1918_v47 }
 0x60f   :  { %1881 = vst.msk [vmem:[#allocation4 + $0x70] sm:$0xff] %vm369_vm5, %v1836_v2  ;;  %2442 = vrot.lane.b32.xlu0 %v6227_v6, %s4767_s22  ;;  %2596 = vrot.lane.b32.xlu1 %v6186_v37, %s4769_s23 }
 0x610   :  { %2400 = vst.msk [vmem:[#allocation5 + $0x60] sm:$0xff] %vm2387_vm15, %v6394_v45 }
 0x611   :  { %v1998_v29 = vpop.permute.xlu0 %1997  ;;  %v1916_v15 = vpop.permute.xlu1 %1915 }
 0x612   :  { %2042 = vst.msk [vmem:[#allocation4 + $0x78] sm:$0xff] %vm411_vm7, %v1998_v29 }
 0x613   :  { %1961 = vst.msk [vmem:[#allocation4 + $0x70] sm:$0xff] %vm390_vm6, %v1916_v15  ;;  %2522 = vrot.lane.b32.xlu0 %v6227_v6, %s4768_s1  ;;  %2440 = vrot.lane.b32.xlu1 %v6238_v17, %s4767_s22 }
 0x615   :  { %v2078_v9 = vpop.permute.xlu0 %2077  ;;  %v1996_v48 = vpop.permute.xlu1 %1995 }
 0x616   :  { %2122 = vst.msk [vmem:[#allocation4 + $0x78] sm:$0xff] %vm432_vm8, %v2078_v9 }
 0x617   :  { %2041 = vst.msk [vmem:[#allocation4 + $0x70] sm:$0xff] %vm411_vm7, %v1996_v48  ;;  %2446 = vrot.lane.b32.xlu0 %v6279_v50, %s4767_s22  ;;  %2520 = vrot.lane.b32.xlu1 %v6238_v17, %s4768_s1 }
 0x619   :  { %v2158_v18 = vpop.permute.xlu0 %2157  ;;  %v2076_v4 = vpop.permute.xlu1 %2075 }
 0x61a   :  { %2202 = vst.msk [vmem:[#allocation4 + $0x78] sm:$0xff] %vm453_vm9, %v2158_v18 }
 0x61b   :  { %2121 = vst.msk [vmem:[#allocation4 + $0x70] sm:$0xff] %vm432_vm8, %v2076_v4  ;;  %2526 = vrot.lane.b32.xlu0 %v6279_v50, %s4768_s1  ;;  %2444 = vrot.lane.b32.xlu1 %v6290_v27, %s4767_s22 }
 0x61d   :  { %v1682_v21 = vpop.permute.xlu0 %1681  ;;  %v2156_v62 = vpop.permute.xlu1 %2155 }
 0x61e   :  { %1724 = vst.msk [vmem:[#allocation4 + $0x88] sm:$0xff] %vm327_vm3, %v1682_v21 }
 0x61f   :  { %2201 = vst.msk [vmem:[#allocation4 + $0x70] sm:$0xff] %vm453_vm9, %v2156_v62  ;;  %2450 = vrot.lane.b32.xlu0 %v6331_v49, %s4767_s22  ;;  %2524 = vrot.lane.b32.xlu1 %v6290_v27, %s4768_s1 }
 0x621   :  { %v1762_v24 = vpop.permute.xlu0 %1761  ;;  %v1680_v10 = vpop.permute.xlu1 %1679  ;;  %v2222_v60 = vld [vmem:[#allocation4 + $0x78] sm:$0xff] }
 0x622   :  { %1804 = vst.msk [vmem:[#allocation4 + $0x88] sm:$0xff] %vm348_vm4, %v1762_v24  ;;  %v2362_v31 = vadd.f32 %v5831_v12, %v2222_v60 }
 0x623   :  { %1723 = vst.msk [vmem:[#allocation4 + $0x80] sm:$0xff] %vm327_vm3, %v1680_v10  ;;  %2530 = vrot.lane.b32.xlu0 %v6331_v49, %s4768_s1  ;;  %2448 = vrot.lane.b32.xlu1 %v6342_v5, %s4767_s22 }
 0x624   :  { %v6438_v35 = vmax.f32 %v2362_v31, 0.0 }
 0x625   :  { %v1842_v53 = vpop.permute.xlu0 %1841  ;;  %v1760_v11 = vpop.permute.xlu1 %1759 }
 0x626   :  { %v2221_v55 = vld [vmem:[#allocation4 + $0x70] sm:$0xff]  ;;  %1884 = vst.msk [vmem:[#allocation4 + $0x88] sm:$0xff] %vm369_vm5, %v1842_v53 }
 0x627   :  { %1803 = vst.msk [vmem:[#allocation4 + $0x80] sm:$0xff] %vm348_vm4, %v1760_v11  ;;  %v2361_v12 = vadd.f32 %v5833_v32, %v2221_v55  ;;  %2454 = vrot.lane.b32.xlu0 %v6383_v39, %s4767_s22  ;;  %2528 = vrot.lane.b32.xlu1 %v6342_v5, %s4768_s1 }
 0x628   :  { %2403 = vst.msk [vmem:[#allocation5 + $0x78] sm:$0xff] %vm2387_vm15, %v6438_v35 }
 0x629   :  { %v6449_v40 = vmax.f32 %v2361_v12, 0.0  ;;  %v1922_v16 = vpop.permute.xlu0 %1921  ;;  %v1840_v43 = vpop.permute.xlu1 %1839 }
 0x62a   :  { %1964 = vst.msk [vmem:[#allocation4 + $0x88] sm:$0xff] %vm390_vm6, %v1922_v16 }
 0x62b   :  { %1883 = vst.msk [vmem:[#allocation4 + $0x80] sm:$0xff] %vm369_vm5, %v1840_v43  ;;  %2534 = vrot.lane.b32.xlu0 %v6383_v39, %s4768_s1  ;;  %2452 = vrot.lane.b32.xlu1 %v6394_v45, %s4767_s22 }
 0x62c   :  { %2402 = vst.msk [vmem:[#allocation5 + $0x70] sm:$0xff] %vm2387_vm15, %v6449_v40 }
 0x62d   :  { %v2002_v32 = vpop.permute.xlu0 %2001  ;;  %v1920_v14 = vpop.permute.xlu1 %1919 }
 0x62e   :  { %2044 = vst.msk [vmem:[#allocation4 + $0x88] sm:$0xff] %vm411_vm7, %v2002_v32 }
 0x62f   :  { %1963 = vst.msk [vmem:[#allocation4 + $0x80] sm:$0xff] %vm390_vm6, %v1920_v14  ;;  %2458 = vrot.lane.b32.xlu0 %v6438_v35, %s4767_s22  ;;  %2532 = vrot.lane.b32.xlu1 %v6394_v45, %s4768_s1 }
 0x631   :  { %v2082_v63 = vpop.permute.xlu0 %2081  ;;  %v2000_v46 = vpop.permute.xlu1 %1999 }
 0x632   :  { %2124 = vst.msk [vmem:[#allocation4 + $0x88] sm:$0xff] %vm432_vm8, %v2082_v63  ;;  %v2820_v63 = vld [vmem:[#allocation5 + $0x10] sm:$0xff] }
 0x633   :  { %2043 = vst.msk [vmem:[#allocation4 + $0x80] sm:$0xff] %vm411_vm7, %v2000_v46  ;;  %2538 = vrot.lane.b32.xlu0 %v6438_v35, %s4768_s1  ;;  %2456 = vrot.lane.b32.xlu1 %v6449_v40, %s4767_s22 }
 0x635   :  { %v2162_v13 = vpop.permute.xlu0 %2161  ;;  %v2080_v30 = vpop.permute.xlu1 %2079 }
 0x636   :  { %2204 = vst.msk [vmem:[#allocation4 + $0x88] sm:$0xff] %vm453_vm9, %v2162_v13 }
 0x637   :  { %2123 = vst.msk [vmem:[#allocation4 + $0x80] sm:$0xff] %vm432_vm8, %v2080_v30  ;;  %2536 = vrot.lane.b32.xlu1 %v6449_v40, %s4768_s1 }
 0x639   :  { %v1686_v54 = vpop.permute.xlu0 %1685  ;;  %v2160_v57 = vpop.permute.xlu1 %2159 }
 0x63a   :  { %1726 = vst.msk [vmem:[#allocation4 + $0x98] sm:$0xff] %vm327_vm3, %v1686_v54  ;;  %v2822_v54 = vld [vmem:[#allocation5 + $0x20] sm:$0xff] }
 0x63b   :  { %2203 = vst.msk [vmem:[#allocation4 + $0x80] sm:$0xff] %vm453_vm9, %v2160_v57 }
 0x63d   :  { %v1766_v25 = vpop.permute.xlu0 %1765  ;;  %v1684_v61 = vpop.permute.xlu1 %1683  ;;  %v2224_v3 = vld [vmem:[#allocation4 + $0x88] sm:$0xff] }
 0x63e   :  { %1806 = vst.msk [vmem:[#allocation4 + $0x98] sm:$0xff] %vm348_vm4, %v1766_v25  ;;  %v2364_v26 = vadd.f32 %v5835_v33, %v2224_v3 }
 0x63f   :  { %1725 = vst.msk [vmem:[#allocation4 + $0x90] sm:$0xff] %vm327_vm3, %v1684_v61  ;;  %vm3694_vm3 = vcmask 523264  }
 0x640   :  { %v6480_v59 = vmax.f32 %v2364_v26, 0.0  ;;  %v2824_v26 = vld [vmem:[#allocation5 + $0x30] sm:$0xff] }
 0x641   :  { %v1846_v1 = vpop.permute.xlu0 %1845  ;;  %v1764_v58 = vpop.permute.xlu1 %1763 }
 0x642   :  { %v2223_v52 = vld [vmem:[#allocation4 + $0x80] sm:$0xff]  ;;  %1886 = vst.msk [vmem:[#allocation4 + $0x98] sm:$0xff] %vm369_vm5, %v1846_v1  ;;  %2462 = vrot.lane.b32.xlu0 %v6480_v59, %s4767_s22 }
 0x643   :  { %1805 = vst.msk [vmem:[#allocation4 + $0x90] sm:$0xff] %vm348_vm4, %v1764_v58  ;;  %v2363_v7 = vadd.f32 %v5837_v36, %v2223_v52  ;;  %v2819_v36 = vld [vmem:[#allocation5 + $0x8] sm:$0xff]  ;;  %vm3977_vm4 = vcmask 58368  }
 0x644   :  { %2405 = vst.msk [vmem:[#allocation5 + $0x88] sm:$0xff] %vm2387_vm15, %v6480_v59  ;;  %v4490_v47 = vpack.c.bf16 %v2819_v36, %v2818_v28 }
 0x645   :  { %v6489_v56 = vmax.f32 %v2363_v7, 0.0  ;;  %v1926_v33 = vpop.permute.xlu0 %1925  ;;  %v1844_v19 = vpop.permute.xlu1 %1843 }
 0x646   :  { %1966 = vst.msk [vmem:[#allocation4 + $0x98] sm:$0xff] %vm390_vm6, %v1926_v33  ;;  %2542 = vrot.lane.b32.xlu0 %v6480_v59, %s4768_s1  ;;  %v2825_v33 = vld [vmem:[#allocation5 + $0x38] sm:$0xff] }
 0x647   :  { %1885 = vst.msk [vmem:[#allocation4 + $0x90] sm:$0xff] %vm369_vm5, %v1844_v19  ;;  %2460 = vrot.lane.b32.xlu1 %v6489_v56, %s4767_s22  ;;  %v4502_v19 = vpack.c.bf16 %v2825_v33, %v2824_v26  ;;  %v2924_v26 = vld [vmem:[%s7057_s5 + $0x30] sm:$0xff] }
 0x648   :  { %2404 = vst.msk [vmem:[#allocation5 + $0x80] sm:$0xff] %vm2387_vm15, %v6489_v56 }
 0x649   :  { %v2006_v8 = vpop.permute.xlu0 %2005  ;;  %v1924_v20 = vpop.permute.xlu1 %1923 }
 0x64a   :  { %2046 = vst.msk [vmem:[#allocation4 + $0x98] sm:$0xff] %vm411_vm7, %v2006_v8 }
 0x64b   :  { %1965 = vst.msk [vmem:[#allocation4 + $0x90] sm:$0xff] %vm390_vm6, %v1924_v20  ;;  %2540 = vrot.lane.b32.xlu1 %v6489_v56, %s4768_s1  ;;  %v2835_v42 = vld [vmem:[#allocation5 + $0x88] sm:$0xff] }
 0x64d   :  { %v2086_v22 = vpop.permute.xlu0 %2085  ;;  %v2004_v44 = vpop.permute.xlu1 %2003 }
 0x64e   :  { %2126 = vst.msk [vmem:[#allocation4 + $0x98] sm:$0xff] %vm432_vm8, %v2086_v22 }
 0x64f   :  { %v2834_v41 = vld [vmem:[#allocation5 + $0x80] sm:$0xff]  ;;  %2045 = vst.msk [vmem:[#allocation4 + $0x90] sm:$0xff] %vm411_vm7, %v2004_v44 }
 0x650   :  { %v4488_v0 = vpack.c.bf16 %v2835_v42, %v2834_v41 }
 0x651   :  { %v2166_v2 = vpop.permute.xlu0 %2165  ;;  %v2084_v29 = vpop.permute.xlu1 %2083 }
 0x652   :  { %4489 = vmatprep.subr.bf16.mxu1 %v4488_v0  ;;  %2206 = vst.msk [vmem:[#allocation4 + $0x98] sm:$0xff] %vm453_vm9, %v2166_v2 }
 0x653   :  { %4491 = vmatpush3.bf16.msra.mxu1 %v4490_v47  ;;  %2125 = vst.msk [vmem:[#allocation4 + $0x90] sm:$0xff] %vm432_vm8, %v2084_v29  ;;  %v2827_v47 = vld [vmem:[#allocation5 + $0x48] sm:$0xff] }
 0x655   :  { %v2431_v15 = vpop.permute.xlu0 %2430  ;;  %v2164_v9 = vpop.permute.xlu1 %2163 }
 0x656   :  { %2489 = vst.msk [vmem:[#allocation5 + $0xa8] sm:$0xff] %vm2387_vm15, %v2431_v15 }
 0x657   :  { %2205 = vst.msk [vmem:[#allocation4 + $0x90] sm:$0xff] %vm453_vm9, %v2164_v9  ;;  %v2828_v9 = vld [vmem:[#allocation5 + $0x50] sm:$0xff] }
 0x659   :  { %v2511_v48 = vpop.permute.xlu0 %2510  ;;  %v2429_v18 = vpop.permute.xlu1 %2428  ;;  %v2226_v4 = vld [vmem:[#allocation4 + $0x98] sm:$0xff] }
 0x65a   :  { %2569 = vst.msk [vmem:[#allocation5 + $0x148] sm:$0xff] %vm2387_vm15, %v2511_v48  ;;  %2488 = vst.msk [vmem:[#allocation5 + $0xa0] sm:$0xff] %vm2387_vm15, %v2429_v18  ;;  %v2366_v21 = vadd.f32 %v5839_v34, %v2226_v4 }
 0x65c   :  { %v6512_v62 = vmax.f32 %v2366_v21, 0.0 }
 0x65d   :  { %v2591_v24 = vpop.permute.xlu0 %2590  ;;  %v2509_v10 = vpop.permute.xlu1 %2508  ;;  %v2839_v30 = vld [vmem:[#allocation5 + $0xa8] sm:$0xff] }
 0x65e   :  { %v2225_v60 = vld [vmem:[#allocation4 + $0x90] sm:$0xff]  ;;  %2649 = vst.msk [vmem:[#allocation5 + $0x1e8] sm:$0xff] %vm2387_vm15, %v2591_v24  ;;  %2568 = vst.msk [vmem:[#allocation5 + $0x140] sm:$0xff] %vm2387_vm15, %v2509_v10  ;;  %2466 = vrot.lane.b32.xlu0 %v6512_v62, %s4767_s22 }
 0x65f   :  { %2407 = vst.msk [vmem:[#allocation5 + $0x98] sm:$0xff] %vm2387_vm15, %v6512_v62  ;;  %v2365_v31 = vadd.f32 %v5841_v38, %v2225_v60  ;;  %v2821_v38 = vld [vmem:[#allocation5 + $0x18] sm:$0xff] }
 0x660   :  { %v4494_v13 = vpack.c.bf16 %v2821_v38, %v2820_v63 }
 0x661   :  { %v6521_v23 = vmax.f32 %v2365_v31, 0.0  ;;  %v2671_v34 = vpop.permute.xlu0 %2670  ;;  %v2589_v53 = vpop.permute.xlu1 %2588  ;;  %v2838_v46 = vld [vmem:[#allocation5 + $0xa0] sm:$0xff] }
 0x662   :  { %2729 = vst.msk [vmem:[#allocation5 + $0x288] sm:$0xff] %vm2387_vm15, %v2671_v34  ;;  %2648 = vst.msk [vmem:[#allocation5 + $0x1e0] sm:$0xff] %vm2387_vm15, %v2589_v53  ;;  %2546 = vrot.lane.b32.xlu0 %v6512_v62, %s4768_s1  ;;  %v4496_v61 = vpack.c.bf16 %v2839_v30, %v2838_v46  ;;  %v2830_v31 = vld [vmem:[#allocation5 + $0x60] sm:$0xff] }
 0x663   :  { %2464 = vrot.lane.b32.xlu1 %v6521_v23, %s4767_s22  ;;  %2406 = vst.msk [vmem:[#allocation5 + $0x90] sm:$0xff] %vm2387_vm15, %v6521_v23 }
 0x665   :  { %v2435_v11 = vpop.permute.xlu0 %2434  ;;  %v2669_v55 = vpop.permute.xlu1 %2668 }
 0x666   :  { %2491 = vst.msk [vmem:[#allocation5 + $0xb8] sm:$0xff] %vm2387_vm15, %v2435_v11  ;;  %2728 = vst.msk [vmem:[#allocation5 + $0x280] sm:$0xff] %vm2387_vm15, %v2669_v55  ;;  %2602 = vrot.lane.b32.xlu0 %v6227_v6, %s4769_s23  ;;  %v2837_v32 = vld [vmem:[#allocation5 + $0x98] sm:$0xff] }
 0x667   :  { %2544 = vrot.lane.b32.xlu1 %v6521_v23, %s4768_s1 }
 0x669   :  { %v2515_v12 = vpop.permute.xlu0 %2514  ;;  %v2433_v16 = vpop.permute.xlu1 %2432 }
 0x66a   :  { %v2836_v43 = vld [vmem:[#allocation5 + $0x90] sm:$0xff]  ;;  %2571 = vst.msk [vmem:[#allocation5 + $0x158] sm:$0xff] %vm2387_vm15, %v2515_v12  ;;  %2490 = vst.msk [vmem:[#allocation5 + $0xb0] sm:$0xff] %vm2387_vm15, %v2433_v16  ;;  %2678 = vrot.lane.b32.xlu0 %v6175_v51, %s4772_s26  ;;  %v2823_v51 = vld [vmem:[#allocation5 + $0x28] sm:$0xff] }
 0x66b   :  { %2600 = vrot.lane.b32.xlu1 %v6238_v17, %s4769_s23  ;;  %v4492_v14 = vpack.c.bf16 %v2837_v32, %v2836_v43  ;;  %v4498_v3 = vpack.c.bf16 %v2823_v51, %v2822_v54  ;;  %v2832_v43 = vld [vmem:[#allocation5 + $0x70] sm:$0xff]  ;;  %v2925_v54 = vld [vmem:[%s7057_s5 + $0x38] sm:$0xff] }
 0x66d   :  { %4493 = vmatprep.subr.bf16.mxu1 %v4492_v14  ;;  %v2595_v57 = vpop.permute.xlu0 %2594  ;;  %v2513_v25 = vpop.permute.xlu1 %2512  ;;  %v2841_v7 = vld [vmem:[#allocation5 + $0xb8] sm:$0xff] }
 0x66e   :  { %4495 = vmatpush3.bf16.msra.mxu1 %v4494_v13  ;;  %2651 = vst.msk [vmem:[#allocation5 + $0x1f8] sm:$0xff] %vm2387_vm15, %v2595_v57  ;;  %2570 = vst.msk [vmem:[#allocation5 + $0x150] sm:$0xff] %vm2387_vm15, %v2513_v25  ;;  %2606 = vrot.lane.b32.xlu0 %v6279_v50, %s4769_s23 }
 0x66f   :  { %2676 = vrot.lane.b32.xlu1 %v6186_v37, %s4772_s26  ;;  %4497 = vmatprep.subr.bf16.mxu1 %v4496_v61 }
 0x671   :  { %v2675_v1 = vpop.permute.xlu0 %2674  ;;  %v2593_v58 = vpop.permute.xlu1 %2592  ;;  %v2840_v52 = vld [vmem:[#allocation5 + $0xb0] sm:$0xff] }
 0x672   :  { %4499 = vmatpush3.bf16.msra.mxu1 %v4498_v3  ;;  %2731 = vst.msk [vmem:[#allocation5 + $0x298] sm:$0xff] %vm2387_vm15, %v2675_v1  ;;  %2650 = vst.msk [vmem:[#allocation5 + $0x1f0] sm:$0xff] %vm2387_vm15, %v2593_v58  ;;  %2682 = vrot.lane.b32.xlu0 %v6227_v6, %s4772_s26  ;;  %v4500_v37 = vpack.c.bf16 %v2841_v7, %v2840_v52  ;;  %v2927_v3 = vld [vmem:[%s7057_s5 + $0x48] sm:$0xff]  ;;  %v2755_v1 = vld [vmem:[%s7056_s4 + $0x38] sm:$0xff] }
 0x673   :  { %2604 = vrot.lane.b32.xlu1 %v6290_v27, %s4769_s23 }
 0x674   :  { %4501 = vmatprep.subr.bf16.mxu1 %v4500_v37 }
 0x675   :  { %v2439_v8 = vpop.permute.xlu0 %2438  ;;  %v2673_v20 = vpop.permute.xlu1 %2672 }
 0x676   :  { %4503 = vmatpush3.bf16.msra.mxu1 %v4502_v19  ;;  %2493 = vst.msk [vmem:[#allocation5 + $0xc8] sm:$0xff] %vm2387_vm15, %v2439_v8  ;;  %2730 = vst.msk [vmem:[#allocation5 + $0x290] sm:$0xff] %vm2387_vm15, %v2673_v20  ;;  %2610 = vrot.lane.b32.xlu0 %v6331_v49, %s4769_s23  ;;  %v2763_v19 = vld [vmem:[%s7056_s4 + $0x78] sm:$0xff]  ;;  %v2919_v20 = vld [vmem:[%s7057_s5 + $0x8] sm:$0xff] }
 0x677   :  { %2680 = vrot.lane.b32.xlu1 %v6238_v17, %s4772_s26  ;;  %v2826_v17 = vld [vmem:[#allocation5 + $0x40] sm:$0xff] }
 0x678   :  { %v4506_v2 = vpack.c.bf16 %v2827_v47, %v2826_v17  ;;  %v2770_v17 = vld [vmem:[%s7056_s4 + $0xb0] sm:$0xff] }
 0x679   :  { %v2519_v6 = vpop.permute.xlu0 %2518  ;;  %v2437_v36 = vpop.permute.xlu1 %2436 }
 0x67a   :  { %2573 = vst.msk [vmem:[#allocation5 + $0x168] sm:$0xff] %vm2387_vm15, %v2519_v6  ;;  %2492 = vst.msk [vmem:[#allocation5 + $0xc0] sm:$0xff] %vm2387_vm15, %v2437_v36  ;;  %2686 = vrot.lane.b32.xlu0 %v6279_v50, %s4772_s26  ;;  %v2926_v36 = vld [vmem:[%s7057_s5 + $0x40] sm:$0xff] }
 0x67b   :  { %2608 = vrot.lane.b32.xlu1 %v6342_v5, %s4769_s23 }
 0x67d   :  { %v2599_v22 = vpop.permute.xlu0 %2598  ;;  %v2517_v44 = vpop.permute.xlu1 %2516  ;;  %v2843_v50 = vld [vmem:[#allocation5 + $0xc8] sm:$0xff] }
 0x67e   :  { %2653 = vst.msk [vmem:[#allocation5 + $0x208] sm:$0xff] %vm2387_vm15, %v2599_v22  ;;  %2572 = vst.msk [vmem:[#allocation5 + $0x160] sm:$0xff] %vm2387_vm15, %v2517_v44  ;;  %2614 = vrot.lane.b32.xlu0 %v6383_v39, %s4769_s23  ;;  %v2762_v44 = vld [vmem:[%s7056_s4 + $0x70] sm:$0xff] }
 0x67f   :  { %2684 = vrot.lane.b32.xlu1 %v6290_v27, %s4772_s26 }
 0x681   :  { %v2443_v41 = vpop.permute.xlu0 %2442  ;;  %v2597_v42 = vpop.permute.xlu1 %2596  ;;  %v2842_v0 = vld [vmem:[#allocation5 + $0xc0] sm:$0xff] }
 0x682   :  { %2495 = vst.msk [vmem:[#allocation5 + $0xd8] sm:$0xff] %vm2387_vm15, %v2443_v41  ;;  %2652 = vst.msk [vmem:[#allocation5 + $0x200] sm:$0xff] %vm2387_vm15, %v2597_v42  ;;  %2690 = vrot.lane.b32.xlu0 %v6331_v49, %s4772_s26  ;;  %v4504_v28 = vpack.c.bf16 %v2843_v50, %v2842_v0  ;;  %v2921_v41 = vld [vmem:[%s7057_s5 + $0x18] sm:$0xff]  ;;  %v2918_v42 = vld [vmem:[%s7057_s5] sm:$0xff] }
 0x683   :  { %2612 = vrot.lane.b32.xlu1 %v6394_v45, %s4769_s23  ;;  %v2769_v0 = vld [vmem:[%s7056_s4 + $0xa8] sm:$0xff] }
 0x684   :  { %4505 = vmatprep.subr.bf16.mxu1 %v4504_v28 }
 0x685   :  { %v2523_v27 = vpop.permute.xlu0 %2522  ;;  %4507 = vmatpush3.bf16.msra.mxu1 %v4506_v2  ;;  %v2441_v29 = vpop.permute.xlu1 %2440 }
 0x686   :  { %2575 = vst.msk [vmem:[#allocation5 + $0x178] sm:$0xff] %vm2387_vm15, %v2523_v27  ;;  %2494 = vst.msk [vmem:[#allocation5 + $0xd0] sm:$0xff] %vm2387_vm15, %v2441_v29  ;;  %2618 = vrot.lane.b32.xlu0 %v6438_v35, %s4769_s23  ;;  %v2777_v27 = vld [vmem:[%s7056_s4 + $0xe8] sm:$0xff] }
 0x687   :  { %2688 = vrot.lane.b32.xlu1 %v6342_v5, %s4772_s26 }
 0x689   :  { %v2447_v49 = vpop.permute.xlu0 %2446  ;;  %v2521_v15 = vpop.permute.xlu1 %2520  ;;  %v2845_v21 = vld [vmem:[#allocation5 + $0xd8] sm:$0xff] }
 0x68a   :  { %2497 = vst.msk [vmem:[#allocation5 + $0xe8] sm:$0xff] %vm2387_vm15, %v2447_v49  ;;  %2574 = vst.msk [vmem:[#allocation5 + $0x170] sm:$0xff] %vm2387_vm15, %v2521_v15  ;;  %2694 = vrot.lane.b32.xlu0 %v6383_v39, %s4772_s26  ;;  %v2829_v39 = vld [vmem:[#allocation5 + $0x58] sm:$0xff] }
 0x68b   :  { %2616 = vrot.lane.b32.xlu1 %v6449_v40, %s4769_s23  ;;  %v4510_v24 = vpack.c.bf16 %v2829_v39, %v2828_v9  ;;  %v2923_v49 = vld [vmem:[%s7057_s5 + $0x28] sm:$0xff]  ;;  %v2920_v9 = vld [vmem:[%s7057_s5 + $0x10] sm:$0xff]  ;;  %v2791_v39 = vld [vmem:[%s7056_s4 + $0x158] sm:$0xff] }
 0x68d   :  { %v2527_v48 = vpop.permute.xlu0 %2526  ;;  %v2445_v18 = vpop.permute.xlu1 %2444  ;;  %v2844_v4 = vld [vmem:[#allocation5 + $0xd0] sm:$0xff] }
 0x68e   :  { %2577 = vst.msk [vmem:[#allocation5 + $0x188] sm:$0xff] %vm2387_vm15, %v2527_v48  ;;  %2496 = vst.msk [vmem:[#allocation5 + $0xe0] sm:$0xff] %vm2387_vm15, %v2445_v18  ;;  %2622 = vrot.lane.b32.xlu0 %v6480_v59, %s4769_s23  ;;  %v4508_v5 = vpack.c.bf16 %v2845_v21, %v2844_v4  ;;  %v2776_v48 = vld [vmem:[%s7056_s4 + $0xe0] sm:$0xff] }
 0x68f   :  { %2692 = vrot.lane.b32.xlu1 %v6394_v45, %s4772_s26  ;;  %v2784_v18 = vld [vmem:[%s7056_s4 + $0x120] sm:$0xff] }
 0x690   :  { %4509 = vmatprep.subr.bf16.mxu1 %v4508_v5  ;;  %v2922_v21 = vld [vmem:[%s7057_s5 + $0x20] sm:$0xff]  ;;  %v2783_v5 = vld [vmem:[%s7056_s4 + $0x118] sm:$0xff] }
 0x691   :  { %v2451_v10 = vpop.permute.xlu0 %2450  ;;  %4511 = vmatpush3.bf16.msra.mxu1 %v4510_v24  ;;  %v2525_v60 = vpop.permute.xlu1 %2524  ;;  %v2847_v11 = vld [vmem:[#allocation5 + $0xe8] sm:$0xff] }
 0x692   :  { %2499 = vst.msk [vmem:[#allocation5 + $0xf8] sm:$0xff] %vm2387_vm15, %v2451_v10  ;;  %2576 = vst.msk [vmem:[#allocation5 + $0x180] sm:$0xff] %vm2387_vm15, %v2525_v60  ;;  %2698 = vrot.lane.b32.xlu0 %v6438_v35, %s4772_s26  ;;  %v2831_v35 = vld [vmem:[#allocation5 + $0x68] sm:$0xff]  ;;  %v2790_v60 = vld [vmem:[%s7056_s4 + $0x150] sm:$0xff] }
 0x693   :  { %2620 = vrot.lane.b32.xlu1 %v6489_v56, %s4769_s23  ;;  %v4514_v38 = vpack.c.bf16 %v2831_v35, %v2830_v31  ;;  %v2798_v31 = vld [vmem:[%s7056_s4 + $0x190] sm:$0xff] }
 0x695   :  { %v2531_v34 = vpop.permute.xlu0 %2530  ;;  %v2449_v45 = vpop.permute.xlu1 %2448  ;;  %v2846_v53 = vld [vmem:[#allocation5 + $0xe0] sm:$0xff]  ;;  %v2867_v57 = vld [vmem:[#allocation5 + $0x188] sm:$0xff] }
 0x696   :  { %2579 = vst.msk [vmem:[#allocation5 + $0x198] sm:$0xff] %vm2387_vm15, %v2531_v34  ;;  %2498 = vst.msk [vmem:[#allocation5 + $0xf0] sm:$0xff] %vm2387_vm15, %v2449_v45  ;;  %2626 = vrot.lane.b32.xlu0 %v6512_v62, %s4769_s23  ;;  %v4512_v55 = vpack.c.bf16 %v2847_v11, %v2846_v53  ;;  %v2797_v45 = vld [vmem:[%s7056_s4 + $0x188] sm:$0xff] }
 0x697   :  { %2696 = vrot.lane.b32.xlu1 %v6449_v40, %s4772_s26  ;;  %v2805_v53 = vld [vmem:[%s7056_s4 + $0x1c8] sm:$0xff] }
 0x698   :  { %4513 = vmatprep.subr.bf16.mxu1 %v4512_v55 }
 0x699   :  { %v2455_v12 = vpop.permute.xlu0 %2454  ;;  %4515 = vmatpush3.bf16.msra.mxu1 %v4514_v38  ;;  %v2529_v16 = vpop.permute.xlu1 %2528  ;;  %v2849_v63 = vld [vmem:[#allocation5 + $0xf8] sm:$0xff]  ;;  %v2866_v13 = vld [vmem:[#allocation5 + $0x180] sm:$0xff] }
 0x69a   :  { %2501 = vst.msk [vmem:[#allocation5 + $0x108] sm:$0xff] %vm2387_vm15, %v2455_v12  ;;  %2578 = vst.msk [vmem:[#allocation5 + $0x190] sm:$0xff] %vm2387_vm15, %v2529_v16  ;;  %2702 = vrot.lane.b32.xlu0 %v6480_v59, %s4772_s26  ;;  %v2833_v59 = vld [vmem:[#allocation5 + $0x78] sm:$0xff]  ;;  %v4520_v51 = vpack.c.bf16 %v2867_v57, %v2866_v13  ;;  %v2804_v12 = vld [vmem:[%s7056_s4 + $0x1c0] sm:$0xff] }
 0x69b   :  { %2624 = vrot.lane.b32.xlu1 %v6521_v23, %s4769_s23  ;;  %v4518_v30 = vpack.c.bf16 %v2833_v59, %v2832_v43 }
 0x69d   :  { %v2535_v32 = vpop.permute.xlu0 %2534  ;;  %v2453_v40 = vpop.permute.xlu1 %2452  ;;  %v2848_v14 = vld [vmem:[#allocation5 + $0xf0] sm:$0xff]  ;;  %v2869_v8 = vld [vmem:[#allocation5 + $0x198] sm:$0xff] }
 0x69e   :  { %2581 = vst.msk [vmem:[#allocation5 + $0x1a8] sm:$0xff] %vm2387_vm15, %v2535_v32  ;;  %2500 = vst.msk [vmem:[#allocation5 + $0x100] sm:$0xff] %vm2387_vm15, %v2453_v40  ;;  %2706 = vrot.lane.b32.xlu0 %v6512_v62, %s4772_s26  ;;  %v4516_v46 = vpack.c.bf16 %v2849_v63, %v2848_v14  ;;  %v2748_v62 = vld [vmem:[%s7056_s4] sm:$0xff]  ;;  %v2811_v40 = vld [vmem:[%s7056_s4 + $0x1f8] sm:$0xff] }
 0x69f   :  { %2700 = vrot.lane.b32.xlu1 %v6489_v56, %s4772_s26  ;;  %v2756_v56 = vld [vmem:[%s7056_s4 + $0x40] sm:$0xff]  ;;  %v2751_v14 = vld [vmem:[%s7056_s4 + $0x18] sm:$0xff] }
 0x6a0   :  { %4517 = vmatprep.subr.bf16.mxu1 %v4516_v46  ;;  %v2812_v32 = vld [vmem:[%s7056_s4 + $0x200] sm:$0xff] }
 0x6a1   :  { %v2459_v25 = vpop.permute.xlu0 %2458  ;;  %4519 = vmatpush3.bf16.msra.mxu1 %v4518_v30  ;;  %v2533_v61 = vpop.permute.xlu1 %2532  ;;  %v2851_v7 = vld [vmem:[#allocation5 + $0x108] sm:$0xff]  ;;  %v2868_v37 = vld [vmem:[#allocation5 + $0x190] sm:$0xff] }
 0x6a2   :  { %2503 = vst.msk [vmem:[#allocation5 + $0x118] sm:$0xff] %vm2387_vm15, %v2459_v25  ;;  %2580 = vst.msk [vmem:[#allocation5 + $0x1a0] sm:$0xff] %vm2387_vm15, %v2533_v61  ;;  %2965 = vperm.xlu0 %4762, %v2925_v54   ;;  %4521 = vmatprep.subr.bf16.mxu1 %v4520_v51  ;;  %v4524_v6 = vpack.c.bf16 %v2869_v8, %v2868_v37  ;;  %v2878_v8 = vld [vmem:[#allocation5 + $0x1e0] sm:$0xff] }
 0x6a3   :  { %2704 = vrot.lane.b32.xlu1 %v6521_v23, %s4772_s26 }
 0x6a4   :  { %3073 = vmatmul.mubr.f32.vlgmr.msra.gmra.mrb[10].mxu1 %v2748_v62 }
 0x6a5   :  { %v2539_v58 = vpop.permute.xlu0 %2538  ;;  %v2457_v23 = vpop.permute.xlu1 %2456  ;;  %3077 = vmatprep.mubr.f32.mxu1 %v2756_v56  ;;  %v2850_v52 = vld [vmem:[#allocation5 + $0x100] sm:$0xff]  ;;  %v2871_v29 = vld [vmem:[#allocation5 + $0x1a8] sm:$0xff] }
 0x6a6   :  { %2583 = vst.msk [vmem:[#allocation5 + $0x1b8] sm:$0xff] %vm2387_vm15, %v2539_v58  ;;  %2502 = vst.msk [vmem:[#allocation5 + $0x110] sm:$0xff] %vm2387_vm15, %v2457_v23  ;;  %2975 = vperm.xlu0 %4762, %v2927_v3   ;;  %v4522_v33 = vpack.c.bf16 %v2851_v7, %v2850_v52  ;;  %v2859_v23 = vld [vmem:[#allocation5 + $0x148] sm:$0xff] }
 0x6a7   :  { %2960 = vperm.xlu1 %4763, %v2924_v26   ;;  %v2858_v26 = vld [vmem:[#allocation5 + $0x140] sm:$0xff] }
 0x6a8   :  { %3078 = vmatmul.mubr.f32.gmra.mrb[12].mxu1 %v2755_v1  ;;  %v4538_v37 = vpack.c.bf16 %v2859_v23, %v2858_v26 }
 0x6a9   :  { %4523 = vmatpush3.bf16.msra.mxu1 %v4522_v33  ;;  %v2537_v22 = vpop.permute.xlu1 %2536  ;;  %3082 = vmatprep.mubr.f32.mxu1 %v2763_v19  ;;  %v2853_v28 = vld [vmem:[#allocation5 + $0x118] sm:$0xff]  ;;  %v2870_v47 = vld [vmem:[#allocation5 + $0x1a0] sm:$0xff]  ;;  %v2860_v19 = vld [vmem:[#allocation5 + $0x150] sm:$0xff] }
 0x6aa   :  { %4525 = vmatprep.subr.bf16.mxu1 %v4524_v6  ;;  %2582 = vst.msk [vmem:[#allocation5 + $0x1b0] sm:$0xff] %vm2387_vm15, %v2537_v22  ;;  %2935 = vperm.xlu0 %4762, %v2919_v20   ;;  %v4528_v15 = vpack.c.bf16 %v2871_v29, %v2870_v47  ;;  %v2864_v29 = vld [vmem:[#allocation5 + $0x170] sm:$0xff] }
 0x6ab   :  { %2970 = vperm.xlu1 %4763, %v2926_v36   ;;  %v2861_v36 = vld [vmem:[#allocation5 + $0x158] sm:$0xff] }
 0x6ac   :  { %3083 = vmatmul.mubr.f32.gmra.mrb[14].mxu1 %v2762_v44  ;;  %v4542_v22 = vpack.c.bf16 %v2861_v36, %v2860_v19  ;;  %v2879_v44 = vld [vmem:[#allocation5 + $0x1e8] sm:$0xff] }
 0x6ad   :  { %3087 = vmatprep.mubr.f32.mxu1 %v2770_v17  ;;  %v2852_v50 = vld [vmem:[#allocation5 + $0x110] sm:$0xff]  ;;  %v2873_v16 = vld [vmem:[#allocation5 + $0x1b8] sm:$0xff]  ;;  %v4544_v17 = vpack.c.bf16 %v2879_v44, %v2878_v8  ;;  %v2778_v8 = vld [vmem:[%s7056_s4 + $0xf0] sm:$0xff] }
 0x6ae   :  { %2945 = vperm.xlu0 %4762, %v2921_v41   ;;  %v4526_v2 = vpack.c.bf16 %v2853_v28, %v2852_v50  ;;  %v2862_v41 = vld [vmem:[#allocation5 + $0x160] sm:$0xff]  ;;  %v2863_v28 = vld [vmem:[#allocation5 + $0x168] sm:$0xff] }
 0x6af   :  { %2930 = vperm.xlu1 %4763, %v2918_v42   ;;  %v2880_v42 = vld [vmem:[#allocation5 + $0x1f0] sm:$0xff]  ;;  %v4546_v47 = vpack.c.bf16 %v2863_v28, %v2862_v41 }
 0x6b0   :  { %3088 = vmatmul.mubr.f32.gmra.mrb[16].mxu1 %v2769_v0 }
 0x6b1   :  { %4527 = vmatpush3.bf16.msra.mxu1 %v4526_v2  ;;  %3092 = vmatprep.mubr.f32.mxu1 %v2777_v27  ;;  %v2872_v11 = vld [vmem:[#allocation5 + $0x1b0] sm:$0xff]  ;;  %v2881_v2 = vld [vmem:[#allocation5 + $0x1f8] sm:$0xff] }
 0x6b2   :  { %4529 = vmatprep.subr.bf16.mxu1 %v4528_v15  ;;  %2955 = vperm.xlu0 %4762, %v2923_v49   ;;  %v4532_v43 = vpack.c.bf16 %v2873_v16, %v2872_v11  ;;  %v4548_v27 = vpack.c.bf16 %v2881_v2, %v2880_v42  ;;  %v2898_v49 = vld [vmem:[#allocation5 + $0x280] sm:$0xff] }
 0x6b3   :  { %2940 = vperm.xlu1 %4763, %v2920_v9  }
 0x6b4   :  { %v2463_v4 = vpop.permute.xlu0 %2462  ;;  %3093 = vmatmul.mubr.f32.gmra.mrb[18].mxu1 %v2776_v48  ;;  %v2865_v48 = vld [vmem:[#allocation5 + $0x178] sm:$0xff] }
 0x6b5   :  { %2505 = vst.msk [vmem:[#allocation5 + $0x128] sm:$0xff] %vm2387_vm15, %v2463_v4  ;;  %3097 = vmatprep.mubr.f32.mxu1 %v2784_v18  ;;  %v4550_v18 = vpack.c.bf16 %v2865_v48, %v2864_v29  ;;  %v2899_v4 = vld [vmem:[#allocation5 + $0x288] sm:$0xff] }
 0x6b7   :  { %2950 = vperm.xlu1 %4763, %v2922_v21   ;;  %v4552_v21 = vpack.c.bf16 %v2899_v4, %v2898_v49  ;;  %v2792_v49 = vld [vmem:[%s7056_s4 + $0x160] sm:$0xff] }
 0x6b8   :  { %v2543_v24 = vpop.permute.xlu0 %2542  ;;  %3098 = vmatmul.mubr.f32.gmra.mrb[20].mxu1 %v2783_v5  ;;  %v2882_v5 = vld [vmem:[#allocation5 + $0x200] sm:$0xff]  ;;  %v2800_v4 = vld [vmem:[%s7056_s4 + $0x1a0] sm:$0xff] }
 0x6b9   :  { %v2461_v10 = vpop.permute.xlu1 %2460  ;;  %2585 = vst.msk [vmem:[#allocation5 + $0x1c8] sm:$0xff] %vm2387_vm15, %v2543_v24  ;;  %3102 = vmatprep.mubr.f32.mxu1 %v2791_v39  ;;  %v2750_v39 = vld [vmem:[%s7056_s4 + $0x10] sm:$0xff]  ;;  %v2900_v24 = vld [vmem:[#allocation5 + $0x290] sm:$0xff] }
 0x6ba   :  { %2504 = vst.msk [vmem:[#allocation5 + $0x120] sm:$0xff] %vm2387_vm15, %v2461_v10 }
 0x6bc   :  { %3103 = vmatmul.mubr.f32.gmra.mrb[22].mxu1 %v2790_v60  ;;  %v2855_v35 = vld [vmem:[#allocation5 + $0x128] sm:$0xff] }
 0x6bd   :  { %v2541_v34 = vpop.permute.xlu1 %2540  ;;  %3107 = vmatprep.mubr.f32.mxu1 %v2798_v31  ;;  %v2883_v31 = vld [vmem:[#allocation5 + $0x208] sm:$0xff] }
 0x6be   :  { %2584 = vst.msk [vmem:[#allocation5 + $0x1c0] sm:$0xff] %vm2387_vm15, %v2541_v34  ;;  %v2758_v34 = vld [vmem:[%s7056_s4 + $0x50] sm:$0xff] }
 0x6c0   :  { %3108 = vmatmul.mubr.f32.gmra.mrb[24].mxu1 %v2797_v45  ;;  %v2875_v56 = vld [vmem:[#allocation5 + $0x1c8] sm:$0xff]  ;;  %v4554_v45 = vpack.c.bf16 %v2883_v31, %v2882_v5 }
 0x6c1   :  { %v2854_v55 = vld [vmem:[#allocation5 + $0x120] sm:$0xff]  ;;  %3112 = vmatprep.mubr.f32.mxu1 %v2805_v53  ;;  %v2901_v53 = vld [vmem:[#allocation5 + $0x298] sm:$0xff]  ;;  %v2799_v5 = vld [vmem:[%s7056_s4 + $0x198] sm:$0xff] }
 0x6c2   :  { %v4530_v38 = vpack.c.bf16 %v2855_v35, %v2854_v55  ;;  %v4556_v11 = vpack.c.bf16 %v2901_v53, %v2900_v24  ;;  %v2757_v35 = vld [vmem:[%s7056_s4 + $0x48] sm:$0xff]  ;;  %v2807_v31 = vld [vmem:[%s7056_s4 + $0x1d8] sm:$0xff] }
 0x6c4   :  { %4531 = vmatpush3.bf16.msra.mxu1 %v4530_v38 }
 0x6c5   :  { %3113 = vmatmul.mubr.f32.gmra.mrb[26].mxu1 %v2804_v12  ;;  %4533 = vmatprep.subr.bf16.mxu1 %v4532_v43  ;;  %v2874_v54 = vld [vmem:[#allocation5 + $0x1c0] sm:$0xff] }
 0x6c6   :  { %3117 = vmatprep.mubr.f32.mxu1 %v2812_v32  ;;  %v4536_v3 = vpack.c.bf16 %v2875_v56, %v2874_v54  ;;  %v2765_v32 = vld [vmem:[%s7056_s4 + $0x88] sm:$0xff] }
 0x6c9   :  { %3118 = vmatmul.mubr.f32.gmra.mrb[28].mxu1 %v2811_v40 }
 0x6ca   :  { %3187 = vmatprep.mubr.f32.mxu1 %v2751_v14 }
 0x6d0   :  { %v2467_v63 = vpop.permute.xlu0 %2466 }
 0x6d1   :  { %2507 = vst.msk [vmem:[#allocation5 + $0x138] sm:$0xff] %vm2387_vm15, %v2467_v63 }
 0x6d4   :  { %v2547_v46 = vpop.permute.xlu0 %2546 }
 0x6d5   :  { %v2465_v59 = vpop.permute.xlu1 %2464  ;;  %2587 = vst.msk [vmem:[#allocation5 + $0x1d8] sm:$0xff] %vm2387_vm15, %v2547_v46 }
 0x6d6   :  { %2506 = vst.msk [vmem:[#allocation5 + $0x130] sm:$0xff] %vm2387_vm15, %v2465_v59  ;;  %v2764_v59 = vld [vmem:[%s7056_s4 + $0x80] sm:$0xff] }
 0x6d8   :  { %v2603_v13 = vpop.permute.xlu0 %2602  ;;  %v2857_v51 = vld [vmem:[#allocation5 + $0x138] sm:$0xff] }
 0x6d9   :  { %v2545_v30 = vpop.permute.xlu1 %2544  ;;  %2655 = vst.msk [vmem:[#allocation5 + $0x218] sm:$0xff] %vm2387_vm15, %v2603_v13 }
 0x6da   :  { %2586 = vst.msk [vmem:[#allocation5 + $0x1d0] sm:$0xff] %vm2387_vm15, %v2545_v30 }
 0x6dc   :  { %v2679_v57 = vpop.permute.xlu0 %2678  ;;  %v2877_v7 = vld [vmem:[#allocation5 + $0x1d8] sm:$0xff] }
 0x6dd   :  { %v2601_v25 = vpop.permute.xlu1 %2600  ;;  %v2856_v61 = vld [vmem:[#allocation5 + $0x130] sm:$0xff]  ;;  %2733 = vst.msk [vmem:[#allocation5 + $0x2a8] sm:$0xff] %vm2387_vm15, %v2679_v57 }
 0x6de   :  { %2654 = vst.msk [vmem:[#allocation5 + $0x210] sm:$0xff] %vm2387_vm15, %v2601_v25  ;;  %v4534_v62 = vpack.c.bf16 %v2857_v51, %v2856_v61  ;;  %v2772_v25 = vld [vmem:[%s7056_s4 + $0xc0] sm:$0xff] }
 0x6e0   :  { %4535 = vmatpush3.bf16.msra.mxu1 %v4534_v62  ;;  %v2607_v1 = vpop.permute.xlu0 %2606  ;;  %v2885_v43 = vld [vmem:[#allocation5 + $0x218] sm:$0xff] }
 0x6e1   :  { %4537 = vmatprep.subr.bf16.mxu1 %v4536_v3  ;;  %v2677_v58 = vpop.permute.xlu1 %2676  ;;  %v2876_v52 = vld [vmem:[#allocation5 + $0x1d0] sm:$0xff]  ;;  %2657 = vst.msk [vmem:[#allocation5 + $0x228] sm:$0xff] %vm2387_vm15, %v2607_v1  ;;  %v2771_v3 = vld [vmem:[%s7056_s4 + $0xb8] sm:$0xff] }
 0x6e2   :  { %2732 = vst.msk [vmem:[#allocation5 + $0x2a0] sm:$0xff] %vm2387_vm15, %v2677_v58  ;;  %v4540_v33 = vpack.c.bf16 %v2877_v7, %v2876_v52  ;;  %v2779_v52 = vld [vmem:[%s7056_s4 + $0xf8] sm:$0xff] }
 0x6e4   :  { %4539 = vmatpush3.bf16.msra.mxu1 %v4538_v37  ;;  %v2683_v20 = vpop.permute.xlu0 %2682  ;;  %v2903_v14 = vld [vmem:[#allocation5 + $0x2a8] sm:$0xff] }
 0x6e5   :  { %4541 = vmatprep.subr.bf16.mxu1 %v4540_v33  ;;  %v2605_v6 = vpop.permute.xlu1 %2604  ;;  %2735 = vst.msk [vmem:[#allocation5 + $0x2b8] sm:$0xff] %vm2387_vm15, %v2683_v20  ;;  %v2884_v55 = vld [vmem:[#allocation5 + $0x210] sm:$0xff]  ;;  %v2786_v20 = vld [vmem:[%s7056_s4 + $0x130] sm:$0xff] }
 0x6e6   :  { %2656 = vst.msk [vmem:[#allocation5 + $0x220] sm:$0xff] %vm2387_vm15, %v2605_v6  ;;  %v4558_v40 = vpack.c.bf16 %v2885_v43, %v2884_v55 }
 0x6e8   :  { %4543 = vmatpush3.bf16.msra.mxu1 %v4542_v22  ;;  %v2611_v0 = vpop.permute.xlu0 %2610  ;;  %v2887_v57 = vld [vmem:[#allocation5 + $0x228] sm:$0xff] }
 0x6e9   :  { %4545 = vmatprep.subr.bf16.mxu1 %v4544_v17  ;;  %v2681_v50 = vpop.permute.xlu1 %2680  ;;  %2659 = vst.msk [vmem:[#allocation5 + $0x238] sm:$0xff] %vm2387_vm15, %v2611_v0  ;;  %v2902_v38 = vld [vmem:[#allocation5 + $0x2a0] sm:$0xff]  ;;  %v2785_v0 = vld [vmem:[%s7056_s4 + $0x128] sm:$0xff] }
 0x6ea   :  { %2734 = vst.msk [vmem:[#allocation5 + $0x2b0] sm:$0xff] %vm2387_vm15, %v2681_v50  ;;  %v4560_v63 = vpack.c.bf16 %v2903_v14, %v2902_v38  ;;  %v2814_v38 = vld [vmem:[%s7056_s4 + $0x210] sm:$0xff]  ;;  %v2753_v14 = vld [vmem:[%s7056_s4 + $0x28] sm:$0xff] }
 0x6ec   :  { %4547 = vmatpush3.bf16.msra.mxu1 %v4546_v47  ;;  %v2687_v15 = vpop.permute.xlu0 %2686  ;;  %v2905_v51 = vld [vmem:[#allocation5 + $0x2b8] sm:$0xff] }
 0x6ed   :  { %4549 = vmatprep.subr.bf16.mxu1 %v4548_v27  ;;  %v2609_v9 = vpop.permute.xlu1 %2608  ;;  %2737 = vst.msk [vmem:[#allocation5 + $0x2c8] sm:$0xff] %vm2387_vm15, %v2687_v15  ;;  %v2886_v46 = vld [vmem:[#allocation5 + $0x220] sm:$0xff]  ;;  %v2793_v27 = vld [vmem:[%s7056_s4 + $0x168] sm:$0xff] }
 0x6ee   :  { %2658 = vst.msk [vmem:[#allocation5 + $0x230] sm:$0xff] %vm2387_vm15, %v2609_v9  ;;  %v4562_v61 = vpack.c.bf16 %v2887_v57, %v2886_v46  ;;  %v2752_v46 = vld [vmem:[%s7056_s4 + $0x20] sm:$0xff]  ;;  %v2759_v57 = vld [vmem:[%s7056_s4 + $0x58] sm:$0xff] }
 0x6f0   :  { %4551 = vmatpush3.bf16.msra.mxu1 %v4550_v18  ;;  %v2615_v10 = vpop.permute.xlu0 %2614  ;;  %v2889_v23 = vld [vmem:[#allocation5 + $0x238] sm:$0xff] }
 0x6f1   :  { %4553 = vmatprep.subr.bf16.mxu1 %v4552_v21  ;;  %v2685_v60 = vpop.permute.xlu1 %2684  ;;  %2661 = vst.msk [vmem:[#allocation5 + $0x248] sm:$0xff] %vm2387_vm15, %v2615_v10  ;;  %v2904_v13 = vld [vmem:[#allocation5 + $0x2b0] sm:$0xff] }
 0x6f2   :  { %2736 = vst.msk [vmem:[#allocation5 + $0x2c0] sm:$0xff] %vm2387_vm15, %v2685_v60  ;;  %v4564_v62 = vpack.c.bf16 %v2905_v51, %v2904_v13  ;;  %v2767_v51 = vld [vmem:[%s7056_s4 + $0x98] sm:$0xff] }
 0x6f3   :  { %3188 = vmatmul.mubr.f32.vlgmr.msra.gmra.mrb[30].mxu1 %v2750_v39 }
 0x6f4   :  { %4555 = vmatpush3.bf16.msra.mxu1 %v4554_v45  ;;  %3192 = vmatprep.mubr.f32.mxu1 %v2758_v34  ;;  %v2691_v12 = vpop.permute.xlu0 %2690  ;;  %v2907_v37 = vld [vmem:[#allocation5 + $0x2c8] sm:$0xff]  ;;  %v2806_v45 = vld [vmem:[%s7056_s4 + $0x1d0] sm:$0xff] }
 0x6f5   :  { %4557 = vmatprep.subr.bf16.mxu1 %v4556_v11  ;;  %v2613_v16 = vpop.permute.xlu1 %2612  ;;  %2739 = vst.msk [vmem:[#allocation5 + $0x2d8] sm:$0xff] %vm2387_vm15, %v2691_v12  ;;  %v2888_v56 = vld [vmem:[#allocation5 + $0x230] sm:$0xff] }
 0x6f6   :  { %2660 = vst.msk [vmem:[#allocation5 + $0x240] sm:$0xff] %vm2387_vm15, %v2613_v16  ;;  %v4566_v7 = vpack.c.bf16 %v2889_v23, %v2888_v56  ;;  %v2813_v16 = vld [vmem:[%s7056_s4 + $0x208] sm:$0xff]  ;;  %v2766_v56 = vld [vmem:[%s7056_s4 + $0x90] sm:$0xff]  ;;  %v2788_v23 = vld [vmem:[%s7056_s4 + $0x140] sm:$0xff] }
 0x6f7   :  { %3193 = vmatmul.mubr.f32.gmra.mrb[32].mxu1 %v2757_v35 }
 0x6f8   :  { %4559 = vmatpush3.bf16.msra.mxu1 %v4558_v40  ;;  %3197 = vmatprep.mubr.f32.mxu1 %v2765_v32  ;;  %v2619_v30 = vpop.permute.xlu0 %2618  ;;  %v2891_v22 = vld [vmem:[#allocation5 + $0x248] sm:$0xff] }
 0x6f9   :  { %4561 = vmatprep.subr.bf16.mxu1 %v4560_v63  ;;  %v2689_v54 = vpop.permute.xlu1 %2688  ;;  %2663 = vst.msk [vmem:[#allocation5 + $0x258] sm:$0xff] %vm2387_vm15, %v2619_v30  ;;  %v2906_v26 = vld [vmem:[#allocation5 + $0x2c0] sm:$0xff]  ;;  %v2760_v30 = vld [vmem:[%s7056_s4 + $0x60] sm:$0xff] }
 0x6fa   :  { %2738 = vst.msk [vmem:[#allocation5 + $0x2d0] sm:$0xff] %vm2387_vm15, %v2689_v54  ;;  %v4568_v33 = vpack.c.bf16 %v2907_v37, %v2906_v26  ;;  %v2773_v26 = vld [vmem:[%s7056_s4 + $0xc8] sm:$0xff]  ;;  %v2794_v37 = vld [vmem:[%s7056_s4 + $0x170] sm:$0xff] }
 0x6fb   :  { %3198 = vmatmul.mubr.f32.gmra.mrb[34].mxu1 %v2764_v59 }
 0x6fc   :  { %4563 = vmatpush3.bf16.msra.mxu1 %v4562_v61  ;;  %3202 = vmatprep.mubr.f32.mxu1 %v2772_v25  ;;  %v2695_v1 = vpop.permute.xlu0 %2694  ;;  %v2909_v17 = vld [vmem:[#allocation5 + $0x2d8] sm:$0xff] }
 0x6fd   :  { %4565 = vmatprep.subr.bf16.mxu1 %v4564_v62  ;;  %v2617_v58 = vpop.permute.xlu1 %2616  ;;  %2741 = vst.msk [vmem:[#allocation5 + $0x2e8] sm:$0xff] %vm2387_vm15, %v2695_v1  ;;  %v2890_v19 = vld [vmem:[#allocation5 + $0x240] sm:$0xff]  ;;  %v2781_v1 = vld [vmem:[%s7056_s4 + $0x108] sm:$0xff] }
 0x6fe   :  { %2662 = vst.msk [vmem:[#allocation5 + $0x250] sm:$0xff] %vm2387_vm15, %v2617_v58  ;;  %v4570_v41 = vpack.c.bf16 %v2891_v22, %v2890_v19  ;;  %v2780_v58 = vld [vmem:[%s7056_s4 + $0x100] sm:$0xff]  ;;  %v2801_v19 = vld [vmem:[%s7056_s4 + $0x1a8] sm:$0xff]  ;;  %v2754_v22 = vld [vmem:[%s7056_s4 + $0x30] sm:$0xff] }
 0x6ff   :  { %3203 = vmatmul.mubr.f32.gmra.mrb[36].mxu1 %v2771_v3  ;;  %v2774_v3 = vld [vmem:[%s7056_s4 + $0xd0] sm:$0xff] }
 0x700   :  { %4567 = vmatpush3.bf16.msra.mxu1 %v4566_v7  ;;  %3207 = vmatprep.mubr.f32.mxu1 %v2779_v52  ;;  %v2623_v6 = vpop.permute.xlu0 %2622  ;;  %v2893_v2 = vld [vmem:[#allocation5 + $0x258] sm:$0xff]  ;;  %v2787_v52 = vld [vmem:[%s7056_s4 + $0x138] sm:$0xff] }
 0x701   :  { %4569 = vmatprep.subr.bf16.mxu1 %v4568_v33  ;;  %v2693_v36 = vpop.permute.xlu1 %2692  ;;  %v2908_v44 = vld [vmem:[#allocation5 + $0x2d0] sm:$0xff]  ;;  %2665 = vst.msk [vmem:[#allocation5 + $0x268] sm:$0xff] %vm2387_vm15, %v2623_v6  ;;  %v2795_v7 = vld [vmem:[%s7056_s4 + $0x178] sm:$0xff]  ;;  %v2802_v33 = vld [vmem:[%s7056_s4 + $0x1b0] sm:$0xff] }
 0x702   :  { %2740 = vst.msk [vmem:[#allocation5 + $0x2e0] sm:$0xff] %vm2387_vm15, %v2693_v36  ;;  %v4572_v42 = vpack.c.bf16 %v2909_v17, %v2908_v44  ;;  %v2816_v6 = vld [vmem:[%s7056_s4 + $0x220] sm:$0xff]  ;;  %v2815_v36 = vld [vmem:[%s7056_s4 + $0x218] sm:$0xff]  ;;  %v2761_v44 = vld [vmem:[%s7056_s4 + $0x68] sm:$0xff] }
 0x703   :  { %3208 = vmatmul.mubr.f32.gmra.mrb[38].mxu1 %v2778_v8  ;;  %v2809_v8 = vld [vmem:[%s7056_s4 + $0x1e8] sm:$0xff]  ;;  %v2768_v17 = vld [vmem:[%s7056_s4 + $0xa0] sm:$0xff] }
 0x704   :  { %4571 = vmatpush3.bf16.msra.mxu1 %v4570_v41  ;;  %3212 = vmatprep.mubr.f32.mxu1 %v2786_v20  ;;  %v2699_v50 = vpop.permute.xlu0 %2698  ;;  %v2911_v18 = vld [vmem:[#allocation5 + $0x2e8] sm:$0xff]  ;;  %v2808_v20 = vld [vmem:[%s7056_s4 + $0x1e0] sm:$0xff] }
 0x705   :  { %4573 = vmatprep.subr.bf16.mxu1 %v4572_v42  ;;  %v2621_v28 = vpop.permute.xlu1 %2620  ;;  %v2892_v47 = vld [vmem:[#allocation5 + $0x250] sm:$0xff]  ;;  %2743 = vst.msk [vmem:[#allocation5 + $0x2f8] sm:$0xff] %vm2387_vm15, %v2699_v50  ;;  %v2775_v41 = vld [vmem:[%s7056_s4 + $0xd8] sm:$0xff]  ;;  %v2782_v42 = vld [vmem:[%s7056_s4 + $0x110] sm:$0xff] }
 0x706   :  { %2664 = vst.msk [vmem:[#allocation5 + $0x260] sm:$0xff] %vm2387_vm15, %v2621_v28  ;;  %v4574_v29 = vpack.c.bf16 %v2893_v2, %v2892_v47  ;;  %v2796_v50 = vld [vmem:[%s7056_s4 + $0x180] sm:$0xff]  ;;  %v2803_v28 = vld [vmem:[%s7056_s4 + $0x1b8] sm:$0xff]  ;;  %v2810_v47 = vld [vmem:[%s7056_s4 + $0x1f0] sm:$0xff] }
 0x707   :  { %3213 = vmatmul.mubr.f32.gmra.mrb[40].mxu1 %v2785_v0  ;;  %v2789_v0 = vld [vmem:[%s7056_s4 + $0x148] sm:$0xff] }
 0x708   :  { %4575 = vmatpush3.bf16.msra.mxu1 %v4574_v29  ;;  %3217 = vmatprep.mubr.f32.mxu1 %v2793_v27  ;;  %v2627_v15 = vpop.permute.xlu0 %2626  ;;  %v2895_v60 = vld [vmem:[#allocation5 + $0x268] sm:$0xff]  ;;  %v2817_v2 = vld [vmem:[%s7056_s4 + $0x228] sm:$0xff] }
 0x709   :  { %v2697_v9 = vpop.permute.xlu1 %2696  ;;  %v2910_v48 = vld [vmem:[#allocation5 + $0x2e0] sm:$0xff]  ;;  %2667 = vst.msk [vmem:[#allocation5 + $0x278] sm:$0xff] %vm2387_vm15, %v2627_v15 }
 0x70a   :  { %2742 = vst.msk [vmem:[#allocation5 + $0x2f0] sm:$0xff] %vm2387_vm15, %v2697_v9  ;;  %v4576_v21 = vpack.c.bf16 %v2911_v18, %v2910_v48 }
 0x70b   :  { %3218 = vmatmul.mubr.f32.gmra.mrb[42].mxu1 %v2792_v49 }
 0x70c   :  { %4577 = vmatprep.subr.bf16.mxu1 %v4576_v21  ;;  %3222 = vmatprep.mubr.f32.mxu1 %v2800_v4  ;;  %v2703_v39 = vpop.permute.xlu0 %2702  ;;  %v2913_v35 = vld [vmem:[#allocation5 + $0x2f8] sm:$0xff] }
 0x70d   :  { %v2625_v24 = vpop.permute.xlu1 %2624  ;;  %v2894_v10 = vld [vmem:[#allocation5 + $0x260] sm:$0xff]  ;;  %2745 = vst.msk [vmem:[#allocation5 + $0x308] sm:$0xff] %vm2387_vm15, %v2703_v39 }
 0x70e   :  { %2666 = vst.msk [vmem:[#allocation5 + $0x270] sm:$0xff] %vm2387_vm15, %v2625_v24  ;;  %v4578_v34 = vpack.c.bf16 %v2895_v60, %v2894_v10 }
 0x70f   :  { %3223 = vmatmul.mubr.f32.gmra.mrb[44].mxu1 %v2799_v5 }
 0x710   :  { %4579 = vmatpush3.bf16.msra.mxu1 %v4578_v34  ;;  %3227 = vmatprep.mubr.f32.mxu1 %v2807_v31  ;;  %v2707_v53 = vpop.permute.xlu0 %2706  ;;  %v2897_v40 = vld [vmem:[#allocation5 + $0x278] sm:$0xff] }
 0x711   :  { %v2701_v11 = vpop.permute.xlu1 %2700  ;;  %v2912_v55 = vld [vmem:[#allocation5 + $0x2f0] sm:$0xff]  ;;  %2747 = vst.msk [vmem:[#allocation5 + $0x318] sm:$0xff] %vm2387_vm15, %v2707_v53 }
 0x712   :  { %2744 = vst.msk [vmem:[#allocation5 + $0x300] sm:$0xff] %vm2387_vm15, %v2701_v11  ;;  %v4580_v12 = vpack.c.bf16 %v2913_v35, %v2912_v55 }
 0x713   :  { %3228 = vmatmul.mubr.f32.gmra.mrb[46].mxu1 %v2806_v45 }
 0x714   :  { %4581 = vmatprep.subr.bf16.mxu1 %v4580_v12  ;;  %3232 = vmatprep.mubr.f32.mxu1 %v2814_v38  ;;  %v2915_v13 = vld [vmem:[#allocation5 + $0x308] sm:$0xff] }
 0x715   :  { %v2705_v43 = vpop.permute.xlu1 %2704  ;;  %v2896_v32 = vld [vmem:[#allocation5 + $0x270] sm:$0xff] }
 0x716   :  { %2746 = vst.msk [vmem:[#allocation5 + $0x310] sm:$0xff] %vm2387_vm15, %v2705_v43  ;;  %v4582_v63 = vpack.c.bf16 %v2897_v40, %v2896_v32 }
 0x717   :  { %3233 = vmatmul.mubr.f32.gmra.mrb[48].mxu1 %v2813_v16 }
 0x718   :  { %4583 = vmatpush3.bf16.msra.mxu1 %v4582_v63  ;;  %3302 = vmatprep.mubr.f32.mxu1 %v2753_v14  ;;  %v2917_v61 = vld [vmem:[#allocation5 + $0x318] sm:$0xff] }
 0x719   :  { %v2914_v59 = vld [vmem:[#allocation5 + $0x300] sm:$0xff] }
 0x71a   :  { %v4584_v54 = vpack.c.bf16 %v2915_v13, %v2914_v59 }
 0x71b   :  { %3303 = vmatmul.mubr.f32.vlgmr.msra.gmra.mrb[50].mxu1 %v2752_v46 }
 0x71c   :  { %4585 = vmatprep.subr.bf16.mxu1 %v4584_v54  ;;  %3307 = vmatprep.mubr.f32.mxu1 %v2760_v30 }
 0x71d   :  { %4587 = vmatpush3.bf16.msra.mxu1 %v4584_v54  ;;  %v2916_v25 = vld [vmem:[#allocation5 + $0x310] sm:$0xff] }
 0x71e   :  { %v4588_v62 = vpack.c.bf16 %v2917_v61, %v2916_v25 }
 0x71f   :  { %3308 = vmatmul.mubr.f32.gmra.mrb[52].mxu1 %v2759_v57 }
 0x720   :  { %4589 = vmatprep.subr.bf16.mxu1 %v4588_v62  ;;  %3312 = vmatprep.mubr.f32.mxu1 %v2767_v51 }
 0x721   :  { %4591 = vmatpush3.bf16.msra.mxu1 %v4588_v62  ;;  %v2966_v13 = vpop.permute.xlu0 %2965 }
 0x723   :  { %3313 = vmatmul.mubr.f32.gmra.mrb[54].mxu1 %v2766_v56 }
 0x724   :  { %3317 = vmatprep.mubr.f32.mxu1 %v2774_v3 }
 0x725   :  { %v2976_v54 = vpop.permute.xlu0 %2975 }
 0x726   :  { %v2961_v59 = vpop.permute.xlu1 %2960 }
 0x727   :  { %3318 = vmatmul.mubr.f32.gmra.mrb[56].mxu1 %v2773_v26 }
 0x728   :  { %3322 = vmatprep.mubr.f32.mxu1 %v2781_v1 }
 0x729   :  { %v2936_v26 = vpop.permute.xlu0 %2935 }
 0x72a   :  { %v2971_v30 = vpop.permute.xlu1 %2970 }
 0x72b   :  { %3323 = vmatmul.mubr.f32.gmra.mrb[58].mxu1 %v2780_v58 }
 0x72c   :  { %3327 = vmatprep.mubr.f32.mxu1 %v2788_v23 }
 0x72e   :  { %v2931_v25 = vpop.permute.xlu1 %2930 }
 0x72f   :  { %3328 = vmatmul.mubr.f32.gmra.mrb[60].mxu1 %v2787_v52 }
 0x730   :  { %3332 = vmatprep.mubr.f32.mxu1 %v2795_v7 }
 0x733   :  { %3333 = vmatmul.mubr.f32.gmra.mrb[62].mxu1 %v2794_v37  ;;  %v2941_v37 = vpop.permute.xlu1 %2940 }
 0x734   :  { %3337 = vmatprep.mubr.f32.mxu1 %v2802_v33 }
 0x737   :  { %3338 = vmatmul.mubr.f32.gmra.mrb[64].mxu1 %v2801_v19 }
 0x738   :  { %3342 = vmatprep.mubr.f32.mxu1 %v2809_v8 }
 0x73b   :  { %3343 = vmatmul.mubr.f32.gmra.mrb[66].mxu1 %v2808_v20 }
 0x73c   :  { %3347 = vmatprep.mubr.f32.mxu1 %v2816_v6 }
 0x73f   :  { %3348 = vmatmul.mubr.f32.gmra.mrb[68].mxu1 %v2815_v36  ;;  %v2946_v36 = vpop.permute.xlu0 %2945 }
 0x740   :  { %4369 = vmatprep.mubr.msk.f32.mxu1 %vm2387_vm15, %v2754_v22 }
 0x743   :  { %4370 = vmatmul.mubr.msk.f32.vlgmr.msra.gmra.mrb[70].mxu1 %vm2387_vm15, %v2761_v44 }
 0x744   :  { %4372 = vmatprep.mubr.msk.f32.mxu1 %vm2387_vm15, %v2768_v17 }
 0x747   :  { %4373 = vmatmul.mubr.msk.f32.gmra.mrb[72].mxu1 %vm2387_vm15, %v2775_v41 }
 0x748   :  { %4375 = vmatprep.mubr.msk.f32.mxu1 %vm2387_vm15, %v2782_v42 }
 0x74b   :  { %4376 = vmatmul.mubr.msk.f32.gmra.mrb[74].mxu1 %vm2387_vm15, %v2789_v0  ;;  %v2951_v0 = vpop.permute.xlu1 %2950 }
 0x74c   :  { %4378 = vmatprep.mubr.msk.f32.mxu1 %vm2387_vm15, %v2796_v50 }
 0x74f   :  { %4379 = vmatmul.mubr.msk.f32.gmra.mrb[76].mxu1 %vm2387_vm15, %v2803_v28 }
 0x750   :  { %4381 = vmatprep.mubr.msk.f32.mxu1 %vm2387_vm15, %v2810_v47 }
 0x753   :  { %4382 = vmatmul.mubr.msk.f32.gmra.mrb[78].mxu1 %vm2387_vm15, %v2817_v2 }
 0x777   :  { %v4096_v27 = vpop.f32.mrb[10].mxu1 }
 0x778   :  { %v4097_v29 = vpop.f32.mrb[11].mxu1 }
 0x779   :  { %v4098_v49 = vadd.f32 %v4097_v29, %v4096_v27  ;;  %v2956_v29 = vpop.permute.xlu0 %2955 }
 0x77b   :  { %v4099_v15 = vpop.f32.mrb[12].mxu1  ;;  %v3075_v51 = vadd.f32 %v4098_v49, %v2931_v25 }
 0x77c   :  { %v4100_v9 = vpop.f32.mrb[13].mxu1 }
 0x77d   :  { %v4101_v48 = vadd.f32 %v4100_v9, %v4099_v15 }
 0x77f   :  { %v4102_v18 = vpop.f32.mrb[14].mxu1  ;;  %v3080_v58 = vadd.f32 %v4101_v48, %v2936_v26 }
 0x780   :  { %v4103_v4 = vpop.f32.mrb[15].mxu1 }
 0x781   :  { %v4104_v21 = vadd.f32 %v4103_v4, %v4102_v18 }
 0x783   :  { %v4105_v5 = vpop.f32.mrb[16].mxu1  ;;  %v3085_v19 = vadd.f32 %v4104_v21, %v2941_v37 }
 0x784   :  { %v4106_v39 = vpop.f32.mrb[17].mxu1 }
 0x785   :  { %v4107_v24 = vadd.f32 %v4106_v39, %v4105_v5 }
 0x787   :  { %v4108_v10 = vpop.f32.mrb[18].mxu1  ;;  %v3090_v44 = vadd.f32 %v4107_v24, %v2946_v36 }
 0x788   :  { %v4109_v60 = vpop.f32.mrb[19].mxu1 }
 0x789   :  { %v4110_v31 = vadd.f32 %v4109_v60, %v4108_v10 }
 0x78b   :  { %v4111_v34 = vpop.f32.mrb[20].mxu1  ;;  %v3095_v28 = vadd.f32 %v4110_v31, %v2951_v0 }
 0x78c   :  { %v4112_v45 = vpop.f32.mrb[21].mxu1 }
 0x78d   :  { %v4113_v53 = vadd.f32 %v4112_v45, %v4111_v34 }
 0x78f   :  { %v4114_v11 = vpop.f32.mrb[22].mxu1  ;;  %v3100_v15 = vadd.f32 %v4113_v53, %v2956_v29 }
 0x790   :  { %v4115_v55 = vpop.f32.mrb[23].mxu1 }
 0x791   :  { %v4116_v35 = vadd.f32 %v4115_v55, %v4114_v11 }
 0x793   :  { %v4117_v38 = vpop.f32.mrb[24].mxu1  ;;  %v3105_v21 = vadd.f32 %v4116_v35, %v2961_v59 }
 0x794   :  { %v4118_v12 = vpop.f32.mrb[25].mxu1 }
 0x795   :  { %v4119_v16 = vadd.f32 %v4118_v12, %v4117_v38 }
 0x797   :  { %v3110_v60 = vadd.f32 %v4119_v16, %v2966_v13 }
 0x798   :  { %v4120_v43 = vpop.f32.mrb[26].mxu1 }
 0x799   :  { %v4121_v32 = vpop.f32.mrb[27].mxu1 }
 0x79a   :  { %v4122_v40 = vadd.f32 %v4121_v32, %v4120_v43 }
 0x79c   :  { %v4123_v14 = vpop.f32.mrb[28].mxu1  ;;  %v3115_v55 = vadd.f32 %v4122_v40, %v2971_v30 }
 0x79d   :  { %v4124_v63 = vpop.f32.mrb[29].mxu1 }
 0x79e   :  { %v4125_v46 = vadd.f32 %v4124_v63, %v4123_v14 }
 0x7a0   :  { %v3120_v53 = vadd.f32 %v4125_v46, %v2976_v54 }
 0x7c6   :  { %v4158_v57 = vpop.f32.mrb[30].mxu1 }
 0x7c7   :  { %v4159_v61 = vpop.f32.mrb[31].mxu1 }
 0x7c8   :  { %v4160_v62 = vadd.f32 %v4159_v61, %v4158_v57 }
 0x7ca   :  { %v3190_v56 = vadd.f32 %v4160_v62, %v3075_v51  ;;  %v4161_v3 = vpop.f32.mrb[32].mxu1 }
 0x7cb   :  { %v4162_v1 = vpop.f32.mrb[33].mxu1 }
 0x7cc   :  { %v4163_v23 = vadd.f32 %v4162_v1, %v4161_v3 }
 0x7ce   :  { %v3195_v52 = vadd.f32 %v4163_v23, %v3080_v58  ;;  %v4164_v7 = vpop.f32.mrb[34].mxu1 }
 0x7cf   :  { %v4165_v33 = vpop.f32.mrb[35].mxu1 }
 0x7d0   :  { %v4166_v8 = vadd.f32 %v4165_v33, %v4164_v7 }
 0x7d2   :  { %v3200_v20 = vadd.f32 %v4166_v8, %v3085_v19  ;;  %v4167_v6 = vpop.f32.mrb[36].mxu1 }
 0x7d3   :  { %v4168_v22 = vpop.f32.mrb[37].mxu1 }
 0x7d4   :  { %v4169_v17 = vadd.f32 %v4168_v22, %v4167_v6 }
 0x7d6   :  { %v3205_v41 = vadd.f32 %v4169_v17, %v3090_v44  ;;  %v4170_v42 = vpop.f32.mrb[38].mxu1 }
 0x7d7   :  { %v4171_v50 = vpop.f32.mrb[39].mxu1 }
 0x7d8   :  { %v4172_v47 = vadd.f32 %v4171_v50, %v4170_v42 }
 0x7da   :  { %v3210_v2 = vadd.f32 %v4172_v47, %v3095_v28  ;;  %v4173_v27 = vpop.f32.mrb[40].mxu1 }
 0x7db   :  { %v4174_v49 = vpop.f32.mrb[41].mxu1 }
 0x7dc   :  { %v4175_v9 = vadd.f32 %v4174_v49, %v4173_v27 }
 0x7de   :  { %v3215_v48 = vadd.f32 %v4175_v9, %v3100_v15  ;;  %v4176_v18 = vpop.f32.mrb[42].mxu1 }
 0x7df   :  { %v4177_v4 = vpop.f32.mrb[43].mxu1 }
 0x7e0   :  { %v4178_v5 = vadd.f32 %v4177_v4, %v4176_v18 }
 0x7e2   :  { %v3220_v39 = vadd.f32 %v4178_v5, %v3105_v21  ;;  %v4179_v24 = vpop.f32.mrb[44].mxu1 }
 0x7e3   :  { %v4180_v10 = vpop.f32.mrb[45].mxu1 }
 0x7e4   :  { %v4181_v34 = vadd.f32 %v4180_v10, %v4179_v24 }
 0x7e6   :  { %v3225_v45 = vadd.f32 %v4181_v34, %v3110_v60  ;;  %v4182_v11 = vpop.f32.mrb[46].mxu1 }
 0x7e7   :  { %v4183_v31 = vpop.f32.mrb[47].mxu1 }
 0x7e8   :  { %v4184_v38 = vadd.f32 %v4183_v31, %v4182_v11 }
 0x7ea   :  { %v3230_v12 = vadd.f32 %v4184_v38, %v3115_v55  ;;  %v4185_v43 = vpop.f32.mrb[48].mxu1 }
 0x7eb   :  { %v4186_v32 = vpop.f32.mrb[49].mxu1 }
 0x7ec   :  { %v4187_v14 = vadd.f32 %v4186_v32, %v4185_v43 }
 0x7ee   :  { %v3235_v63 = vadd.f32 %v4187_v14, %v3120_v53  ;;  %v4220_v57 = vpop.f32.mrb[50].mxu1 }
 0x7ef   :  { %v4221_v25 = vpop.f32.mrb[51].mxu1 }
 0x7f0   :  { %v4222_v35 = vadd.f32 %v4221_v25, %v4220_v57 }
 0x7f2   :  { %v4223_v59 = vpop.f32.mrb[52].mxu1  ;;  %v3305_v61 = vadd.f32 %v4222_v35, %v3190_v56 }
 0x7f3   :  { %v4224_v51 = vpop.f32.mrb[53].mxu1 }
 0x7f4   :  { %v4225_v62 = vadd.f32 %v4224_v51, %v4223_v59 }
 0x7f6   :  { %v4226_v16 = vpop.f32.mrb[54].mxu1  ;;  %v3310_v13 = vadd.f32 %v4225_v62, %v3195_v52  ;;  %v3619_v62 = vld [vmem:[%s7058_s6 + $0x8] sm:$0xff] }
 0x7f7   :  { %v4227_v3 = vpop.f32.mrb[55].mxu1  ;;  %3771 = vmatprep.mubr.f32.mxu1 %v3619_v62 }
 0x7f8   :  { %v4228_v26 = vadd.f32 %v4227_v3, %v4226_v16  ;;  %v3671_v16 = vld [vmem:[%s7059_s7 + $0x8] sm:$0xff]  ;;  %v3673_v3 = vld [vmem:[%s7059_s7 + $0x18] sm:$0xff] }
 0x7fa   :  { %v4229_v1 = vpop.f32.mrb[56].mxu1  ;;  %v3315_v40 = vadd.f32 %v4228_v26, %v3200_v20  ;;  %v3672_v26 = vld [vmem:[%s7059_s7 + $0x10] sm:$0xff] }
 0x7fb   :  { %v4230_v30 = vpop.f32.mrb[57].mxu1 }
 0x7fc   :  { %v4231_v58 = vadd.f32 %v4230_v30, %v4229_v1  ;;  %v3884_v1 = vld [vmem:[%s7060_s9 + $0x8] sm:$0x3] }
 0x7fe   :  { %v4232_v23 = vpop.f32.mrb[58].mxu1  ;;  %v3320_v7 = vadd.f32 %v4231_v58, %v3205_v41 }
 0x7ff   :  { %v4233_v46 = vpop.f32.mrb[59].mxu1 }
 0x800   :  { %v4234_v54 = vadd.f32 %v4233_v46, %v4232_v23 }
 0x802   :  { %v4235_v37 = vpop.f32.mrb[60].mxu1  ;;  %v3325_v33 = vadd.f32 %v4234_v54, %v3210_v2 }
 0x803   :  { %v4236_v19 = vpop.f32.mrb[61].mxu1 }
 0x804   :  { %v4237_v8 = vadd.f32 %v4236_v19, %v4235_v37 }
 0x806   :  { %v4238_v6 = vpop.f32.mrb[62].mxu1  ;;  %v3330_v56 = vadd.f32 %v4237_v8, %v3215_v48 }
 0x807   :  { %v4239_v36 = vpop.f32.mrb[63].mxu1 }
 0x808   :  { %v4240_v22 = vadd.f32 %v4239_v36, %v4238_v6 }
 0x80a   :  { %v4241_v44 = vpop.f32.mrb[64].mxu1  ;;  %v3335_v52 = vadd.f32 %v4240_v22, %v3220_v39 }
 0x80b   :  { %v4242_v17 = vpop.f32.mrb[65].mxu1 }
 0x80c   :  { %v4243_v42 = vadd.f32 %v4242_v17, %v4241_v44 }
 0x80e   :  { %v4244_v0 = vpop.f32.mrb[66].mxu1  ;;  %v3340_v20 = vadd.f32 %v4243_v42, %v3225_v45 }
 0x80f   :  { %v4245_v50 = vpop.f32.mrb[67].mxu1 }
 0x810   :  { %v4246_v28 = vadd.f32 %v4245_v50, %v4244_v0 }
 0x812   :  { %v4247_v47 = vpop.f32.mrb[68].mxu1  ;;  %v3345_v41 = vadd.f32 %v4246_v28, %v3230_v12 }
 0x813   :  { %v4248_v27 = vpop.f32.mrb[69].mxu1 }
 0x814   :  { %v4249_v29 = vadd.f32 %v4248_v27, %v4247_v47 }
 0x816   :  { %v4371_v49 = vpop.f32.mrb[70].mxu1  ;;  %v3350_v2 = vadd.f32 %v4249_v29, %v3235_v63 }
 0x817   :  { %v3425_v15 = vadd.f32 %v4371_v49, %v3310_v13  ;;  %v3419_v9 = vpop.f32.mrb[71].mxu1  ;;  %v3670_v13 = vld [vmem:[%s7059_s7] sm:$0xff] }
 0x818   :  { %v3420_v18 = vadd.f32 %v3419_v9, %v3305_v61 }
 0x819   :  { %v3469_v48 = vmax.f32 %v3425_v15, 0.0 }
 0x81a   :  { %v3468_v4 = vmax.f32 %v3420_v18, 0.0  ;;  %v4374_v21 = vpop.f32.mrb[72].mxu1 }
 0x81b   :  { %3479 = vst.msk [vmem:[#allocation6 + $0x8] sm:$0xff] %vm301_vm2, %v3469_v48  ;;  %v3435_v5 = vadd.f32 %v4374_v21, %v3320_v7  ;;  %3540 = vrot.lane.b32.xlu0 %v3469_v48, %s4768_s1  ;;  %v3429_v39 = vpop.f32.mrb[73].mxu1 }
 0x81c   :  { %3478 = vst.msk [vmem:[#allocation6] sm:$0xff] %vm301_vm2, %v3468_v4  ;;  %v3430_v24 = vadd.f32 %v3429_v39, %v3315_v40  ;;  %3538 = vrot.lane.b32.xlu1 %v3468_v4, %s4768_s1  ;;  %v3883_v40 = vld [vmem:[%s7060_s9] sm:$0xff] }
 0x81d   :  { %v3471_v10 = vmax.f32 %v3435_v5, 0.0 }
 0x81e   :  { %v3470_v60 = vmax.f32 %v3430_v24, 0.0  ;;  %v4377_v34 = vpop.f32.mrb[74].mxu1 }
 0x81f   :  { %3481 = vst.msk [vmem:[#allocation6 + $0x18] sm:$0xff] %vm301_vm2, %v3471_v10  ;;  %v3445_v45 = vadd.f32 %v4377_v34, %v3330_v56  ;;  %3544 = vrot.lane.b32.xlu0 %v3471_v10, %s4768_s1  ;;  %v3439_v11 = vpop.f32.mrb[75].mxu1 }
 0x820   :  { %3480 = vst.msk [vmem:[#allocation6 + $0x10] sm:$0xff] %vm301_vm2, %v3470_v60  ;;  %v3440_v31 = vadd.f32 %v3439_v11, %v3325_v33  ;;  %3542 = vrot.lane.b32.xlu1 %v3470_v60, %s4768_s1 }
 0x821   :  { %v3473_v55 = vmax.f32 %v3445_v45, 0.0 }
 0x822   :  { %v3472_v38 = vmax.f32 %v3440_v31, 0.0  ;;  %v4380_v12 = vpop.f32.mrb[76].mxu1  ;;  %v3631_v22 = vld [vmem:[#allocation6 + $0x8] sm:$0xff] }
 0x823   :  { %3483 = vst.msk [vmem:[#allocation6 + $0x28] sm:$0xff] %vm301_vm2, %v3473_v55  ;;  %v3455_v43 = vadd.f32 %v4380_v12, %v3340_v20  ;;  %3548 = vrot.lane.b32.xlu0 %v3473_v55, %s4768_s1  ;;  %v3449_v32 = vpop.f32.mrb[77].mxu1  ;;  %v3630_v36 = vld [vmem:[#allocation6] sm:$0xff] }
 0x824   :  { %3482 = vst.msk [vmem:[#allocation6 + $0x20] sm:$0xff] %vm301_vm2, %v3472_v38  ;;  %v3450_v53 = vadd.f32 %v3449_v32, %v3335_v52  ;;  %3546 = vrot.lane.b32.xlu1 %v3472_v38, %s4768_s1  ;;  %v4594_v42 = vpack.c.bf16 %v3631_v22, %v3630_v36  ;;  %v3618_v22 = vld [vmem:[%s7058_s6] sm:$0xff] }
 0x825   :  { %v3475_v14 = vmax.f32 %v3455_v43, 0.0 }
 0x826   :  { %v3474_v63 = vmax.f32 %v3450_v53, 0.0  ;;  %v4383_v57 = vpop.f32.mrb[78].mxu1  ;;  %v3633_v28 = vld [vmem:[#allocation6 + $0x18] sm:$0xff] }
 0x827   :  { %3485 = vst.msk [vmem:[#allocation6 + $0x38] sm:$0xff] %vm301_vm2, %v3475_v14  ;;  %v3465_v25 = vadd.f32 %v4383_v57, %v3350_v2  ;;  %3512 = vrot.lane.b32.xlu0 %v3475_v14, %s4767_s22  ;;  %v3459_v35 = vpop.f32.mrb[79].mxu1  ;;  %v3632_v50 = vld [vmem:[#allocation6 + $0x10] sm:$0xff] }
 0x828   :  { %3484 = vst.msk [vmem:[#allocation6 + $0x30] sm:$0xff] %vm301_vm2, %v3474_v63  ;;  %v3460_v59 = vadd.f32 %v3459_v35, %v3345_v41  ;;  %3510 = vrot.lane.b32.xlu1 %v3474_v63, %s4767_s22  ;;  %v4598_v2 = vpack.c.bf16 %v3633_v28, %v3632_v50  ;;  %v3621_v50 = vld [vmem:[%s7058_s6 + $0x18] sm:$0xff] }
 0x829   :  { %v3477_v61 = vmax.f32 %v3465_v25, 0.0 }
 0x82a   :  { %v3476_v51 = vmax.f32 %v3460_v59, 0.0 }
 0x82b   :  { %3487 = vst.msk [vmem:[#allocation6 + $0x48] sm:$0xff] %vm301_vm2, %v3477_v61  ;;  %3516 = vrot.lane.b32.xlu0 %v3477_v61, %s4767_s22  ;;  %v3634_v18 = vld [vmem:[#allocation6 + $0x20] sm:$0xff] }
 0x82c   :  { %3486 = vst.msk [vmem:[#allocation6 + $0x40] sm:$0xff] %vm301_vm2, %v3476_v51  ;;  %3514 = vrot.lane.b32.xlu1 %v3476_v51, %s4767_s22 }
 0x82e   :  { %v3637_v34 = vld [vmem:[#allocation6 + $0x38] sm:$0xff] }
 0x82f   :  { %3552 = vrot.lane.b32.xlu0 %v3475_v14, %s4768_s1 }
 0x830   :  { %3550 = vrot.lane.b32.xlu1 %v3474_v63, %s4768_s1 }
 0x832   :  { %v3639_v32 = vld [vmem:[#allocation6 + $0x48] sm:$0xff] }
 0x833   :  { %3500 = vrot.lane.b32.xlu0 %v3469_v48, %s4767_s22  ;;  %v3638_v43 = vld [vmem:[#allocation6 + $0x40] sm:$0xff] }
 0x834   :  { %3498 = vrot.lane.b32.xlu1 %v3468_v4, %s4767_s22  ;;  %v4610_v57 = vpack.c.bf16 %v3639_v32, %v3638_v43 }
 0x837   :  { %3556 = vrot.lane.b32.xlu0 %v3477_v61, %s4768_s1 }
 0x838   :  { %3502 = vrot.lane.b32.xlu1 %v3470_v60, %s4767_s22 }
 0x83b   :  { %3504 = vrot.lane.b32.xlu0 %v3471_v10, %s4767_s22 }
 0x83c   :  { %3578 = vrot.lane.b32.xlu1 %v3468_v4, %s4769_s23 }
 0x83f   :  { %3580 = vrot.lane.b32.xlu0 %v3469_v48, %s4769_s23  ;;  %v3635_v48 = vld [vmem:[#allocation6 + $0x28] sm:$0xff] }
 0x840   :  { %3554 = vrot.lane.b32.xlu1 %v3476_v51, %s4768_s1  ;;  %v4602_v39 = vpack.c.bf16 %v3635_v48, %v3634_v18  ;;  %v3627_v18 = vld [vmem:[%s7058_s6 + $0x48] sm:$0xff] }
 0x843   :  { %3508 = vrot.lane.b32.xlu0 %v3473_v55, %s4767_s22 }
 0x844   :  { %3506 = vrot.lane.b32.xlu1 %v3472_v38, %s4767_s22 }
 0x847   :  { %3584 = vrot.lane.b32.xlu0 %v3471_v10, %s4769_s23 }
 0x848   :  { %3582 = vrot.lane.b32.xlu1 %v3470_v60, %s4769_s23  ;;  %v3636_v60 = vld [vmem:[#allocation6 + $0x30] sm:$0xff] }
 0x84b   :  { %3588 = vrot.lane.b32.xlu0 %v3473_v55, %s4769_s23  ;;  %v4606_v55 = vpack.c.bf16 %v3637_v34, %v3636_v60 }
 0x84c   :  { %3586 = vrot.lane.b32.xlu1 %v3472_v38, %s4769_s23 }
 0x84f   :  { %3592 = vrot.lane.b32.xlu0 %v3475_v14, %s4769_s23 }
 0x850   :  { %3590 = vrot.lane.b32.xlu1 %v3474_v63, %s4769_s23 }
 0x853   :  { %3596 = vrot.lane.b32.xlu0 %v3477_v61, %s4769_s23 }
 0x854   :  { %3594 = vrot.lane.b32.xlu1 %v3476_v51, %s4769_s23 }
 0x857   :  { %3681 = vperm.xlu0 %4762, %v3671_v16  }
 0x858   :  { %3676 = vperm.xlu1 %4763, %v3670_v13  }
 0x85b   :  { %3691 = vperm.xlu0 %4762, %v3673_v3  }
 0x85c   :  { %3686 = vperm.xlu1 %4763, %v3672_v26  }
 0x85f   :  { %3892 = vperm.xlu0 %4762, %v3884_v1  }
 0x860   :  { %3887 = vperm.xlu1 %4763, %v3883_v40  }
 0x88d   :  { %v3541_v30 = vpop.permute.xlu0 %3540 }
 0x88e   :  { %3569 = vst.msk [vmem:[#allocation6 + $0xa8] sm:$0xff] %vm301_vm2, %v3541_v30  ;;  %v3539_v58 = vpop.permute.xlu1 %3538 }
 0x88f   :  { %3568 = vst.msk [vmem:[#allocation6 + $0xa0] sm:$0xff] %vm301_vm2, %v3539_v58 }
 0x891   :  { %v3545_v23 = vpop.permute.xlu0 %3544 }
 0x892   :  { %3571 = vst.msk [vmem:[#allocation6 + $0xb8] sm:$0xff] %vm301_vm2, %v3545_v23  ;;  %v3543_v7 = vpop.permute.xlu1 %3542 }
 0x893   :  { %3570 = vst.msk [vmem:[#allocation6 + $0xb0] sm:$0xff] %vm301_vm2, %v3543_v7 }
 0x895   :  { %v3549_v46 = vpop.permute.xlu0 %3548  ;;  %v3651_v29 = vld [vmem:[#allocation6 + $0xa8] sm:$0xff] }
 0x896   :  { %3573 = vst.msk [vmem:[#allocation6 + $0xc8] sm:$0xff] %vm301_vm2, %v3549_v46  ;;  %v3547_v54 = vpop.permute.xlu1 %3546  ;;  %v3650_v27 = vld [vmem:[#allocation6 + $0xa0] sm:$0xff] }
 0x897   :  { %3572 = vst.msk [vmem:[#allocation6 + $0xc0] sm:$0xff] %vm301_vm2, %v3547_v54  ;;  %v4600_v9 = vpack.c.bf16 %v3651_v29, %v3650_v27  ;;  %v3624_v29 = vld [vmem:[%s7058_s6 + $0x30] sm:$0xff] }
 0x899   :  { %v3513_v37 = vpop.permute.xlu0 %3512  ;;  %v3653_v5 = vld [vmem:[#allocation6 + $0xb8] sm:$0xff] }
 0x89a   :  { %3535 = vst.msk [vmem:[#allocation6 + $0x88] sm:$0xff] %vm301_vm2, %v3513_v37  ;;  %v3511_v33 = vpop.permute.xlu1 %3510  ;;  %v3652_v21 = vld [vmem:[#allocation6 + $0xb0] sm:$0xff] }
 0x89b   :  { %3534 = vst.msk [vmem:[#allocation6 + $0x80] sm:$0xff] %vm301_vm2, %v3511_v33  ;;  %v4604_v10 = vpack.c.bf16 %v3653_v5, %v3652_v21  ;;  %v3620_v21 = vld [vmem:[%s7058_s6 + $0x10] sm:$0xff]  ;;  %v3623_v5 = vld [vmem:[%s7058_s6 + $0x28] sm:$0xff] }
 0x89d   :  { %v3517_v19 = vpop.permute.xlu0 %3516  ;;  %v3655_v31 = vld [vmem:[#allocation6 + $0xc8] sm:$0xff] }
 0x89e   :  { %3537 = vst.msk [vmem:[#allocation6 + $0x98] sm:$0xff] %vm301_vm2, %v3517_v19  ;;  %v3515_v8 = vpop.permute.xlu1 %3514  ;;  %v3654_v11 = vld [vmem:[#allocation6 + $0xc0] sm:$0xff] }
 0x89f   :  { %3536 = vst.msk [vmem:[#allocation6 + $0x90] sm:$0xff] %vm301_vm2, %v3515_v8  ;;  %v4608_v12 = vpack.c.bf16 %v3655_v31, %v3654_v11 }
 0x8a1   :  { %v3553_v6 = vpop.permute.xlu0 %3552  ;;  %v3647_v56 = vld [vmem:[#allocation6 + $0x88] sm:$0xff] }
 0x8a2   :  { %3575 = vst.msk [vmem:[#allocation6 + $0xd8] sm:$0xff] %vm301_vm2, %v3553_v6  ;;  %v3551_v44 = vpop.permute.xlu1 %3550  ;;  %v3646_v52 = vld [vmem:[#allocation6 + $0x80] sm:$0xff] }
 0x8a3   :  { %3574 = vst.msk [vmem:[#allocation6 + $0xd0] sm:$0xff] %vm301_vm2, %v3551_v44  ;;  %v4592_v17 = vpack.c.bf16 %v3647_v56, %v3646_v52 }
 0x8a5   :  { %v3501_v0 = vpop.permute.xlu0 %3500  ;;  %4593 = vmatprep.subr.bf16.mxu1 %v4592_v17  ;;  %v3649_v20 = vld [vmem:[#allocation6 + $0x98] sm:$0xff]  ;;  %v3622_v17 = vld [vmem:[%s7058_s6 + $0x20] sm:$0xff] }
 0x8a6   :  { %3529 = vst.msk [vmem:[#allocation6 + $0x58] sm:$0xff] %vm301_vm2, %v3501_v0  ;;  %4595 = vmatpush3.bf16.msra.mxu1 %v4594_v42  ;;  %v3499_v47 = vpop.permute.xlu1 %3498  ;;  %v3648_v41 = vld [vmem:[#allocation6 + $0x90] sm:$0xff] }
 0x8a7   :  { %3528 = vst.msk [vmem:[#allocation6 + $0x50] sm:$0xff] %vm301_vm2, %v3499_v47  ;;  %v4596_v49 = vpack.c.bf16 %v3649_v20, %v3648_v41  ;;  %v3625_v41 = vld [vmem:[%s7058_s6 + $0x38] sm:$0xff] }
 0x8a9   :  { %v3557_v15 = vpop.permute.xlu0 %3556  ;;  %4597 = vmatprep.subr.bf16.mxu1 %v4596_v49  ;;  %v3657_v63 = vld [vmem:[#allocation6 + $0xd8] sm:$0xff] }
 0x8aa   :  { %3577 = vst.msk [vmem:[#allocation6 + $0xe8] sm:$0xff] %vm301_vm2, %v3557_v15  ;;  %4599 = vmatpush3.bf16.msra.mxu1 %v4598_v2  ;;  %v3503_v4 = vpop.permute.xlu1 %3502  ;;  %v3656_v14 = vld [vmem:[#allocation6 + $0xd0] sm:$0xff]  ;;  %v3628_v15 = vld [vmem:[%s7058_s6 + $0x50] sm:$0xff] }
 0x8ab   :  { %3530 = vst.msk [vmem:[#allocation6 + $0x60] sm:$0xff] %vm301_vm2, %v3503_v4  ;;  %4601 = vmatprep.subr.bf16.mxu1 %v4600_v9  ;;  %v4612_v35 = vpack.c.bf16 %v3657_v63, %v3656_v14 }
 0x8ad   :  { %v3505_v24 = vpop.permute.xlu0 %3504  ;;  %v3641_v61 = vld [vmem:[#allocation6 + $0x58] sm:$0xff] }
 0x8ae   :  { %3531 = vst.msk [vmem:[#allocation6 + $0x68] sm:$0xff] %vm301_vm2, %v3505_v24  ;;  %4603 = vmatpush3.bf16.msra.mxu1 %v4602_v39  ;;  %v3579_v45 = vpop.permute.xlu1 %3578  ;;  %v3640_v59 = vld [vmem:[#allocation6 + $0x50] sm:$0xff]  ;;  %v3629_v24 = vld [vmem:[%s7058_s6 + $0x58] sm:$0xff] }
 0x8af   :  { %3608 = vst.msk [vmem:[#allocation6 + $0xf0] sm:$0xff] %vm301_vm2, %v3579_v45  ;;  %4605 = vmatprep.subr.bf16.mxu1 %v4604_v10  ;;  %v4614_v62 = vpack.c.bf16 %v3641_v61, %v3640_v59  ;;  %v3626_v39 = vld [vmem:[%s7058_s6 + $0x40] sm:$0xff] }
 0x8b0   :  { %v3881_v10 = vld [vmem:[%s7061_s8] sm:$0xff] }
 0x8b1   :  { %v3581_v38 = vpop.permute.xlu0 %3580  ;;  %v3659_v1 = vld [vmem:[#allocation6 + $0xe8] sm:$0xff] }
 0x8b2   :  { %3609 = vst.msk [vmem:[#allocation6 + $0xf8] sm:$0xff] %vm301_vm2, %v3581_v38  ;;  %4607 = vmatpush3.bf16.msra.mxu1 %v4606_v55  ;;  %v3555_v53 = vpop.permute.xlu1 %3554  ;;  %v3642_v58 = vld [vmem:[#allocation6 + $0x60] sm:$0xff] }
 0x8b3   :  { %3576 = vst.msk [vmem:[#allocation6 + $0xe0] sm:$0xff] %vm301_vm2, %v3555_v53  ;;  %4609 = vmatprep.subr.bf16.mxu1 %v4608_v12 }
 0x8b5   :  { %v3509_v25 = vpop.permute.xlu0 %3508  ;;  %v3643_v13 = vld [vmem:[#allocation6 + $0x68] sm:$0xff] }
 0x8b6   :  { %3533 = vst.msk [vmem:[#allocation6 + $0x78] sm:$0xff] %vm301_vm2, %v3509_v25  ;;  %4611 = vmatpush3.bf16.msra.mxu1 %v4610_v57  ;;  %v3507_v51 = vpop.permute.xlu1 %3506  ;;  %v4618_v23 = vpack.c.bf16 %v3643_v13, %v3642_v58  ;;  %v3660_v7 = vld [vmem:[#allocation6 + $0xf0] sm:$0xff] }
 0x8b7   :  { %3532 = vst.msk [vmem:[#allocation6 + $0x70] sm:$0xff] %vm301_vm2, %v3507_v51  ;;  %4613 = vmatprep.subr.bf16.mxu1 %v4612_v35 }
 0x8b9   :  { %v3585_v16 = vpop.permute.xlu0 %3584  ;;  %v3661_v40 = vld [vmem:[#allocation6 + $0xf8] sm:$0xff] }
 0x8ba   :  { %3611 = vst.msk [vmem:[#allocation6 + $0x108] sm:$0xff] %vm301_vm2, %v3585_v16  ;;  %4615 = vmatpush3.bf16.msra.mxu1 %v4614_v62  ;;  %v3583_v3 = vpop.permute.xlu1 %3582  ;;  %v3658_v26 = vld [vmem:[#allocation6 + $0xe0] sm:$0xff]  ;;  %v4620_v54 = vpack.c.bf16 %v3661_v40, %v3660_v7 }
 0x8bb   :  { %3610 = vst.msk [vmem:[#allocation6 + $0x100] sm:$0xff] %vm301_vm2, %v3583_v3  ;;  %v4616_v30 = vpack.c.bf16 %v3659_v1, %v3658_v26 }
 0x8bd   :  { %v3589_v46 = vpop.permute.xlu0 %3588  ;;  %4617 = vmatprep.subr.bf16.mxu1 %v4616_v30  ;;  %v3645_v37 = vld [vmem:[#allocation6 + $0x78] sm:$0xff] }
 0x8be   :  { %3613 = vst.msk [vmem:[#allocation6 + $0x118] sm:$0xff] %vm301_vm2, %v3589_v46  ;;  %4619 = vmatpush3.bf16.msra.mxu1 %v4618_v23  ;;  %v3587_v33 = vpop.permute.xlu1 %3586  ;;  %v3644_v19 = vld [vmem:[#allocation6 + $0x70] sm:$0xff] }
 0x8bf   :  { %3612 = vst.msk [vmem:[#allocation6 + $0x110] sm:$0xff] %vm301_vm2, %v3587_v33  ;;  %4621 = vmatprep.subr.bf16.mxu1 %v4620_v54  ;;  %v4622_v8 = vpack.c.bf16 %v3645_v37, %v3644_v19  ;;  %v3882_v19 = vld [vmem:[%s7061_s8 + $0x8] sm:$0x3] }
 0x8c1   :  { %v3593_v6 = vpop.permute.xlu0 %3592  ;;  %v3663_v56 = vld [vmem:[#allocation6 + $0x108] sm:$0xff] }
 0x8c2   :  { %3615 = vst.msk [vmem:[#allocation6 + $0x128] sm:$0xff] %vm301_vm2, %v3593_v6  ;;  %4623 = vmatpush3.bf16.msra.mxu1 %v4622_v8  ;;  %v3591_v36 = vpop.permute.xlu1 %3590  ;;  %v3662_v44 = vld [vmem:[#allocation6 + $0x100] sm:$0xff] }
 0x8c3   :  { %3614 = vst.msk [vmem:[#allocation6 + $0x120] sm:$0xff] %vm301_vm2, %v3591_v36  ;;  %v4624_v52 = vpack.c.bf16 %v3663_v56, %v3662_v44 }
 0x8c5   :  { %v3597_v42 = vpop.permute.xlu0 %3596  ;;  %3772 = vmatmul.mubr.f32.vlgmr.msra.gmra.mrb[80].mxu1 %v3618_v22  ;;  %4625 = vmatprep.subr.bf16.mxu1 %v4624_v52  ;;  %v3665_v0 = vld [vmem:[#allocation6 + $0x118] sm:$0xff] }
 0x8c6   :  { %3617 = vst.msk [vmem:[#allocation6 + $0x138] sm:$0xff] %vm301_vm2, %v3597_v42  ;;  %4627 = vmatpush3.bf16.msra.mxu1 %v4624_v52  ;;  %v3595_v20 = vpop.permute.xlu1 %3594  ;;  %3776 = vmatprep.mubr.f32.mxu1 %v3622_v17  ;;  %v3664_v28 = vld [vmem:[#allocation6 + $0x110] sm:$0xff] }
 0x8c7   :  { %3616 = vst.msk [vmem:[#allocation6 + $0x130] sm:$0xff] %vm301_vm2, %v3595_v20  ;;  %v4628_v47 = vpack.c.bf16 %v3665_v0, %v3664_v28 }
 0x8c9   :  { %3777 = vmatmul.mubr.f32.gmra.mrb[82].mxu1 %v3621_v50  ;;  %4629 = vmatprep.subr.bf16.mxu1 %v4628_v47  ;;  %v3667_v27 = vld [vmem:[#allocation6 + $0x128] sm:$0xff] }
 0x8ca   :  { %4631 = vmatpush3.bf16.msra.mxu1 %v4628_v47  ;;  %3781 = vmatprep.mubr.f32.mxu1 %v3625_v41  ;;  %v3666_v49 = vld [vmem:[#allocation6 + $0x120] sm:$0xff] }
 0x8cb   :  { %v4632_v2 = vpack.c.bf16 %v3667_v27, %v3666_v49 }
 0x8cd   :  { %3782 = vmatmul.mubr.f32.gmra.mrb[84].mxu1 %v3624_v29  ;;  %4633 = vmatprep.subr.bf16.mxu1 %v4632_v2  ;;  %v3669_v9 = vld [vmem:[#allocation6 + $0x138] sm:$0xff] }
 0x8ce   :  { %4635 = vmatpush3.bf16.msra.mxu1 %v4632_v2  ;;  %3786 = vmatprep.mubr.f32.mxu1 %v3628_v15  ;;  %v3668_v48 = vld [vmem:[#allocation6 + $0x130] sm:$0xff] }
 0x8cf   :  { %v4636_v4 = vpack.c.bf16 %v3669_v9, %v3668_v48 }
 0x8d1   :  { %3787 = vmatmul.mubr.f32.gmra.mrb[86].mxu1 %v3627_v18  ;;  %4637 = vmatprep.subr.bf16.mxu1 %v4636_v4 }
 0x8d2   :  { %4639 = vmatpush3.bf16.msra.mxu1 %v4636_v4  ;;  %4400 = vmatprep.mubr.msk.f32.mxu1 %vm3694_vm3, %v3620_v21 }
 0x8d5   :  { %4401 = vmatmul.mubr.msk.f32.vlgmr.msra.gmra.mrb[88].mxu1 %vm3694_vm3, %v3623_v5 }
 0x8d6   :  { %4403 = vmatprep.mubr.msk.f32.mxu1 %vm3694_vm3, %v3626_v39  ;;  %v3682_v32 = vpop.permute.xlu0 %3681 }
 0x8d7   :  { %v3677_v14 = vpop.permute.xlu1 %3676 }
 0x8d9   :  { %4404 = vmatmul.mubr.msk.f32.gmra.mrb[90].mxu1 %vm3694_vm3, %v3629_v24 }
 0x8da   :  { %4414 = vmatprep.mubr.msk.f32.mxu1 %vm2387_vm15, %v3881_v10  ;;  %v3692_v62 = vpop.permute.xlu0 %3691 }
 0x8db   :  { %v3687_v13 = vpop.permute.xlu1 %3686 }
 0x8de   :  { %v3893_v8 = vpop.permute.xlu0 %3892 }
 0x8df   :  { %v3888_v56 = vpop.permute.xlu1 %3887 }
 0x998   :  { %v4296_v60 = vpop.f32.mrb[80].mxu1 }
 0x999   :  { %v4297_v34 = vpop.f32.mrb[81].mxu1 }
 0x99a   :  { %v4298_v45 = vadd.f32 %v4297_v34, %v4296_v60 }
 0x99c   :  { %v4299_v11 = vpop.f32.mrb[82].mxu1  ;;  %v3774_v59 = vadd.f32 %v4298_v45, %v3677_v14 }
 0x99d   :  { %v4300_v31 = vpop.f32.mrb[83].mxu1 }
 0x99e   :  { %v4301_v55 = vadd.f32 %v4300_v31, %v4299_v11 }
 0x9a0   :  { %v4302_v38 = vpop.f32.mrb[84].mxu1  ;;  %v3779_v25 = vadd.f32 %v4301_v55, %v3682_v32 }
 0x9a1   :  { %v4303_v12 = vpop.f32.mrb[85].mxu1 }
 0x9a2   :  { %v4304_v43 = vadd.f32 %v4303_v12, %v4302_v38 }
 0x9a4   :  { %v4305_v53 = vpop.f32.mrb[86].mxu1  ;;  %v3784_v30 = vadd.f32 %v4304_v43, %v3687_v13 }
 0x9a5   :  { %v4306_v63 = vpop.f32.mrb[87].mxu1 }
 0x9a6   :  { %v4307_v57 = vadd.f32 %v4306_v63, %v4305_v53 }
 0x9a8   :  { %v4402_v35 = vpop.f32.mrb[88].mxu1  ;;  %v3789_v26 = vadd.f32 %v4307_v57, %v3692_v62 }
 0x9a9   :  { %v3864_v61 = vadd.f32 %v4402_v35, %v3779_v25  ;;  %v3858_v51 = vpop.f32.mrb[89].mxu1 }
 0x9aa   :  { %v3859_v16 = vadd.f32 %v3858_v51, %v3774_v59 }
 0x9ab   :  { %v3878_v3 = vmax.f32 %v3864_v61, 0.0 }
 0x9ac   :  { %v3877_v1 = vmax.f32 %v3859_v16, 0.0  ;;  %v4405_v40 = vpop.f32.mrb[90].mxu1 }
 0x9ad   :  { %v3874_v58 = vadd.f32 %v4405_v40, %v3789_v26  ;;  %v3868_v23 = vpop.f32.mrb[91].mxu1 }
 0x9ae   :  { %v4640_v7 = vpack.c.bf16 %v3878_v3, %v3877_v1  ;;  %v3869_v46 = vadd.f32 %v3868_v23, %v3784_v30 }
 0x9af   :  { %v3880_v54 = vmax.f32 %v3874_v58, 0.0 }
 0x9b0   :  { %v3879_v37 = vmax.f32 %v3869_v46, 0.0  ;;  %4641 = vmatprep.subr.bf16.mxu1 %v4640_v7 }
 0x9b1   :  { %4643 = vmatpush3.bf16.msra.mxu1 %v4640_v7 }
 0x9b2   :  { %v4644_v33 = vpack.c.bf16 %v3880_v54, %v3879_v37 }
 0x9b4   :  { %4645 = vmatprep.subr.bf16.mxu1 %v4644_v33 }
 0x9b5   :  { %4647 = vmatpush3.bf16.msra.mxu1 %v4644_v33 }
 0x9b8   :  { %4415 = vmatmul.mubr.msk.f32.vlgmr.msra.gmra.mrb[92].mxu1 %vm2387_vm15, %v3882_v19 }
 0xa8b   :  { %v4416_v6 = vpop.f32.mrb[92].mxu1 }
 0xa8c   :  { %v3973_v36 = vadd.f32 %v4416_v6, %v3893_v8  ;;  %v3967_v22 = vpop.f32.mrb[93].mxu1 }
 0xa8d   :  { %v3968_v44 = vadd.f32 %v3967_v22, %v3888_v56 }
 0xa8e   :  { %3978 = vst.msk [vmem:[%s7062_s10 + $0x8] sm:$0x3] %vm3977_vm4, %v3973_v36 }
 0xa8f   :  { %3976 = vst.msk [vmem:[%s7062_s10] sm:$0xff] %vm301_vm2, %v3968_v44 }

</bundles_post_ra>
